<compile_context>
chip_gen: v7x
topology: tpu7x:2x2x1
jax: 0.10.0
libtpu: 0.0.40
codegen_flags: <defaults>
</compile_context>

<pallas_src>
import functools
import math

import jax
import jax.numpy as jnp
from jax import lax
from jax.experimental import pallas as pl
from jax.experimental.pallas import tpu as pltpu


# -----------------------------------------------------------------------------
# Pallas kernel: fused im2col-GEMM + bias + LeakyReLU epilogue.
#     out[co, m] = leaky_relu( sum_k W[co, k] * P[k, m] + bias[co] )
# -----------------------------------------------------------------------------
def _gemm_bias_lrelu_kernel(w_ref, b_ref, p_ref, o_ref, *, negative_slope):
    # w_ref: (C_out, K)          bf16  (constant index_map -> resident over grid)
    # b_ref: (C_out, 1)          f32
    # p_ref: (1, K, M_TILE)      bf16  (lane-dense patch tile)
    # o_ref: (1, C_out, M_TILE)  f32   (lane-dense output tile)
    acc = lax.dot_general(
        w_ref[...], p_ref[0],
        dimension_numbers=(((1,), (0,)), ((), ())),
        preferred_element_type=jnp.float32)            # (C_out, M_TILE) f32 acc
    acc = acc + b_ref[...]                              # f32 epilogue (bias)
    o_ref[0] = jnp.where(acc > 0, acc, negative_slope * acc)   # LeakyReLU(0.2)


# -----------------------------------------------------------------------------
# One VanillaConv(norm='SN') layer: 3D conv (stride / dilation supported)
# + bias + LeakyReLU, via im2col + the fused Pallas GEMM kernel.
# -----------------------------------------------------------------------------
def _round_up(x, m):
    return ((x + m - 1) // m) * m


def _to3(v):
    if isinstance(v, (tuple, list)):
        return tuple(int(t) for t in v)
    return (int(v),) * 3


def vanilla_conv_sn_lrelu_pallas(x, weight, bias, *, stride, padding, dilation,
                                 negative_slope=0.2):
    """x: (B, C_in, D, H, W) f32 ; weight: (C_out, C_in, KD, KH, KW) ; bias: (C_out,)."""
    sd, sh, sw = _to3(stride)
    pd, ph, pw = _to3(padding)
    dd, dh, dw = _to3(dilation)
    b, c_in, d, h, w = x.shape
    c_out, _, kd, kh, kw = weight.shape

    d_out = (d + 2 * pd - dd * (kd - 1) - 1) // sd + 1
    h_out = (h + 2 * ph - dh * (kh - 1) - 1) // sh + 1
    w_out = (w + 2 * pw - dw * (kw - 1) - 1) // sw + 1

    # ---- im2col in bf16 (halves the HBM footprint of the patch tensor) ----
    xp = jnp.pad(x.astype(jnp.bfloat16),
                 ((0, 0), (0, 0), (pd, pd), (ph, ph), (pw, pw)))
    taps = []
    for i in range(kd):
        for j in range(kh):
            for k in range(kw):
                taps.append(lax.slice(
                    xp,
                    (0, 0, i * dd, j * dh, k * dw),
                    (b, c_in,
                     i * dd + (d_out - 1) * sd + 1,
                     j * dh + (h_out - 1) * sh + 1,
                     k * dw + (w_out - 1) * sw + 1),
                    (1, 1, sd, sh, sw)))
    patches = jnp.concatenate(taps, axis=1)      # (B, K, D_out, H_out, W_out)

    K = kd * kh * kw * c_in
    S = d_out * h_out * w_out
    m_tile = min(512, _round_up(S, 128))         # lane-dense output tile
    s_pad = _round_up(S, m_tile)
    P = patches.reshape(b, K, S)
    if s_pad != S:
        P = jnp.pad(P, ((0, 0), (0, 0), (0, s_pad - S)))

    # weight (O, I, KD, KH, KW) -> (O, KD, KH, KW, I) -> (O, K): matches the
    # tap-major / channel-minor ordering of `patches` above.
    w_mat = jnp.transpose(weight, (0, 2, 3, 4, 1)).reshape(c_out, K)
    w_mat = w_mat.astype(jnp.bfloat16)
    b_mat = bias.reshape(c_out, 1).astype(jnp.float32)

    kernel = functools.partial(_gemm_bias_lrelu_kernel,
                               negative_slope=negative_slope)

    out = pl.pallas_call(
        kernel,
        out_shape=jax.ShapeDtypeStruct((b, c_out, s_pad), jnp.float32),
        grid_spec=pltpu.PrefetchScalarGridSpec(
            num_scalar_prefetch=0,
            grid=(b, s_pad // m_tile),
            in_specs=[
                pl.BlockSpec((c_out, K), lambda bi, mi: (0, 0)),       # weights
                pl.BlockSpec((c_out, 1), lambda bi, mi: (0, 0)),       # bias
                pl.BlockSpec((1, K, m_tile), lambda bi, mi: (bi, 0, mi)),  # patches
            ],
            out_specs=pl.BlockSpec((1, c_out, m_tile),
                                   lambda bi, mi: (bi, 0, mi)),
        ),
        compiler_params=pltpu.CompilerParams(
            dimension_semantics=("parallel", "parallel")),
    )(w_mat, b_mat, P)

    return out[:, :, :S].reshape(b, c_out, d_out, h_out, w_out)


# -----------------------------------------------------------------------------
# Pure-JAX reference layer (same bf16 operands / f32 accumulation) — sanity only.
# -----------------------------------------------------------------------------
def vanilla_conv_sn_lrelu_ref(x, weight, bias, *, stride, padding, dilation,
                              negative_slope=0.2):
    s = _to3(stride)
    p = _to3(padding)
    dl = _to3(dilation)
    y = lax.conv_general_dilated(
        x.astype(jnp.bfloat16), weight.astype(jnp.bfloat16),
        window_strides=s,
        padding=[(p[0], p[0]), (p[1], p[1]), (p[2], p[2])],
        rhs_dilation=dl,
        dimension_numbers=("NCDHW", "OIDHW", "NCDHW"),
        preferred_element_type=jnp.float32)
    y = y + bias.reshape(1, -1, 1, 1, 1)
    return jnp.where(y > 0, y, negative_slope * y)


# -----------------------------------------------------------------------------
# DownSampleModule (vanilla / SN / 3d): layer configs, params, forward.
# -----------------------------------------------------------------------------
def downsample_module_configs(nc_in, nf):
    def same_pad(k, dil):  # VanillaConv padding=-1 rule
        return tuple((ki - 1) * di // 2 for ki, di in zip(k, dil))
    return [
        dict(cin=nc_in,  cout=nf,     k=(3, 5, 5), s=(1, 1, 1), p=(1, 1, 1), d=(1, 1, 1)),   # conv1
        dict(cin=nf,     cout=2 * nf, k=(3, 4, 4), s=(1, 2, 2), p=(1, 2, 2), d=(1, 1, 1)),   # conv2
        dict(cin=2 * nf, cout=2 * nf, k=(3, 3, 3), s=(1, 1, 1), p=(1, 1, 1), d=(1, 1, 1)),   # conv3
        dict(cin=2 * nf, cout=4 * nf, k=(3, 4, 4), s=(1, 2, 2), p=(1, 1, 1), d=(1, 1, 1)),   # conv4
        dict(cin=4 * nf, cout=4 * nf, k=(3, 3, 3), s=(1, 1, 1), p=(1, 1, 1), d=(1, 1, 1)),   # conv5
        dict(cin=4 * nf, cout=4 * nf, k=(3, 3, 3), s=(1, 1, 1), p=(1, 1, 1), d=(1, 1, 1)),   # conv6
        dict(cin=4 * nf, cout=4 * nf, k=(3, 3, 3), s=(1, 1, 1),
             p=same_pad((3, 3, 3), (1, 2, 2)),  d=(1, 2, 2)),                                # dilated_conv1
        dict(cin=4 * nf, cout=4 * nf, k=(3, 3, 3), s=(1, 1, 1),
             p=same_pad((3, 3, 3), (1, 4, 4)),  d=(1, 4, 4)),                                # dilated_conv2
        dict(cin=4 * nf, cout=4 * nf, k=(3, 3, 3), s=(1, 1, 1),
             p=same_pad((3, 3, 3), (1, 8, 8)),  d=(1, 8, 8)),                                # dilated_conv3
        dict(cin=4 * nf, cout=4 * nf, k=(3, 3, 3), s=(1, 1, 1),
             p=same_pad((3, 3, 3), (1, 16, 16)), d=(1, 16, 16)),                             # dilated_conv4
        dict(cin=4 * nf, cout=4 * nf, k=(3, 3, 3), s=(1, 1, 1), p=(1, 1, 1), d=(1, 1, 1)),   # conv7
        dict(cin=4 * nf, cout=4 * nf, k=(3, 3, 3), s=(1, 1, 1), p=(1, 1, 1), d=(1, 1, 1)),   # conv8
    ]


def init_conv_params(key, c_in, c_out, ksize):
    kd, kh, kw = ksize
    kw_key, kb_key = jax.random.split(key)
    fan_in = c_in * kd * kh * kw
    bound = 1.0 / math.sqrt(fan_in)
    weight = jax.random.uniform(kw_key, (c_out, c_in, kd, kh, kw),
                                jnp.float32, -bound, bound)
    bias = jax.random.uniform(kb_key, (c_out,), jnp.float32, -bound, bound)
    return weight, bias


def spectral_normalize(w, n_iter=30):
    """weight / sigma_max(weight.reshape(C_out, -1)), deterministic power iteration."""
    c_out = w.shape[0]
    w_mat = w.reshape(c_out, -1).astype(jnp.float32)
    u = jnp.ones((c_out,), jnp.float32) / jnp.sqrt(jnp.float32(c_out))
    v = jnp.zeros((w_mat.shape[1],), jnp.float32)
    for _ in range(n_iter):
        v = w_mat.T @ u
        v = v / (jnp.linalg.norm(v) + 1e-12)
        u = w_mat @ v
        u = u / (jnp.linalg.norm(u) + 1e-12)
    sigma = u @ (w_mat @ v)
    return (w / sigma).astype(w.dtype)


def downsample_module_forward(x, params_sn, cfgs, conv_layer):
    acts = []
    h = x
    for (wgt, bia), cfg in zip(params_sn, cfgs):
        h = conv_layer(h, wgt, bia,
                       stride=cfg['s'], padding=cfg['p'], dilation=cfg['d'])
        acts.append(h)
    c2, c4, c8 = acts[1], acts[3], acts[11]
    return c8, c4, c2                     # same tuple order as PyTorch forward


# -----------------------------------------------------------------------------
if __name__ == "__main__":
    key = jax.random.PRNGKey(0)

    # small video input (B, C, L, H, W) consistent with the module
    B, NC_IN, NF, L, H, W = 2, 4, 8, 4, 32, 32
    cfgs = downsample_module_configs(NC_IN, NF)

    keys = jax.random.split(key, len(cfgs) + 1)
    x = jax.random.normal(keys[0], (B, NC_IN, L, H, W), jnp.float32)

    params = []
    for kk, cfg in zip(keys[1:], cfgs):
        wgt, bia = init_conv_params(kk, cfg['cin'], cfg['cout'], cfg['k'])
        params.append((spectral_normalize(wgt), bia))   # norm='SN' path

    fwd = jax.jit(functools.partial(
        downsample_module_forward, cfgs=cfgs,
        conv_layer=vanilla_conv_sn_lrelu_pallas))
    c8, c4, c2 = jax.block_until_ready(fwd(x, params))

    # sanity check against XLA conv with identical bf16 operands / f32 accumulation
    ref_fwd = jax.jit(functools.partial(
        downsample_module_forward, cfgs=cfgs,
        conv_layer=vanilla_conv_sn_lrelu_ref))
    r8, r4, r2 = jax.block_until_ready(ref_fwd(x, params))

    assert c8.shape == (B, 4 * NF, L, H // 4, W // 4)
    assert c4.shape == (B, 4 * NF, L, H // 4, W // 4)
    assert c2.shape == (B, 2 * NF, L, H // 2, W // 2)

    for got, want, name in ((c8, r8, "c8"), (c4, r4, "c4"), (c2, r2, "c2")):
        assert got.shape == want.shape, (name, got.shape, want.shape)
        err = float(jnp.max(jnp.abs(got - want)))
        scale = float(jnp.max(jnp.abs(want))) + 1e-6
        assert err / scale < 1e-2, f"{name}: relative error {err / scale:.3e}"

    print("KERNEL_OK")
</pallas_src>

<mosaic_0001>
module attributes {stable_mosaic.version = 11 : i64} {
  func.func @_gemm_bias_lrelu_kernel(%arg0: i32, %arg1: i32, %arg2: memref<8x300xbf16, #tpu.memory_space<vmem>>, %arg3: memref<8x1xf32, #tpu.memory_space<vmem>>, %arg4: memref<1x300x512xbf16, #tpu.memory_space<vmem>>, %arg5: memref<1x8x512xf32, #tpu.memory_space<vmem>>) attributes {dimension_semantics = [#tpu.dimension_semantics<parallel>, #tpu.dimension_semantics<parallel>], iteration_bounds = array<i64: 2, 8>, scalar_prefetch = 0 : i64, scratch_operands = 0 : i64, tpu.core_type = #tpu.core_type<tc>, window_params = [{pipeline_mode = #tpu.pipeline_mode<synchronous>, transform_indices = @transform_0, window_bounds = array<i64: 8, 300>}, {pipeline_mode = #tpu.pipeline_mode<synchronous>, transform_indices = @transform_1, window_bounds = array<i64: 8, 1>}, {transform_indices = @transform_2, window_bounds = array<i64: 1, 300, 512>}, {transform_indices = @transform_3, window_bounds = array<i64: 1, 8, 512>}]} {
    %c0 = arith.constant 0 : index
    %c0_0 = arith.constant 0 : index
    %0 = vector.load %arg2[%c0, %c0_0] : memref<8x300xbf16, #tpu.memory_space<vmem>>, vector<8x300xbf16>
    %c0_1 = arith.constant 0 : index
    %c0_2 = arith.constant 0 : index
    %c0_3 = arith.constant 0 : index
    %1 = vector.load %arg4[%c0_1, %c0_2, %c0_3] : memref<1x300x512xbf16, #tpu.memory_space<vmem>>, vector<1x300x512xbf16>
    %2 = vector.shape_cast %1 : vector<1x300x512xbf16> to vector<300x512xbf16>
    %cst = arith.constant dense<0.000000e+00> : vector<8x512xf32>
    %3 = tpu.matmul %0, %2, %cst {dimension_numbers = #tpu.dot_dimension_numbers<[1], [0], [0], [1], [0, 0, 1, 1], [], []>} : vector<8x300xbf16>, vector<300x512xbf16>, vector<8x512xf32> -> vector<8x512xf32>
    %c0_4 = arith.constant 0 : index
    %c0_5 = arith.constant 0 : index
    %4 = vector.load %arg3[%c0_4, %c0_5] : memref<8x1xf32, #tpu.memory_space<vmem>>, vector<8x1xf32>
    %5 = vector.broadcast %4 : vector<8x1xf32> to vector<8x512xf32>
    %6 = arith.addf %3, %5 : vector<8x512xf32>
    %cst_6 = arith.constant 0.000000e+00 : f32
    %7 = vector.broadcast %cst_6 : f32 to vector<8x512xf32>
    %8 = arith.cmpf ogt, %6, %7 : vector<8x512xf32>
    %cst_7 = arith.constant 2.000000e-01 : f32
    %9 = vector.broadcast %cst_7 : f32 to vector<8x512xf32>
    %10 = arith.mulf %9, %6 : vector<8x512xf32>
    %11 = arith.select %8, %6, %10 : vector<8x512xi1>, vector<8x512xf32>
    %c0_8 = arith.constant 0 : index
    %c0_9 = arith.constant 0 : index
    %c0_10 = arith.constant 0 : index
    %12 = vector.load %arg5[%c0_8, %c0_9, %c0_10] : memref<1x8x512xf32, #tpu.memory_space<vmem>>, vector<1x8x512xf32>
    %13 = vector.shape_cast %12 : vector<1x8x512xf32> to vector<8x512xf32>
    %14 = vector.shape_cast %11 : vector<8x512xf32> to vector<1x8x512xf32>
    tpu.vector_store %arg5[%c0_8, %c0_9, %c0_10], %14 {strides = array<i32>} : memref<1x8x512xf32, #tpu.memory_space<vmem>>, vector<1x8x512xf32>,
    return
  }
  func.func @transform_0(%arg0: i32, %arg1: i32) -> (i32, i32) {
    %c0_i32 = arith.constant 0 : i32
    %c0_i32_0 = arith.constant 0 : i32
    %c0_i32_1 = arith.constant 0 : i32
    return %c0_i32, %c0_i32_0 : i32, i32
  }
  func.func @transform_1(%arg0: i32, %arg1: i32) -> (i32, i32) {
    %c0_i32 = arith.constant 0 : i32
    %c0_i32_0 = arith.constant 0 : i32
    %c0_i32_1 = arith.constant 0 : i32
    return %c0_i32, %c0_i32_0 : i32, i32
  }
  func.func @transform_2(%arg0: i32, %arg1: i32) -> (i32, i32, i32) {
    %c0_i32 = arith.constant 0 : i32
    %c0_i32_0 = arith.constant 0 : i32
    return %arg0, %c0_i32, %arg1 : i32, i32, i32
  }
  func.func @transform_3(%arg0: i32, %arg1: i32) -> (i32, i32, i32) {
    %c0_i32 = arith.constant 0 : i32
    %c0_i32_0 = arith.constant 0 : i32
    return %arg0, %c0_i32, %arg1 : i32, i32, i32
  }
}

module attributes {stable_mosaic.version = 11 : i64} {
  func.func @_gemm_bias_lrelu_kernel(%arg0: i32, %arg1: i32, %arg2: memref<16x384xbf16, #tpu.memory_space<vmem>>, %arg3: memref<16x1xf32, #tpu.memory_space<vmem>>, %arg4: memref<1x384x512xbf16, #tpu.memory_space<vmem>>, %arg5: memref<1x16x512xf32, #tpu.memory_space<vmem>>) attributes {dimension_semantics = [#tpu.dimension_semantics<parallel>, #tpu.dimension_semantics<parallel>], iteration_bounds = array<i64: 2, 2>, scalar_prefetch = 0 : i64, scratch_operands = 0 : i64, tpu.core_type = #tpu.core_type<tc>, window_params = [{pipeline_mode = #tpu.pipeline_mode<synchronous>, transform_indices = @transform_0, window_bounds = array<i64: 16, 384>}, {pipeline_mode = #tpu.pipeline_mode<synchronous>, transform_indices = @transform_1, window_bounds = array<i64: 16, 1>}, {transform_indices = @transform_2, window_bounds = array<i64: 1, 384, 512>}, {transform_indices = @transform_3, window_bounds = array<i64: 1, 16, 512>}]} {
    %c0 = arith.constant 0 : index
    %c0_0 = arith.constant 0 : index
    %0 = vector.load %arg2[%c0, %c0_0] : memref<16x384xbf16, #tpu.memory_space<vmem>>, vector<16x384xbf16>
    %c0_1 = arith.constant 0 : index
    %c0_2 = arith.constant 0 : index
    %c0_3 = arith.constant 0 : index
    %1 = vector.load %arg4[%c0_1, %c0_2, %c0_3] : memref<1x384x512xbf16, #tpu.memory_space<vmem>>, vector<1x384x512xbf16>
    %2 = vector.shape_cast %1 : vector<1x384x512xbf16> to vector<384x512xbf16>
    %cst = arith.constant dense<0.000000e+00> : vector<16x512xf32>
    %3 = tpu.matmul %0, %2, %cst {dimension_numbers = #tpu.dot_dimension_numbers<[1], [0], [0], [1], [0, 0, 1, 1], [], []>} : vector<16x384xbf16>, vector<384x512xbf16>, vector<16x512xf32> -> vector<16x512xf32>
    %c0_4 = arith.constant 0 : index
    %c0_5 = arith.constant 0 : index
    %4 = vector.load %arg3[%c0_4, %c0_5] : memref<16x1xf32, #tpu.memory_space<vmem>>, vector<16x1xf32>
    %5 = vector.broadcast %4 : vector<16x1xf32> to vector<16x512xf32>
    %6 = arith.addf %3, %5 : vector<16x512xf32>
    %cst_6 = arith.constant 0.000000e+00 : f32
    %7 = vector.broadcast %cst_6 : f32 to vector<16x512xf32>
    %8 = arith.cmpf ogt, %6, %7 : vector<16x512xf32>
    %cst_7 = arith.constant 2.000000e-01 : f32
    %9 = vector.broadcast %cst_7 : f32 to vector<16x512xf32>
    %10 = arith.mulf %9, %6 : vector<16x512xf32>
    %11 = arith.select %8, %6, %10 : vector<16x512xi1>, vector<16x512xf32>
    %c0_8 = arith.constant 0 : index
    %c0_9 = arith.constant 0 : index
    %c0_10 = arith.constant 0 : index
    %12 = vector.load %arg5[%c0_8, %c0_9, %c0_10] : memref<1x16x512xf32, #tpu.memory_space<vmem>>, vector<1x16x512xf32>
    %13 = vector.shape_cast %12 : vector<1x16x512xf32> to vector<16x512xf32>
    %14 = vector.shape_cast %11 : vector<16x512xf32> to vector<1x16x512xf32>
    tpu.vector_store %arg5[%c0_8, %c0_9, %c0_10], %14 {strides = array<i32>} : memref<1x16x512xf32, #tpu.memory_space<vmem>>, vector<1x16x512xf32>,
    return
  }
  func.func @transform_0(%arg0: i32, %arg1: i32) -> (i32, i32) {
    %c0_i32 = arith.constant 0 : i32
    %c0_i32_0 = arith.constant 0 : i32
    %c0_i32_1 = arith.constant 0 : i32
    return %c0_i32, %c0_i32_0 : i32, i32
  }
  func.func @transform_1(%arg0: i32, %arg1: i32) -> (i32, i32) {
    %c0_i32 = arith.constant 0 : i32
    %c0_i32_0 = arith.constant 0 : i32
    %c0_i32_1 = arith.constant 0 : i32
    return %c0_i32, %c0_i32_0 : i32, i32
  }
  func.func @transform_2(%arg0: i32, %arg1: i32) -> (i32, i32, i32) {
    %c0_i32 = arith.constant 0 : i32
    %c0_i32_0 = arith.constant 0 : i32
    return %arg0, %c0_i32, %arg1 : i32, i32, i32
  }
  func.func @transform_3(%arg0: i32, %arg1: i32) -> (i32, i32, i32) {
    %c0_i32 = arith.constant 0 : i32
    %c0_i32_0 = arith.constant 0 : i32
    return %arg0, %c0_i32, %arg1 : i32, i32, i32
  }
}

module attributes {stable_mosaic.version = 11 : i64} {
  func.func @_gemm_bias_lrelu_kernel(%arg0: i32, %arg1: i32, %arg2: memref<16x432xbf16, #tpu.memory_space<vmem>>, %arg3: memref<16x1xf32, #tpu.memory_space<vmem>>, %arg4: memref<1x432x512xbf16, #tpu.memory_space<vmem>>, %arg5: memref<1x16x512xf32, #tpu.memory_space<vmem>>) attributes {dimension_semantics = [#tpu.dimension_semantics<parallel>, #tpu.dimension_semantics<parallel>], iteration_bounds = array<i64: 2, 2>, scalar_prefetch = 0 : i64, scratch_operands = 0 : i64, tpu.core_type = #tpu.core_type<tc>, window_params = [{pipeline_mode = #tpu.pipeline_mode<synchronous>, transform_indices = @transform_0, window_bounds = array<i64: 16, 432>}, {pipeline_mode = #tpu.pipeline_mode<synchronous>, transform_indices = @transform_1, window_bounds = array<i64: 16, 1>}, {transform_indices = @transform_2, window_bounds = array<i64: 1, 432, 512>}, {transform_indices = @transform_3, window_bounds = array<i64: 1, 16, 512>}]} {
    %c0 = arith.constant 0 : index
    %c0_0 = arith.constant 0 : index
    %0 = vector.load %arg2[%c0, %c0_0] : memref<16x432xbf16, #tpu.memory_space<vmem>>, vector<16x432xbf16>
    %c0_1 = arith.constant 0 : index
    %c0_2 = arith.constant 0 : index
    %c0_3 = arith.constant 0 : index
    %1 = vector.load %arg4[%c0_1, %c0_2, %c0_3] : memref<1x432x512xbf16, #tpu.memory_space<vmem>>, vector<1x432x512xbf16>
    %2 = vector.shape_cast %1 : vector<1x432x512xbf16> to vector<432x512xbf16>
    %cst = arith.constant dense<0.000000e+00> : vector<16x512xf32>
    %3 = tpu.matmul %0, %2, %cst {dimension_numbers = #tpu.dot_dimension_numbers<[1], [0], [0], [1], [0, 0, 1, 1], [], []>} : vector<16x432xbf16>, vector<432x512xbf16>, vector<16x512xf32> -> vector<16x512xf32>
    %c0_4 = arith.constant 0 : index
    %c0_5 = arith.constant 0 : index
    %4 = vector.load %arg3[%c0_4, %c0_5] : memref<16x1xf32, #tpu.memory_space<vmem>>, vector<16x1xf32>
    %5 = vector.broadcast %4 : vector<16x1xf32> to vector<16x512xf32>
    %6 = arith.addf %3, %5 : vector<16x512xf32>
    %cst_6 = arith.constant 0.000000e+00 : f32
    %7 = vector.broadcast %cst_6 : f32 to vector<16x512xf32>
    %8 = arith.cmpf ogt, %6, %7 : vector<16x512xf32>
    %cst_7 = arith.constant 2.000000e-01 : f32
    %9 = vector.broadcast %cst_7 : f32 to vector<16x512xf32>
    %10 = arith.mulf %9, %6 : vector<16x512xf32>
    %11 = arith.select %8, %6, %10 : vector<16x512xi1>, vector<16x512xf32>
    %c0_8 = arith.constant 0 : index
    %c0_9 = arith.constant 0 : index
    %c0_10 = arith.constant 0 : index
    %12 = vector.load %arg5[%c0_8, %c0_9, %c0_10] : memref<1x16x512xf32, #tpu.memory_space<vmem>>, vector<1x16x512xf32>
    %13 = vector.shape_cast %12 : vector<1x16x512xf32> to vector<16x512xf32>
    %14 = vector.shape_cast %11 : vector<16x512xf32> to vector<1x16x512xf32>
    tpu.vector_store %arg5[%c0_8, %c0_9, %c0_10], %14 {strides = array<i32>} : memref<1x16x512xf32, #tpu.memory_space<vmem>>, vector<1x16x512xf32>,
    return
  }
  func.func @transform_0(%arg0: i32, %arg1: i32) -> (i32, i32) {
    %c0_i32 = arith.constant 0 : i32
    %c0_i32_0 = arith.constant 0 : i32
    %c0_i32_1 = arith.constant 0 : i32
    return %c0_i32, %c0_i32_0 : i32, i32
  }
  func.func @transform_1(%arg0: i32, %arg1: i32) -> (i32, i32) {
    %c0_i32 = arith.constant 0 : i32
    %c0_i32_0 = arith.constant 0 : i32
    %c0_i32_1 = arith.constant 0 : i32
    return %c0_i32, %c0_i32_0 : i32, i32
  }
  func.func @transform_2(%arg0: i32, %arg1: i32) -> (i32, i32, i32) {
    %c0_i32 = arith.constant 0 : i32
    %c0_i32_0 = arith.constant 0 : i32
    return %arg0, %c0_i32, %arg1 : i32, i32, i32
  }
  func.func @transform_3(%arg0: i32, %arg1: i32) -> (i32, i32, i32) {
    %c0_i32 = arith.constant 0 : i32
    %c0_i32_0 = arith.constant 0 : i32
    return %arg0, %c0_i32, %arg1 : i32, i32, i32
  }
}

module attributes {stable_mosaic.version = 11 : i64} {
  func.func @_gemm_bias_lrelu_kernel(%arg0: i32, %arg1: i32, %arg2: memref<32x768xbf16, #tpu.memory_space<vmem>>, %arg3: memref<32x1xf32, #tpu.memory_space<vmem>>, %arg4: memref<1x768x256xbf16, #tpu.memory_space<vmem>>, %arg5: memref<1x32x256xf32, #tpu.memory_space<vmem>>) attributes {dimension_semantics = [#tpu.dimension_semantics<parallel>, #tpu.dimension_semantics<parallel>], iteration_bounds = array<i64: 2, 1>, scalar_prefetch = 0 : i64, scratch_operands = 0 : i64, tpu.core_type = #tpu.core_type<tc>, window_params = [{pipeline_mode = #tpu.pipeline_mode<synchronous>, transform_indices = @transform_0, window_bounds = array<i64: 32, 768>}, {pipeline_mode = #tpu.pipeline_mode<synchronous>, transform_indices = @transform_1, window_bounds = array<i64: 32, 1>}, {transform_indices = @transform_2, window_bounds = array<i64: 1, 768, 256>}, {transform_indices = @transform_3, window_bounds = array<i64: 1, 32, 256>}]} {
    %c0 = arith.constant 0 : index
    %c0_0 = arith.constant 0 : index
    %0 = vector.load %arg2[%c0, %c0_0] : memref<32x768xbf16, #tpu.memory_space<vmem>>, vector<32x768xbf16>
    %c0_1 = arith.constant 0 : index
    %c0_2 = arith.constant 0 : index
    %c0_3 = arith.constant 0 : index
    %1 = vector.load %arg4[%c0_1, %c0_2, %c0_3] : memref<1x768x256xbf16, #tpu.memory_space<vmem>>, vector<1x768x256xbf16>
    %2 = vector.shape_cast %1 : vector<1x768x256xbf16> to vector<768x256xbf16>
    %cst = arith.constant dense<0.000000e+00> : vector<32x256xf32>
    %3 = tpu.matmul %0, %2, %cst {dimension_numbers = #tpu.dot_dimension_numbers<[1], [0], [0], [1], [0, 0, 1, 1], [], []>} : vector<32x768xbf16>, vector<768x256xbf16>, vector<32x256xf32> -> vector<32x256xf32>
    %c0_4 = arith.constant 0 : index
    %c0_5 = arith.constant 0 : index
    %4 = vector.load %arg3[%c0_4, %c0_5] : memref<32x1xf32, #tpu.memory_space<vmem>>, vector<32x1xf32>
    %5 = vector.broadcast %4 : vector<32x1xf32> to vector<32x256xf32>
    %6 = arith.addf %3, %5 : vector<32x256xf32>
    %cst_6 = arith.constant 0.000000e+00 : f32
    %7 = vector.broadcast %cst_6 : f32 to vector<32x256xf32>
    %8 = arith.cmpf ogt, %6, %7 : vector<32x256xf32>
    %cst_7 = arith.constant 2.000000e-01 : f32
    %9 = vector.broadcast %cst_7 : f32 to vector<32x256xf32>
    %10 = arith.mulf %9, %6 : vector<32x256xf32>
    %11 = arith.select %8, %6, %10 : vector<32x256xi1>, vector<32x256xf32>
    %c0_8 = arith.constant 0 : index
    %c0_9 = arith.constant 0 : index
    %c0_10 = arith.constant 0 : index
    %12 = vector.load %arg5[%c0_8, %c0_9, %c0_10] : memref<1x32x256xf32, #tpu.memory_space<vmem>>, vector<1x32x256xf32>
    %13 = vector.shape_cast %12 : vector<1x32x256xf32> to vector<32x256xf32>
    %14 = vector.shape_cast %11 : vector<32x256xf32> to vector<1x32x256xf32>
    tpu.vector_store %arg5[%c0_8, %c0_9, %c0_10], %14 {strides = array<i32>} : memref<1x32x256xf32, #tpu.memory_space<vmem>>, vector<1x32x256xf32>,
    return
  }
  func.func @transform_0(%arg0: i32, %arg1: i32) -> (i32, i32) {
    %c0_i32 = arith.constant 0 : i32
    %c0_i32_0 = arith.constant 0 : i32
    %c0_i32_1 = arith.constant 0 : i32
    return %c0_i32, %c0_i32_0 : i32, i32
  }
  func.func @transform_1(%arg0: i32, %arg1: i32) -> (i32, i32) {
    %c0_i32 = arith.constant 0 : i32
    %c0_i32_0 = arith.constant 0 : i32
    %c0_i32_1 = arith.constant 0 : i32
    return %c0_i32, %c0_i32_0 : i32, i32
  }
  func.func @transform_2(%arg0: i32, %arg1: i32) -> (i32, i32, i32) {
    %c0_i32 = arith.constant 0 : i32
    %c0_i32_0 = arith.constant 0 : i32
    return %arg0, %c0_i32, %arg1 : i32, i32, i32
  }
  func.func @transform_3(%arg0: i32, %arg1: i32) -> (i32, i32, i32) {
    %c0_i32 = arith.constant 0 : i32
    %c0_i32_0 = arith.constant 0 : i32
    return %arg0, %c0_i32, %arg1 : i32, i32, i32
  }
}

module attributes {stable_mosaic.version = 11 : i64} {
  func.func @_gemm_bias_lrelu_kernel(%arg0: i32, %arg1: i32, %arg2: memref<32x864xbf16, #tpu.memory_space<vmem>>, %arg3: memref<32x1xf32, #tpu.memory_space<vmem>>, %arg4: memref<1x864x256xbf16, #tpu.memory_space<vmem>>, %arg5: memref<1x32x256xf32, #tpu.memory_space<vmem>>) attributes {dimension_semantics = [#tpu.dimension_semantics<parallel>, #tpu.dimension_semantics<parallel>], iteration_bounds = array<i64: 2, 1>, scalar_prefetch = 0 : i64, scratch_operands = 0 : i64, tpu.core_type = #tpu.core_type<tc>, window_params = [{pipeline_mode = #tpu.pipeline_mode<synchronous>, transform_indices = @transform_0, window_bounds = array<i64: 32, 864>}, {pipeline_mode = #tpu.pipeline_mode<synchronous>, transform_indices = @transform_1, window_bounds = array<i64: 32, 1>}, {transform_indices = @transform_2, window_bounds = array<i64: 1, 864, 256>}, {transform_indices = @transform_3, window_bounds = array<i64: 1, 32, 256>}]} {
    %c0 = arith.constant 0 : index
    %c0_0 = arith.constant 0 : index
    %0 = vector.load %arg2[%c0, %c0_0] : memref<32x864xbf16, #tpu.memory_space<vmem>>, vector<32x864xbf16>
    %c0_1 = arith.constant 0 : index
    %c0_2 = arith.constant 0 : index
    %c0_3 = arith.constant 0 : index
    %1 = vector.load %arg4[%c0_1, %c0_2, %c0_3] : memref<1x864x256xbf16, #tpu.memory_space<vmem>>, vector<1x864x256xbf16>
    %2 = vector.shape_cast %1 : vector<1x864x256xbf16> to vector<864x256xbf16>
    %cst = arith.constant dense<0.000000e+00> : vector<32x256xf32>
    %3 = tpu.matmul %0, %2, %cst {dimension_numbers = #tpu.dot_dimension_numbers<[1], [0], [0], [1], [0, 0, 1, 1], [], []>} : vector<32x864xbf16>, vector<864x256xbf16>, vector<32x256xf32> -> vector<32x256xf32>
    %c0_4 = arith.constant 0 : index
    %c0_5 = arith.constant 0 : index
    %4 = vector.load %arg3[%c0_4, %c0_5] : memref<32x1xf32, #tpu.memory_space<vmem>>, vector<32x1xf32>
    %5 = vector.broadcast %4 : vector<32x1xf32> to vector<32x256xf32>
    %6 = arith.addf %3, %5 : vector<32x256xf32>
    %cst_6 = arith.constant 0.000000e+00 : f32
    %7 = vector.broadcast %cst_6 : f32 to vector<32x256xf32>
    %8 = arith.cmpf ogt, %6, %7 : vector<32x256xf32>
    %cst_7 = arith.constant 2.000000e-01 : f32
    %9 = vector.broadcast %cst_7 : f32 to vector<32x256xf32>
    %10 = arith.mulf %9, %6 : vector<32x256xf32>
    %11 = arith.select %8, %6, %10 : vector<32x256xi1>, vector<32x256xf32>
    %c0_8 = arith.constant 0 : index
    %c0_9 = arith.constant 0 : index
    %c0_10 = arith.constant 0 : index
    %12 = vector.load %arg5[%c0_8, %c0_9, %c0_10] : memref<1x32x256xf32, #tpu.memory_space<vmem>>, vector<1x32x256xf32>
    %13 = vector.shape_cast %12 : vector<1x32x256xf32> to vector<32x256xf32>
    %14 = vector.shape_cast %11 : vector<32x256xf32> to vector<1x32x256xf32>
    tpu.vector_store %arg5[%c0_8, %c0_9, %c0_10], %14 {strides = array<i32>} : memref<1x32x256xf32, #tpu.memory_space<vmem>>, vector<1x32x256xf32>,
    return
  }
  func.func @transform_0(%arg0: i32, %arg1: i32) -> (i32, i32) {
    %c0_i32 = arith.constant 0 : i32
    %c0_i32_0 = arith.constant 0 : i32
    %c0_i32_1 = arith.constant 0 : i32
    return %c0_i32, %c0_i32_0 : i32, i32
  }
  func.func @transform_1(%arg0: i32, %arg1: i32) -> (i32, i32) {
    %c0_i32 = arith.constant 0 : i32
    %c0_i32_0 = arith.constant 0 : i32
    %c0_i32_1 = arith.constant 0 : i32
    return %c0_i32, %c0_i32_0 : i32, i32
  }
  func.func @transform_2(%arg0: i32, %arg1: i32) -> (i32, i32, i32) {
    %c0_i32 = arith.constant 0 : i32
    %c0_i32_0 = arith.constant 0 : i32
    return %arg0, %c0_i32, %arg1 : i32, i32, i32
  }
  func.func @transform_3(%arg0: i32, %arg1: i32) -> (i32, i32, i32) {
    %c0_i32 = arith.constant 0 : i32
    %c0_i32_0 = arith.constant 0 : i32
    return %arg0, %c0_i32, %arg1 : i32, i32, i32
  }
}

</mosaic_0001>

<bundles_post_ra>
// kernel: downsample_module_forward.12
= control target key start
LH: loop header
LB: loop body
LE: loop exit
PB: predicated region body
PF: predicated region fallthrough
CT: control target
= control target key end

     0   :  { %s1492_s12 = smov 0   ;;  %s1494_s13 = smov 0   ;;  %s1834_s0 = inlined_call_operand.vmem [shape: bf16[8,300], index: 0, kind: input, shape index: {}]   ;;  %s1835_s1 = inlined_call_operand.vmem [shape: f32[8,1], index: 1, kind: input, shape index: {}]   ;;  %s1836_s2 = inlined_call_operand.vmem [shape: bf16[2,300,4096], index: 2, kind: input, shape index: {}]   ;;  %s1837_s3 = inlined_call_operand.vmem [shape: f32[2,8,4096], index: 3, kind: output, shape index: {}]  }
   0x1   :  { %s1496_s14 = smov 0   ;;  %s1498_s15 = smov 0  }
   0x2   :  { %s1500_s16 = smov 0   ;;  %s1502_s17 = smov 0  }
   0x3   :  { %s1504_s18 = smov 0  }
   0x4 LB: > { %s22_s19 = sadd.s32 1, %s1461_s16  ;;  %s25_s20 = sadd.s32 1, %s1465_s17  ;;  %s1469_s18 = sphi %s1504_s18, %s13_s18   ;;  %s1465_s17 = sphi %s1502_s17, %s1843_s17   ;;  %s1461_s16 = sphi %s1500_s16, %s1842_s16   ;;  %s1457_s15 = sphi %s1498_s15, %s1841_s15   ;;  %s1453_s14 = sphi %s1496_s14, %s1840_s14   ;;  %s1449_s13 = sphi %s1494_s13, %s1839_s13   ;;  %s1445_s12 = sphi %s1492_s12, %s1838_s12  }
   0x5   : > { %p23_p0 = scmp.ge.s32.totalorder %s22_s19, 8  ;;  %p83_p1 = scmp.ne.s32.totalorder %s1449_s13, %s1445_s12 }
   0x6   : > { %p84_p2 = scmp.eq.s32.totalorder %s1469_s18, 0  ;;  %s76_s24 = sadd.s32 1, %s1449_s13 }
   0x7   : > { %s1845_s19 = smov (%p23_p0, %s22_s19), 0  ;;  %s1847_s20 = smov (!%p23_p0, %s25_s20), %s1465_s17 }
   0x8   : > { %p85_p3 = por %p84_p2, %p83_p1  ;;  %p27_p4 = scmp.ge.s32.totalorder %s1847_s20, 2 }
   0x9   : > { %s72_s21 = ssub.s32 %s1461_s16, %s1845_s19  ;;  %p1133_p6 = scmp.ge.s32.totalorder %s1469_s18, 16 }
   0xa   : > { %s1849_s20 = smov (%p27_p4, %s1847_s20), 0 }
   0xb   : > { %s71_s22 = ssub.s32 %s1465_s17, %s1849_s20  ;;  %143 = sbr.rel (%p1133_p6) target bundleno = 64 (0x40), region = 24 }
   0xc   : > { %s73_s23 = sor.u32 %s72_s21, %s71_s22 }
   0xd   : > { %p74_p5 = scmp.eq.s32.totalorder %s73_s23, 0 }
   0xf   : > { %s1543_s25 = scalar_select %p74_p5, %s1449_s13, %s76_s24  }
  0x12   : > { %146 = sbr.rel (!%p85_p3) target bundleno = 64 (0x40), region = 28  ;;  %s148_s26 = sand.u32 (%p85_p3), 1, %s1449_s13  }
  0x13   : > { %s1237_s27 = smul.u32 (%p85_p3), 608, %s148_s26  ;;  %s1134_s28 = sshll.u32 (%p85_p3), %s1461_s16, 2 }
  0x14   : > { %s1238_s29 = smul.u32 (%p85_p3), 1216, %s1465_s17 }
  0x15   : > { %s1557_s8 = scalar_lea.vmem (%p85_p3), [#allocation2], %s1237_s27 }
  0x16   : > { %s153_s30 = sadd.s32 (%p85_p3), %s1238_s29, %s1134_s28 }
  0x17   : > { %s1135_s4 = sshll.u32 (%p85_p3), %s153_s30, 2 }
  0x18   : > { %s1552_s7 = scalar_lea.vmem (%p85_p3), %s1836_s2, %s1135_s4 }
  0x19   : > { %v168_v0 = vld [vmem:[%s1552_s7] sm:$0xff]  ;;  %v170_v1 = vld [vmem:[%s1552_s7 + $0x8] sm:$0xff] }
  0x1a   : > { %v172_v2 = vld [vmem:[%s1552_s7 + $0x80] sm:$0xff]  ;;  %169 = vst [vmem:[%s1557_s8] sm:$0xff] %v168_v0  ;;  %171 = vst [vmem:[%s1557_s8 + $0x8] sm:$0xff] %v170_v1  ;;  %v174_v3 = vld [vmem:[%s1552_s7 + $0x88] sm:$0xff] }
  0x1b   : > { %173 = vst [vmem:[%s1557_s8 + $0x10] sm:$0xff] %v172_v2  ;;  %v176_v4 = vld [vmem:[%s1552_s7 + $0x100] sm:$0xff]  ;;  %v178_v5 = vld [vmem:[%s1552_s7 + $0x108] sm:$0xff]  ;;  %175 = vst [vmem:[%s1557_s8 + $0x18] sm:$0xff] %v174_v3 }
  0x1c   : > { %177 = vst [vmem:[%s1557_s8 + $0x20] sm:$0xff] %v176_v4  ;;  %179 = vst [vmem:[%s1557_s8 + $0x28] sm:$0xff] %v178_v5  ;;  %v180_v6 = vld [vmem:[%s1552_s7 + $0x180] sm:$0xff]  ;;  %v182_v7 = vld [vmem:[%s1552_s7 + $0x188] sm:$0xff] }
  0x1d   : > { %v184_v8 = vld [vmem:[%s1552_s7 + $0x200] sm:$0xff]  ;;  %181 = vst [vmem:[%s1557_s8 + $0x30] sm:$0xff] %v180_v6  ;;  %183 = vst [vmem:[%s1557_s8 + $0x38] sm:$0xff] %v182_v7  ;;  %v186_v9 = vld [vmem:[%s1552_s7 + $0x208] sm:$0xff] }
  0x1e   : > { %185 = vst [vmem:[%s1557_s8 + $0x40] sm:$0xff] %v184_v8  ;;  %v188_v10 = vld [vmem:[%s1552_s7 + $0x280] sm:$0xff]  ;;  %v190_v11 = vld [vmem:[%s1552_s7 + $0x288] sm:$0xff]  ;;  %187 = vst [vmem:[%s1557_s8 + $0x48] sm:$0xff] %v186_v9 }
  0x1f   : > { %189 = vst [vmem:[%s1557_s8 + $0x50] sm:$0xff] %v188_v10  ;;  %191 = vst [vmem:[%s1557_s8 + $0x58] sm:$0xff] %v190_v11  ;;  %v192_v12 = vld [vmem:[%s1552_s7 + $0x300] sm:$0xff]  ;;  %v194_v13 = vld [vmem:[%s1552_s7 + $0x308] sm:$0xff] }
  0x20   : > { %v196_v14 = vld [vmem:[%s1552_s7 + $0x380] sm:$0xff]  ;;  %193 = vst [vmem:[%s1557_s8 + $0x60] sm:$0xff] %v192_v12  ;;  %195 = vst [vmem:[%s1557_s8 + $0x68] sm:$0xff] %v194_v13  ;;  %v198_v15 = vld [vmem:[%s1552_s7 + $0x388] sm:$0xff] }
  0x21   : > { %197 = vst [vmem:[%s1557_s8 + $0x70] sm:$0xff] %v196_v14  ;;  %v200_v16 = vld [vmem:[%s1552_s7 + $0x400] sm:$0xff]  ;;  %v202_v17 = vld [vmem:[%s1552_s7 + $0x408] sm:$0xff]  ;;  %199 = vst [vmem:[%s1557_s8 + $0x78] sm:$0xff] %v198_v15 }
  0x22   : > { %201 = vst [vmem:[%s1557_s8 + $0x80] sm:$0xff] %v200_v16  ;;  %203 = vst [vmem:[%s1557_s8 + $0x88] sm:$0xff] %v202_v17  ;;  %v204_v18 = vld [vmem:[%s1552_s7 + $0x480] sm:$0xff]  ;;  %v206_v19 = vld [vmem:[%s1552_s7 + $0x488] sm:$0xff] }
  0x23   : > { %v208_v20 = vld [vmem:[%s1552_s7 + $0x500] sm:$0xff]  ;;  %205 = vst [vmem:[%s1557_s8 + $0x90] sm:$0xff] %v204_v18  ;;  %207 = vst [vmem:[%s1557_s8 + $0x98] sm:$0xff] %v206_v19  ;;  %v210_v21 = vld [vmem:[%s1552_s7 + $0x508] sm:$0xff] }
  0x24   : > { %209 = vst [vmem:[%s1557_s8 + $0xa0] sm:$0xff] %v208_v20  ;;  %v212_v22 = vld [vmem:[%s1552_s7 + $0x580] sm:$0xff]  ;;  %v214_v23 = vld [vmem:[%s1552_s7 + $0x588] sm:$0xff]  ;;  %211 = vst [vmem:[%s1557_s8 + $0xa8] sm:$0xff] %v210_v21 }
  0x25   : > { %213 = vst [vmem:[%s1557_s8 + $0xb0] sm:$0xff] %v212_v22  ;;  %215 = vst [vmem:[%s1557_s8 + $0xb8] sm:$0xff] %v214_v23  ;;  %v216_v24 = vld [vmem:[%s1552_s7 + $0x600] sm:$0xff]  ;;  %v218_v25 = vld [vmem:[%s1552_s7 + $0x608] sm:$0xff] }
  0x26   : > { %v220_v26 = vld [vmem:[%s1552_s7 + $0x680] sm:$0xff]  ;;  %217 = vst [vmem:[%s1557_s8 + $0xc0] sm:$0xff] %v216_v24  ;;  %219 = vst [vmem:[%s1557_s8 + $0xc8] sm:$0xff] %v218_v25  ;;  %v222_v27 = vld [vmem:[%s1552_s7 + $0x688] sm:$0xff] }
  0x27   : > { %221 = vst [vmem:[%s1557_s8 + $0xd0] sm:$0xff] %v220_v26  ;;  %v224_v28 = vld [vmem:[%s1552_s7 + $0x700] sm:$0xff]  ;;  %v226_v29 = vld [vmem:[%s1552_s7 + $0x708] sm:$0xff]  ;;  %223 = vst [vmem:[%s1557_s8 + $0xd8] sm:$0xff] %v222_v27 }
  0x28   : > { %225 = vst [vmem:[%s1557_s8 + $0xe0] sm:$0xff] %v224_v28  ;;  %227 = vst [vmem:[%s1557_s8 + $0xe8] sm:$0xff] %v226_v29  ;;  %v228_v30 = vld [vmem:[%s1552_s7 + $0x780] sm:$0xff]  ;;  %v230_v31 = vld [vmem:[%s1552_s7 + $0x788] sm:$0xff] }
  0x29   : > { %v232_v32 = vld [vmem:[%s1552_s7 + $0x800] sm:$0xff]  ;;  %229 = vst [vmem:[%s1557_s8 + $0xf0] sm:$0xff] %v228_v30  ;;  %231 = vst [vmem:[%s1557_s8 + $0xf8] sm:$0xff] %v230_v31  ;;  %v234_v33 = vld [vmem:[%s1552_s7 + $0x808] sm:$0xff] }
  0x2a   : > { %233 = vst [vmem:[%s1557_s8 + $0x100] sm:$0xff] %v232_v32  ;;  %v236_v34 = vld [vmem:[%s1552_s7 + $0x880] sm:$0xff]  ;;  %v238_v35 = vld [vmem:[%s1552_s7 + $0x888] sm:$0xff]  ;;  %235 = vst [vmem:[%s1557_s8 + $0x108] sm:$0xff] %v234_v33 }
  0x2b   : > { %237 = vst [vmem:[%s1557_s8 + $0x110] sm:$0xff] %v236_v34  ;;  %239 = vst [vmem:[%s1557_s8 + $0x118] sm:$0xff] %v238_v35  ;;  %v240_v36 = vld [vmem:[%s1552_s7 + $0x900] sm:$0xff]  ;;  %v242_v37 = vld [vmem:[%s1552_s7 + $0x908] sm:$0xff] }
  0x2c   : > { %v244_v38 = vld [vmem:[%s1552_s7 + $0x980] sm:$0xff]  ;;  %241 = vst [vmem:[%s1557_s8 + $0x120] sm:$0xff] %v240_v36  ;;  %243 = vst [vmem:[%s1557_s8 + $0x128] sm:$0xff] %v242_v37  ;;  %v246_v39 = vld [vmem:[%s1552_s7 + $0x988] sm:$0xff] }
  0x2d   : > { %245 = vst [vmem:[%s1557_s8 + $0x130] sm:$0xff] %v244_v38  ;;  %v248_v40 = vld [vmem:[%s1552_s7 + $0xa00] sm:$0xff]  ;;  %v250_v41 = vld [vmem:[%s1552_s7 + $0xa08] sm:$0xff]  ;;  %247 = vst [vmem:[%s1557_s8 + $0x138] sm:$0xff] %v246_v39 }
  0x2e   : > { %249 = vst [vmem:[%s1557_s8 + $0x140] sm:$0xff] %v248_v40  ;;  %251 = vst [vmem:[%s1557_s8 + $0x148] sm:$0xff] %v250_v41  ;;  %v252_v42 = vld [vmem:[%s1552_s7 + $0xa80] sm:$0xff]  ;;  %v254_v43 = vld [vmem:[%s1552_s7 + $0xa88] sm:$0xff] }
  0x2f   : > { %v256_v44 = vld [vmem:[%s1552_s7 + $0xb00] sm:$0xff]  ;;  %253 = vst [vmem:[%s1557_s8 + $0x150] sm:$0xff] %v252_v42  ;;  %255 = vst [vmem:[%s1557_s8 + $0x158] sm:$0xff] %v254_v43  ;;  %v258_v45 = vld [vmem:[%s1552_s7 + $0xb08] sm:$0xff] }
  0x30   : > { %257 = vst [vmem:[%s1557_s8 + $0x160] sm:$0xff] %v256_v44  ;;  %v260_v46 = vld [vmem:[%s1552_s7 + $0xb80] sm:$0xff]  ;;  %v262_v47 = vld [vmem:[%s1552_s7 + $0xb88] sm:$0xff]  ;;  %259 = vst [vmem:[%s1557_s8 + $0x168] sm:$0xff] %v258_v45 }
  0x31   : > { %261 = vst [vmem:[%s1557_s8 + $0x170] sm:$0xff] %v260_v46  ;;  %263 = vst [vmem:[%s1557_s8 + $0x178] sm:$0xff] %v262_v47  ;;  %v264_v48 = vld [vmem:[%s1552_s7 + $0xc00] sm:$0xff]  ;;  %v266_v49 = vld [vmem:[%s1552_s7 + $0xc08] sm:$0xff] }
  0x32   : > { %v268_v50 = vld [vmem:[%s1552_s7 + $0xc80] sm:$0xff]  ;;  %265 = vst [vmem:[%s1557_s8 + $0x180] sm:$0xff] %v264_v48  ;;  %267 = vst [vmem:[%s1557_s8 + $0x188] sm:$0xff] %v266_v49  ;;  %v270_v51 = vld [vmem:[%s1552_s7 + $0xc88] sm:$0xff] }
  0x33   : > { %269 = vst [vmem:[%s1557_s8 + $0x190] sm:$0xff] %v268_v50  ;;  %v272_v52 = vld [vmem:[%s1552_s7 + $0xd00] sm:$0xff]  ;;  %v274_v53 = vld [vmem:[%s1552_s7 + $0xd08] sm:$0xff]  ;;  %271 = vst [vmem:[%s1557_s8 + $0x198] sm:$0xff] %v270_v51 }
  0x34   : > { %273 = vst [vmem:[%s1557_s8 + $0x1a0] sm:$0xff] %v272_v52  ;;  %275 = vst [vmem:[%s1557_s8 + $0x1a8] sm:$0xff] %v274_v53  ;;  %v276_v54 = vld [vmem:[%s1552_s7 + $0xd80] sm:$0xff]  ;;  %v278_v55 = vld [vmem:[%s1552_s7 + $0xd88] sm:$0xff] }
  0x35   : > { %v280_v56 = vld [vmem:[%s1552_s7 + $0xe00] sm:$0xff]  ;;  %277 = vst [vmem:[%s1557_s8 + $0x1b0] sm:$0xff] %v276_v54  ;;  %279 = vst [vmem:[%s1557_s8 + $0x1b8] sm:$0xff] %v278_v55  ;;  %v282_v57 = vld [vmem:[%s1552_s7 + $0xe08] sm:$0xff] }
  0x36   : > { %281 = vst [vmem:[%s1557_s8 + $0x1c0] sm:$0xff] %v280_v56  ;;  %v284_v58 = vld [vmem:[%s1552_s7 + $0xe80] sm:$0xff]  ;;  %v286_v59 = vld [vmem:[%s1552_s7 + $0xe88] sm:$0xff]  ;;  %283 = vst [vmem:[%s1557_s8 + $0x1c8] sm:$0xff] %v282_v57 }
  0x37   : > { %285 = vst [vmem:[%s1557_s8 + $0x1d0] sm:$0xff] %v284_v58  ;;  %287 = vst [vmem:[%s1557_s8 + $0x1d8] sm:$0xff] %v286_v59  ;;  %v288_v60 = vld [vmem:[%s1552_s7 + $0xf00] sm:$0xff]  ;;  %v290_v61 = vld [vmem:[%s1552_s7 + $0xf08] sm:$0xff] }
  0x38   : > { %v292_v62 = vld [vmem:[%s1552_s7 + $0xf80] sm:$0xff]  ;;  %289 = vst [vmem:[%s1557_s8 + $0x1e0] sm:$0xff] %v288_v60  ;;  %291 = vst [vmem:[%s1557_s8 + $0x1e8] sm:$0xff] %v290_v61  ;;  %v294_v63 = vld [vmem:[%s1552_s7 + $0xf88] sm:$0xff] }
  0x39   : > { %293 = vst [vmem:[%s1557_s8 + $0x1f0] sm:$0xff] %v292_v62  ;;  %v296_v0 = vld [vmem:[%s1552_s7 + $0x1000] sm:$0xff]  ;;  %v298_v1 = vld [vmem:[%s1552_s7 + $0x1008] sm:$0xff]  ;;  %295 = vst [vmem:[%s1557_s8 + $0x1f8] sm:$0xff] %v294_v63 }
  0x3a   : > { %297 = vst [vmem:[%s1557_s8 + $0x200] sm:$0xff] %v296_v0  ;;  %299 = vst [vmem:[%s1557_s8 + $0x208] sm:$0xff] %v298_v1  ;;  %v300_v2 = vld [vmem:[%s1552_s7 + $0x1080] sm:$0xff]  ;;  %v302_v3 = vld [vmem:[%s1552_s7 + $0x1088] sm:$0xff] }
  0x3b   : > { %v304_v4 = vld [vmem:[%s1552_s7 + $0x1100] sm:$0xff]  ;;  %301 = vst [vmem:[%s1557_s8 + $0x210] sm:$0xff] %v300_v2  ;;  %303 = vst [vmem:[%s1557_s8 + $0x218] sm:$0xff] %v302_v3  ;;  %v306_v5 = vld [vmem:[%s1552_s7 + $0x1108] sm:$0xff] }
  0x3c   : > { %305 = vst [vmem:[%s1557_s8 + $0x220] sm:$0xff] %v304_v4  ;;  %v308_v6 = vld [vmem:[%s1552_s7 + $0x1180] sm:$0xff]  ;;  %v310_v7 = vld [vmem:[%s1552_s7 + $0x1188] sm:$0xff]  ;;  %307 = vst [vmem:[%s1557_s8 + $0x228] sm:$0xff] %v306_v5 }
  0x3d   : > { %309 = vst [vmem:[%s1557_s8 + $0x230] sm:$0xff] %v308_v6  ;;  %311 = vst [vmem:[%s1557_s8 + $0x238] sm:$0xff] %v310_v7  ;;  %v312_v8 = vld [vmem:[%s1552_s7 + $0x1200] sm:$0xff]  ;;  %v314_v9 = vld [vmem:[%s1552_s7 + $0x1208] sm:$0xff] }
  0x3e   : > { %v316_v10 = vld [vmem:[%s1552_s7 + $0x1280] sm:$0xff]  ;;  %313 = vst [vmem:[%s1557_s8 + $0x240] sm:$0xff] %v312_v8  ;;  %315 = vst [vmem:[%s1557_s8 + $0x248] sm:$0xff] %v314_v9  ;;  %v318_v11 = vld [vmem:[%s1552_s7 + $0x1288] sm:$0xff] }
  0x3f   : > { %317 = vst [vmem:[%s1557_s8 + $0x250] sm:$0xff] %v316_v10  ;;  %319 = vst [vmem:[%s1557_s8 + $0x258] sm:$0xff] %v318_v11 }
  0x40 PF: > { %p1136_p7 = scmp.ge.s32.totalorder %s1469_s18, 1  ;;  %p324_p8 = scmp.lt.s32.totalorder %s1469_s18, 17 }
  0x42   : > { %p325_p9 = pnand %p1136_p7, %p324_p8 }
  0x43   : > { %s331_s9 = sand.u32 (!%p325_p9), 1, %s1445_s12   ;;  %v1714_v12 = vld [vmem:[%s1834_s0] sm:$0xff] (!%p325_p9)  ;;  %v1471_v14 = vmov (!%p325_p9), 0   ;;  %vm844_vm0 = vcmask (!%p325_p9), 1045504   ;;  %vm840_vm1 = vcmask (!%p325_p9), 359424   ;;  %s1137_s27 = sshll.u32 (!%p325_p9), %s1453_s14, 2 }
  0x44   : > { %328 = sbr.rel (%p325_p9) target bundleno = 368 (0x170), region = 51  ;;  %v1141_v13 = vcombine.high (!%p325_p9), %v1714_v12, %v1714_v12  ;;  %1297 = vset.pattern.permute.xlu0 (!%p325_p9), %v1471_v14  ;;  %v448_v15 = vld [vmem:[%s1835_s1] sm:$0xff] (!%p325_p9)  ;;  %p360_p10 = scmp.lt.s32.totalorder (!%p325_p9), %s1457_s15, 1 }
  0x45   : > { %s1239_s21 = smul.u32 (!%p325_p9), 608, %s331_s9  ;;  %451 = vperm.xlu0 (!%p325_p9), %1297, %v448_v15   ;;  %p362_p11 = scmp.lt.s32.totalorder (!%p325_p9), %s1137_s27, 31 }
  0x46   : > { %889 = vmatprep.mubr.bf16.mxu0 (!%p325_p9), %v1141_v13  ;;  %971 = vmatprep.mubr.bf16.mxu1 (!%p325_p9), %v1141_v13 }
  0x47   : > { %s1722_s12 = scalar_lea.vmem (!%p325_p9), [#allocation2], %s1239_s21 }
  0x48   : > { %v1298_v16 = vld [vmem:[%s1722_s12 + $0x4] ss:$16 sps:$4 sm:$0xff] (!%p325_p9)   ;;  %v1300_v17 = vld [vmem:[%s1722_s12 + $0xc] ss:$16 sps:$4 sm:$0xff] (!%p325_p9)   ;;  %v1302_v18 = vld [vmem:[%s1722_s12] ss:$16 sps:$4 sm:$0xff] (!%p325_p9)  }
  0x49   : > { %857 = vmatprep.subr.bf16.mxu0 (!%p325_p9), %v1298_v16  ;;  %v1303_v19 = vld [vmem:[%s1722_s12 + $0x8] ss:$16 sps:$4 sm:$0xff] (!%p325_p9)   ;;  %939 = vmatprep.subr.bf16.mxu1 (!%p325_p9), %v1300_v17  ;;  %v1304_v20 = vld [vmem:[%s1722_s12 + $0x24] ss:$16 sps:$4 sm:$0xff] (!%p325_p9)   ;;  %v1306_v21 = vld [vmem:[%s1722_s12 + $0x2c] ss:$16 sps:$4 sm:$0xff] (!%p325_p9)  }
  0x4a   : > { %858 = vmatpush1.bf16.msra.mxu0 (!%p325_p9), %v1302_v18  ;;  %940 = vmatpush1.bf16.msra.mxu1 (!%p325_p9), %v1303_v19  ;;  %v1308_v22 = vld [vmem:[%s1722_s12 + $0x20] ss:$16 sps:$4 sm:$0xff] (!%p325_p9)   ;;  %v1309_v23 = vld [vmem:[%s1722_s12 + $0x28] ss:$16 sps:$4 sm:$0xff] (!%p325_p9)   ;;  %v1310_v24 = vld [vmem:[%s1722_s12 + $0x44] ss:$16 sps:$4 sm:$0xff] (!%p325_p9)  }
  0x4b   : > { %859 = vmatprep.subr.bf16.mxu0 %v1304_v20  ;;  %941 = vmatprep.subr.bf16.mxu1 %v1306_v21  ;;  %v1312_v25 = vld [vmem:[%s1722_s12 + $0x4c] ss:$16 sps:$4 sm:$0xff]   ;;  %v1314_v26 = vld [vmem:[%s1722_s12 + $0x40] ss:$16 sps:$4 sm:$0xff]   ;;  %v1315_v27 = vld [vmem:[%s1722_s12 + $0x48] ss:$16 sps:$4 sm:$0xff]   ;;  %v1140_v20 = vcombine.low %v1714_v12, %v1714_v12 }
  0x4c   : > { %v1316_v28 = vld [vmem:[%s1722_s12 + $0x64] ss:$16 sps:$4 sm:$0xff]   ;;  %v1318_v29 = vld [vmem:[%s1722_s12 + $0x6c] ss:$16 sps:$4 sm:$0xff]   ;;  %v1320_v30 = vld [vmem:[%s1722_s12 + $0x60] ss:$16 sps:$4 sm:$0xff]  }
  0x4d   : > { %v1321_v31 = vld [vmem:[%s1722_s12 + $0x68] ss:$16 sps:$4 sm:$0xff]   ;;  %v1322_v32 = vld [vmem:[%s1722_s12 + $0x84] ss:$16 sps:$4 sm:$0xff]   ;;  %v1324_v33 = vld [vmem:[%s1722_s12 + $0x8c] ss:$16 sps:$4 sm:$0xff]  }
  0x4e   : > { %860 = vmatpush1.bf16.msra.mxu0 %v1308_v22  ;;  %942 = vmatpush1.bf16.msra.mxu1 %v1309_v23  ;;  %v1326_v34 = vld [vmem:[%s1722_s12 + $0x80] ss:$16 sps:$4 sm:$0xff]   ;;  %v1327_v35 = vld [vmem:[%s1722_s12 + $0x88] ss:$16 sps:$4 sm:$0xff]   ;;  %v1328_v36 = vld [vmem:[%s1722_s12 + $0xa4] ss:$16 sps:$4 sm:$0xff]  }
  0x4f   : > { %861 = vmatprep.subr.bf16.mxu0 %v1310_v24  ;;  %943 = vmatprep.subr.bf16.mxu1 %v1312_v25  ;;  %v1330_v37 = vld [vmem:[%s1722_s12 + $0xac] ss:$16 sps:$4 sm:$0xff]   ;;  %v1332_v38 = vld [vmem:[%s1722_s12 + $0xa0] ss:$16 sps:$4 sm:$0xff]   ;;  %v1333_v39 = vld [vmem:[%s1722_s12 + $0xa8] ss:$16 sps:$4 sm:$0xff]  }
  0x50   : > { %v1334_v40 = vld [vmem:[%s1722_s12 + $0xc4] ss:$16 sps:$4 sm:$0xff]   ;;  %v1336_v41 = vld [vmem:[%s1722_s12 + $0xcc] ss:$16 sps:$4 sm:$0xff]   ;;  %v1338_v42 = vld [vmem:[%s1722_s12 + $0xc0] ss:$16 sps:$4 sm:$0xff]  }
  0x51   : > { %v1339_v43 = vld [vmem:[%s1722_s12 + $0xc8] ss:$16 sps:$4 sm:$0xff]   ;;  %v1340_v44 = vld [vmem:[%s1722_s12 + $0xe4] ss:$16 sps:$4 sm:$0xff]   ;;  %v1342_v45 = vld [vmem:[%s1722_s12 + $0xec] ss:$16 sps:$4 sm:$0xff]  }
  0x52   : > { %862 = vmatpush1.bf16.msra.mxu0 %v1314_v26  ;;  %944 = vmatpush1.bf16.msra.mxu1 %v1315_v27  ;;  %v1344_v46 = vld [vmem:[%s1722_s12 + $0xe0] ss:$16 sps:$4 sm:$0xff]   ;;  %v1345_v47 = vld [vmem:[%s1722_s12 + $0xe8] ss:$16 sps:$4 sm:$0xff]   ;;  %v1346_v48 = vld [vmem:[%s1722_s12 + $0x104] ss:$16 sps:$4 sm:$0xff]  }
  0x53   : > { %863 = vmatprep.subr.bf16.mxu0 %v1316_v28  ;;  %945 = vmatprep.subr.bf16.mxu1 %v1318_v29  ;;  %v1348_v49 = vld [vmem:[%s1722_s12 + $0x10c] ss:$16 sps:$4 sm:$0xff]   ;;  %v1350_v50 = vld [vmem:[%s1722_s12 + $0x100] ss:$16 sps:$4 sm:$0xff]   ;;  %v1351_v51 = vld [vmem:[%s1722_s12 + $0x108] ss:$16 sps:$4 sm:$0xff]  }
  0x54   : > { %v1352_v52 = vld [vmem:[%s1722_s12 + $0x124] ss:$16 sps:$4 sm:$0xff]   ;;  %v1354_v53 = vld [vmem:[%s1722_s12 + $0x12c] ss:$16 sps:$4 sm:$0xff]   ;;  %v1356_v54 = vld [vmem:[%s1722_s12 + $0x120] ss:$16 sps:$4 sm:$0xff]  }
  0x55   : > { %v1357_v55 = vld [vmem:[%s1722_s12 + $0x128] ss:$16 sps:$4 sm:$0xff]   ;;  %v1358_v56 = vld [vmem:[%s1722_s12 + $0x144] ss:$16 sps:$4 sm:$0xff]   ;;  %v1360_v57 = vld [vmem:[%s1722_s12 + $0x14c] ss:$16 sps:$4 sm:$0xff]  }
  0x56   : > { %864 = vmatpush1.bf16.msra.mxu0 %v1320_v30  ;;  %946 = vmatpush1.bf16.msra.mxu1 %v1321_v31  ;;  %v1362_v58 = vld [vmem:[%s1722_s12 + $0x140] ss:$16 sps:$4 sm:$0xff]   ;;  %v1363_v59 = vld [vmem:[%s1722_s12 + $0x148] ss:$16 sps:$4 sm:$0xff]   ;;  %v1364_v60 = vld [vmem:[%s1722_s12 + $0x164] ss:$16 sps:$4 sm:$0xff]  }
  0x57   : > { %865 = vmatprep.subr.bf16.mxu0 %v1322_v32  ;;  %947 = vmatprep.subr.bf16.mxu1 %v1324_v33  ;;  %v1366_v61 = vld [vmem:[%s1722_s12 + $0x16c] ss:$16 sps:$4 sm:$0xff]   ;;  %v1368_v62 = vld [vmem:[%s1722_s12 + $0x160] ss:$16 sps:$4 sm:$0xff]   ;;  %v1369_v63 = vld [vmem:[%s1722_s12 + $0x168] ss:$16 sps:$4 sm:$0xff]  }
  0x58   : > { %v1370_v0 = vld [vmem:[%s1722_s12 + $0x184] ss:$16 sps:$4 sm:$0xff]   ;;  %v1372_v1 = vld [vmem:[%s1722_s12 + $0x18c] ss:$16 sps:$4 sm:$0xff]   ;;  %v1374_v2 = vld [vmem:[%s1722_s12 + $0x180] ss:$16 sps:$4 sm:$0xff]  }
  0x59   : > { %v1375_v3 = vld [vmem:[%s1722_s12 + $0x188] ss:$16 sps:$4 sm:$0xff]   ;;  %v1376_v4 = vld [vmem:[%s1722_s12 + $0x1a4] ss:$16 sps:$4 sm:$0xff]   ;;  %v1378_v5 = vld [vmem:[%s1722_s12 + $0x1ac] ss:$16 sps:$4 sm:$0xff]  }
  0x5a   : > { %866 = vmatpush1.bf16.msra.mxu0 %v1326_v34  ;;  %948 = vmatpush1.bf16.msra.mxu1 %v1327_v35  ;;  %v1380_v6 = vld [vmem:[%s1722_s12 + $0x1a0] ss:$16 sps:$4 sm:$0xff]   ;;  %v1381_v7 = vld [vmem:[%s1722_s12 + $0x1a8] ss:$16 sps:$4 sm:$0xff]   ;;  %v1382_v8 = vld [vmem:[%s1722_s12 + $0x1c4] ss:$16 sps:$4 sm:$0xff]  }
  0x5b   : > { %867 = vmatprep.subr.bf16.mxu0 %v1328_v36  ;;  %949 = vmatprep.subr.bf16.mxu1 %v1330_v37  ;;  %v1384_v9 = vld [vmem:[%s1722_s12 + $0x1cc] ss:$16 sps:$4 sm:$0xff]   ;;  %v1386_v10 = vld [vmem:[%s1722_s12 + $0x1c0] ss:$16 sps:$4 sm:$0xff]   ;;  %v1387_v11 = vld [vmem:[%s1722_s12 + $0x1c8] ss:$16 sps:$4 sm:$0xff]  }
  0x5c   : > { %v1388_v13 = vld [vmem:[%s1722_s12 + $0x1e4] ss:$16 sps:$4 sm:$0xff]   ;;  %v1390_v15 = vld [vmem:[%s1722_s12 + $0x1ec] ss:$16 sps:$4 sm:$0xff]   ;;  %v1392_v16 = vld [vmem:[%s1722_s12 + $0x1e0] ss:$16 sps:$4 sm:$0xff]  }
  0x5d   : > { %v1393_v17 = vld [vmem:[%s1722_s12 + $0x1e8] ss:$16 sps:$4 sm:$0xff]   ;;  %v1398_v18 = vld [vmem:[%s1722_s12 + $0x204] ss:$16 sps:$4 sm:$0xff]   ;;  %v1401_v19 = vld [vmem:[%s1722_s12 + $0x20c] ss:$16 sps:$4 sm:$0xff]  }
  0x5e   : > { %868 = vmatpush1.bf16.msra.mxu0 %v1332_v38  ;;  %950 = vmatpush1.bf16.msra.mxu1 %v1333_v39  ;;  %v1396_v21 = vld [vmem:[%s1722_s12 + $0x200] ss:$16 sps:$4 sm:$0xff]   ;;  %v1399_v22 = vld [vmem:[%s1722_s12 + $0x208] ss:$16 sps:$4 sm:$0xff]   ;;  %v1404_v23 = vld [vmem:[%s1722_s12 + $0x224] ss:$16 sps:$4 sm:$0xff]  }
  0x5f   : > { %869 = vmatprep.subr.bf16.mxu0 %v1334_v40  ;;  %951 = vmatprep.subr.bf16.mxu1 %v1336_v41  ;;  %v1407_v24 = vld [vmem:[%s1722_s12 + $0x22c] ss:$16 sps:$4 sm:$0xff]   ;;  %v1402_v25 = vld [vmem:[%s1722_s12 + $0x220] ss:$16 sps:$4 sm:$0xff]   ;;  %v1405_v26 = vld [vmem:[%s1722_s12 + $0x228] ss:$16 sps:$4 sm:$0xff]  }
  0x60   : > { %v1408_v27 = vld [vmem:[%s1722_s12 + $0x244] ss:$16 sps:$4 sm:$0x3f]   ;;  %v1410_v28 = vld [vmem:[%s1722_s12 + $0x24c] ss:$16 sps:$4 sm:$0x3f]  }
  0x61   : > { %v1412_v12 = vld [vmem:[%s1722_s12 + $0x240] ss:$16 sps:$4 sm:$0x3f]   ;;  %v1413_v29 = vld [vmem:[%s1722_s12 + $0x248] ss:$16 sps:$4 sm:$0x3f]  }
  0x62   : > { %870 = vmatpush1.bf16.msra.mxu0 %v1338_v42  ;;  %952 = vmatpush1.bf16.msra.mxu1 %v1339_v43  ;;  %v846_v30 = vsel %vm844_vm0, %v1412_v12, 0  ;;  %v852_v31 = vsel %vm844_vm0, %v1413_v29, 0  ;;  %v1414_v32 = vld [vmem:[%s1834_s0 + $0x8] ss:$0 sps:$4 sm:$0xff]   ;;  %s1851_s15 = smov (!%p360_p10, %s1457_s15), 1  ;;  %s1853_s27 = smov (!%p362_p11, %s1137_s27), 31 }
  0x63   : > { %871 = vmatprep.subr.bf16.mxu0 %v1340_v44  ;;  %953 = vmatprep.subr.bf16.mxu1 %v1342_v45  ;;  %s1138_s28 = sshll.u32 %s1851_s15, 5 }
  0x64   : > { %s365_s29 = sadd.s32 %s1138_s28, %s1853_s27 }
  0x65   : > { %s1139_s30 = sshll.u32 %s365_s29, 3 }
  0x66   : > { %872 = vmatpush1.bf16.msra.mxu0 %v1344_v46  ;;  %954 = vmatpush1.bf16.msra.mxu1 %v1345_v47  ;;  %s367_s5 = scalar_lea.vmem %s1837_s3, %s1139_s30 }
  0x67   : > { %873 = vmatprep.subr.bf16.mxu0 %v1346_v48  ;;  %955 = vmatprep.subr.bf16.mxu1 %v1348_v49 }
  0x6a   : > { %874 = vmatpush1.bf16.msra.mxu0 %v1350_v50  ;;  %956 = vmatpush1.bf16.msra.mxu1 %v1351_v51 }
  0x6b   : > { %875 = vmatprep.subr.bf16.mxu0 %v1352_v52  ;;  %957 = vmatprep.subr.bf16.mxu1 %v1354_v53 }
  0x6e   : > { %876 = vmatpush1.bf16.msra.mxu0 %v1356_v54  ;;  %958 = vmatpush1.bf16.msra.mxu1 %v1357_v55 }
  0x6f   : > { %877 = vmatprep.subr.bf16.mxu0 %v1358_v56  ;;  %959 = vmatprep.subr.bf16.mxu1 %v1360_v57 }
  0x72   : > { %878 = vmatpush1.bf16.msra.mxu0 %v1362_v58  ;;  %960 = vmatpush1.bf16.msra.mxu1 %v1363_v59 }
  0x73   : > { %879 = vmatprep.subr.bf16.mxu0 %v1364_v60  ;;  %961 = vmatprep.subr.bf16.mxu1 %v1366_v61 }
  0x76   : > { %880 = vmatpush1.bf16.msra.mxu0 %v1368_v62  ;;  %962 = vmatpush1.bf16.msra.mxu1 %v1369_v63 }
  0x77   : > { %881 = vmatprep.subr.bf16.mxu0 %v1370_v0  ;;  %963 = vmatprep.subr.bf16.mxu1 %v1372_v1 }
  0x7a   : > { %882 = vmatpush1.bf16.msra.mxu0 %v1374_v2  ;;  %964 = vmatpush1.bf16.msra.mxu1 %v1375_v3 }
  0x7b   : > { %883 = vmatprep.subr.bf16.mxu0 %v1376_v4  ;;  %965 = vmatprep.subr.bf16.mxu1 %v1378_v5 }
  0x7e   : > { %884 = vmatpush1.bf16.msra.mxu0 %v1380_v6  ;;  %966 = vmatpush1.bf16.msra.mxu1 %v1381_v7 }
  0x7f   : > { %885 = vmatprep.subr.bf16.mxu0 %v1382_v8  ;;  %967 = vmatprep.subr.bf16.mxu1 %v1384_v9 }
  0x82   : > { %886 = vmatpush1.bf16.msra.mxu0 %v1386_v10  ;;  %968 = vmatpush1.bf16.msra.mxu1 %v1387_v11 }
  0x83   : > { %887 = vmatprep.subr.bf16.mxu0 %v1388_v13  ;;  %969 = vmatprep.subr.bf16.mxu1 %v1390_v15 }
  0x86   : > { %888 = vmatpush1.bf16.msra.mxu0 %v1392_v16  ;;  %970 = vmatpush1.bf16.msra.mxu1 %v1393_v17 }
  0x87   : > { %898 = vmatprep.subr.bf16.mxu0 %v1398_v18  ;;  %980 = vmatprep.subr.bf16.mxu1 %v1401_v19 }
  0x89   : > { %890 = vmatmul.mubr.bf16.vlgmr.msra.gmra.mrb[0].mxu0 %v1140_v20  ;;  %972 = vmatmul.mubr.bf16.vlgmr.msra.gmra.mrb[0].mxu1 %v1140_v20 }
  0x8a   : > { %899 = vmatpush1.bf16.msra.mxu0 %v1396_v21  ;;  %981 = vmatpush1.bf16.msra.mxu1 %v1399_v22 }
  0x8b   : > { %900 = vmatprep.subr.bf16.mxu0 %v1404_v23  ;;  %982 = vmatprep.subr.bf16.mxu1 %v1407_v24 }
  0x8c   : > { %930 = vmatprep.mubr.bf16.mxu0 %v1471_v14  ;;  %1012 = vmatprep.mubr.bf16.mxu1 %v1471_v14 }
  0x8e   : > { %901 = vmatpush1.bf16.msra.mxu0 %v1402_v25  ;;  %983 = vmatpush1.bf16.msra.mxu1 %v1405_v26 }
  0x8f   : > { %1219 = vmatprep.subr.msk.bf16.mxu0 %vm844_vm0, %v1408_v27  ;;  %1221 = vmatprep.subr.msk.bf16.mxu1 %vm844_vm0, %v1410_v28 }
  0x92   : > { %903 = vmatpush1.bf16.msra.mxu0 %v846_v30  ;;  %985 = vmatpush1.bf16.msra.mxu1 %v852_v31 }
  0x95   : > { %1220 = vmatmul.mubr.msk.bf16.vlgmr.msra.gmra.mrb[0].mxu0 %vm840_vm1, %v1414_v32  ;;  %1222 = vmatmul.mubr.msk.bf16.vlgmr.msra.gmra.mrb[0].mxu1 %vm840_vm1, %v1414_v32 }
  0xc4   : > { %v452_v14 = vpop.permute.xlu0 %451 }
 0x168   : > { %v932_v33 = vpop.f32.mrb[0].mxu0  ;;  %v1014_v34 = vpop.f32.mrb[0].mxu1 }
 0x169   : > { %v1225_v35 = vadd.f32 %v932_v33, %v452_v14  ;;  %v1227_v36 = vadd.f32 %v1014_v34, %v452_v14  ;;  %v934_v37 = vpop.f32.mrb[1].mxu0  ;;  %v1016_v38 = vpop.f32.mrb[1].mxu1 }
 0x16a   : > { %v1226_v39 = vadd.f32 %v934_v37, %v452_v14  ;;  %v1228_v40 = vadd.f32 %v1016_v38, %v452_v14  ;;  %v936_v41 = vpop.f32.mrb[2].mxu0  ;;  %v1018_v42 = vpop.f32.mrb[2].mxu1 }
 0x16b   : > { %vm1021_vm2 = vcmp.gt.f32.partialorder %v1225_v35, 0.0  ;;  %v1025_v43 = vmul.f32 0.2, %v1225_v35  ;;  %vm1023_vm3 = vcmp.gt.f32.partialorder %v1227_v36, 0.0  ;;  %v1027_v44 = vmul.f32 0.2, %v1227_v36 }
 0x16c   : > { %vm1022_vm4 = vcmp.gt.f32.partialorder %v1226_v39, 0.0  ;;  %v1026_v45 = vmul.f32 0.2, %v1226_v39  ;;  %vm1024_vm5 = vcmp.gt.f32.partialorder %v1228_v40, 0.0  ;;  %v1028_v46 = vmul.f32 0.2, %v1228_v40 }
 0x16d   : > { %v1029_v47 = vsel %vm1021_vm2, %v1225_v35, %v1025_v43  ;;  %v1031_v48 = vsel %vm1023_vm3, %v1227_v36, %v1027_v44  ;;  %v937_v49 = vpop.f32.mrb[3].mxu0  ;;  %v1019_v50 = vpop.f32.mrb[3].mxu1 }
 0x16e   : > { %1033 = vst [vmem:[%s367_s5] sm:$0xff] %v1029_v47  ;;  %1035 = vst [vmem:[%s367_s5 + $0x10] sm:$0xff] %v1031_v48  ;;  %v1030_v51 = vsel %vm1022_vm4, %v1226_v39, %v1026_v45  ;;  %v1032_v52 = vsel %vm1024_vm5, %v1228_v40, %v1028_v46 }
 0x16f   : > { %1034 = vst [vmem:[%s367_s5 + $0x8] sm:$0xff] %v1030_v51  ;;  %1036 = vst [vmem:[%s367_s5 + $0x18] sm:$0xff] %v1032_v52 }
 0x170 PF: > { %s13_s18 = sadd.s32 1, %s1469_s18   ;;  %s1838_s12 = smov %s1449_s13 }
 0x171   : > { %p10_p12 = scmp.ge.s32.totalorder %s13_s18, 18   ;;  %s1839_s13 = smov %s1543_s25 }
 0x172   : > { %s1840_s14 = smov %s1461_s16  ;;  %s1841_s15 = smov %s1465_s17 }
 0x173   : > { %s1842_s16 = smov %s1845_s19  ;;  %s1843_s17 = smov %s1849_s20 }
 0x174   :  { %12 = sbr.rel (!%p10_p12) target bundleno = 4 (0x4), region = 90 }

// kernel: downsample_module_forward.13
= control target key start
LH: loop header
LB: loop body
LE: loop exit
PB: predicated region body
PF: predicated region fallthrough
CT: control target
= control target key end

     0   :  { %s1740_s12 = smov 0   ;;  %s1742_s13 = smov 0   ;;  %s2170_s0 = inlined_call_operand.vmem [shape: bf16[16,384], index: 0, kind: input, shape index: {}]   ;;  %s2171_s1 = inlined_call_operand.vmem [shape: f32[16,1], index: 1, kind: input, shape index: {}]   ;;  %s2172_s2 = inlined_call_operand.vmem [shape: bf16[2,384,1024], index: 2, kind: input, shape index: {}]   ;;  %s2173_s3 = inlined_call_operand.vmem [shape: f32[2,16,1024], index: 3, kind: output, shape index: {}]  }
   0x1   :  { %s1744_s14 = smov 0   ;;  %s1746_s15 = smov 0  }
   0x2   :  { %s1748_s16 = smov 0   ;;  %s1750_s17 = smov 0  }
   0x3   :  { %s1752_s18 = smov 0  }
   0x4 LB: > { %s22_s19 = sadd.s32 1, %s1709_s16  ;;  %s25_s20 = sadd.s32 1, %s1713_s17  ;;  %s1717_s18 = sphi %s1752_s18, %s13_s18   ;;  %s1713_s17 = sphi %s1750_s17, %s2180_s17   ;;  %s1709_s16 = sphi %s1748_s16, %s2179_s16   ;;  %s1705_s15 = sphi %s1746_s15, %s2178_s15   ;;  %s1701_s14 = sphi %s1744_s14, %s2177_s14   ;;  %s1697_s13 = sphi %s1742_s13, %s2176_s13   ;;  %s1693_s12 = sphi %s1740_s12, %s2175_s12  }
   0x5   : > { %p23_p0 = scmp.ge.s32.totalorder %s22_s19, 2  ;;  %s1325_s21 = sadd.s32 4294967295, %s1717_s18  }
   0x6   : > { %p83_p1 = scmp.ne.s32.totalorder %s1697_s13, %s1693_s12  ;;  %p84_p2 = scmp.eq.s32.totalorder %s1717_s18, 0 }
   0x7   : > { %s2182_s19 = smov (%p23_p0, %s22_s19), 0  ;;  %s2184_s20 = smov (!%p23_p0, %s25_s20), %s1713_s17 }
   0x8   : > { %p27_p3 = scmp.ge.s32.totalorder %s2184_s20, 2  ;;  %p115_p4 = scmp.eq.s32.totalorder %s1325_s21, 3 }
   0x9   : > { %s72_s22 = ssub.s32 %s1709_s16, %s2182_s19  ;;  %p85_p5 = por %p84_p2, %p83_p1 }
   0xa   : > { %s2186_s20 = smov (%p27_p3, %s2184_s20), 0  ;;  %p1788_p6 = por %p115_p4, %p83_p1 }
   0xb   : > { %s71_s24 = ssub.s32 %s1713_s17, %s2186_s20  ;;  %s76_s26 = sadd.s32 1, %s1697_s13 }
   0xc   : > { %s73_s25 = sor.u32 %s72_s22, %s71_s24  ;;  %p1328_p8 = scmp.ge.s32.totalorder %s1717_s18, 4 }
   0xd   : > { %p74_p7 = scmp.eq.s32.totalorder %s73_s25, 0 }
   0xe   : > { %143 = sbr.rel (%p1328_p8) target bundleno = 77 (0x4d), region = 24 }
   0xf   : > { %s1796_s27 = scalar_select %p74_p7, %s1697_s13, %s76_s26  }
  0x15   : > { %146 = sbr.rel (!%p85_p5) target bundleno = 77 (0x4d), region = 28  ;;  %s148_s28 = sand.u32 (%p85_p5), 1, %s1697_s13  }
  0x16   : > { %s1454_s29 = smul.u32 (%p85_p5), 768, %s148_s28  ;;  %s1329_s30 = sshll.u32 (%p85_p5), %s1709_s16, 2 }
  0x17   : > { %s1455_s4 = smul.u32 (%p85_p5), 384, %s1713_s17 }
  0x18   : > { %s1810_s10 = scalar_lea.vmem (%p85_p5), [#allocation2], %s1454_s29 }
  0x19   : > { %s153_s5 = sadd.s32 (%p85_p5), %s1455_s4, %s1329_s30 }
  0x1a   : > { %s1330_s6 = sshll.u32 (%p85_p5), %s153_s5, 2 }
  0x1b   : > { %s1805_s9 = scalar_lea.vmem (%p85_p5), %s2172_s2, %s1330_s6 }
  0x1c   : > { %v168_v0 = vld [vmem:[%s1805_s9] sm:$0xff]  ;;  %v170_v1 = vld [vmem:[%s1805_s9 + $0x8] sm:$0xff] }
  0x1d   : > { %v172_v2 = vld [vmem:[%s1805_s9 + $0x20] sm:$0xff]  ;;  %169 = vst [vmem:[%s1810_s10] sm:$0xff] %v168_v0  ;;  %171 = vst [vmem:[%s1810_s10 + $0x8] sm:$0xff] %v170_v1  ;;  %v174_v3 = vld [vmem:[%s1805_s9 + $0x28] sm:$0xff] }
  0x1e   : > { %173 = vst [vmem:[%s1810_s10 + $0x10] sm:$0xff] %v172_v2  ;;  %v176_v4 = vld [vmem:[%s1805_s9 + $0x40] sm:$0xff]  ;;  %v178_v5 = vld [vmem:[%s1805_s9 + $0x48] sm:$0xff]  ;;  %175 = vst [vmem:[%s1810_s10 + $0x18] sm:$0xff] %v174_v3 }
  0x1f   : > { %177 = vst [vmem:[%s1810_s10 + $0x20] sm:$0xff] %v176_v4  ;;  %179 = vst [vmem:[%s1810_s10 + $0x28] sm:$0xff] %v178_v5  ;;  %v180_v6 = vld [vmem:[%s1805_s9 + $0x60] sm:$0xff]  ;;  %v182_v7 = vld [vmem:[%s1805_s9 + $0x68] sm:$0xff] }
  0x20   : > { %v184_v8 = vld [vmem:[%s1805_s9 + $0x80] sm:$0xff]  ;;  %181 = vst [vmem:[%s1810_s10 + $0x30] sm:$0xff] %v180_v6  ;;  %183 = vst [vmem:[%s1810_s10 + $0x38] sm:$0xff] %v182_v7  ;;  %v186_v9 = vld [vmem:[%s1805_s9 + $0x88] sm:$0xff] }
  0x21   : > { %185 = vst [vmem:[%s1810_s10 + $0x40] sm:$0xff] %v184_v8  ;;  %v188_v10 = vld [vmem:[%s1805_s9 + $0xa0] sm:$0xff]  ;;  %v190_v11 = vld [vmem:[%s1805_s9 + $0xa8] sm:$0xff]  ;;  %187 = vst [vmem:[%s1810_s10 + $0x48] sm:$0xff] %v186_v9 }
  0x22   : > { %189 = vst [vmem:[%s1810_s10 + $0x50] sm:$0xff] %v188_v10  ;;  %191 = vst [vmem:[%s1810_s10 + $0x58] sm:$0xff] %v190_v11  ;;  %v192_v12 = vld [vmem:[%s1805_s9 + $0xc0] sm:$0xff]  ;;  %v194_v13 = vld [vmem:[%s1805_s9 + $0xc8] sm:$0xff] }
  0x23   : > { %v196_v14 = vld [vmem:[%s1805_s9 + $0xe0] sm:$0xff]  ;;  %193 = vst [vmem:[%s1810_s10 + $0x60] sm:$0xff] %v192_v12  ;;  %195 = vst [vmem:[%s1810_s10 + $0x68] sm:$0xff] %v194_v13  ;;  %v198_v15 = vld [vmem:[%s1805_s9 + $0xe8] sm:$0xff] }
  0x24   : > { %197 = vst [vmem:[%s1810_s10 + $0x70] sm:$0xff] %v196_v14  ;;  %v200_v16 = vld [vmem:[%s1805_s9 + $0x100] sm:$0xff]  ;;  %v202_v17 = vld [vmem:[%s1805_s9 + $0x108] sm:$0xff]  ;;  %199 = vst [vmem:[%s1810_s10 + $0x78] sm:$0xff] %v198_v15 }
  0x25   : > { %201 = vst [vmem:[%s1810_s10 + $0x80] sm:$0xff] %v200_v16  ;;  %203 = vst [vmem:[%s1810_s10 + $0x88] sm:$0xff] %v202_v17  ;;  %v204_v18 = vld [vmem:[%s1805_s9 + $0x120] sm:$0xff]  ;;  %v206_v19 = vld [vmem:[%s1805_s9 + $0x128] sm:$0xff] }
  0x26   : > { %v208_v20 = vld [vmem:[%s1805_s9 + $0x140] sm:$0xff]  ;;  %205 = vst [vmem:[%s1810_s10 + $0x90] sm:$0xff] %v204_v18  ;;  %207 = vst [vmem:[%s1810_s10 + $0x98] sm:$0xff] %v206_v19  ;;  %v210_v21 = vld [vmem:[%s1805_s9 + $0x148] sm:$0xff] }
  0x27   : > { %209 = vst [vmem:[%s1810_s10 + $0xa0] sm:$0xff] %v208_v20  ;;  %v212_v22 = vld [vmem:[%s1805_s9 + $0x160] sm:$0xff]  ;;  %v214_v23 = vld [vmem:[%s1805_s9 + $0x168] sm:$0xff]  ;;  %211 = vst [vmem:[%s1810_s10 + $0xa8] sm:$0xff] %v210_v21 }
  0x28   : > { %213 = vst [vmem:[%s1810_s10 + $0xb0] sm:$0xff] %v212_v22  ;;  %215 = vst [vmem:[%s1810_s10 + $0xb8] sm:$0xff] %v214_v23  ;;  %v216_v24 = vld [vmem:[%s1805_s9 + $0x180] sm:$0xff]  ;;  %v218_v25 = vld [vmem:[%s1805_s9 + $0x188] sm:$0xff] }
  0x29   : > { %v220_v26 = vld [vmem:[%s1805_s9 + $0x1a0] sm:$0xff]  ;;  %217 = vst [vmem:[%s1810_s10 + $0xc0] sm:$0xff] %v216_v24  ;;  %219 = vst [vmem:[%s1810_s10 + $0xc8] sm:$0xff] %v218_v25  ;;  %v222_v27 = vld [vmem:[%s1805_s9 + $0x1a8] sm:$0xff] }
  0x2a   : > { %221 = vst [vmem:[%s1810_s10 + $0xd0] sm:$0xff] %v220_v26  ;;  %v224_v28 = vld [vmem:[%s1805_s9 + $0x1c0] sm:$0xff]  ;;  %v226_v29 = vld [vmem:[%s1805_s9 + $0x1c8] sm:$0xff]  ;;  %223 = vst [vmem:[%s1810_s10 + $0xd8] sm:$0xff] %v222_v27 }
  0x2b   : > { %225 = vst [vmem:[%s1810_s10 + $0xe0] sm:$0xff] %v224_v28  ;;  %227 = vst [vmem:[%s1810_s10 + $0xe8] sm:$0xff] %v226_v29  ;;  %v228_v30 = vld [vmem:[%s1805_s9 + $0x1e0] sm:$0xff]  ;;  %v230_v31 = vld [vmem:[%s1805_s9 + $0x1e8] sm:$0xff] }
  0x2c   : > { %v232_v32 = vld [vmem:[%s1805_s9 + $0x200] sm:$0xff]  ;;  %229 = vst [vmem:[%s1810_s10 + $0xf0] sm:$0xff] %v228_v30  ;;  %231 = vst [vmem:[%s1810_s10 + $0xf8] sm:$0xff] %v230_v31  ;;  %v234_v33 = vld [vmem:[%s1805_s9 + $0x208] sm:$0xff] }
  0x2d   : > { %233 = vst [vmem:[%s1810_s10 + $0x100] sm:$0xff] %v232_v32  ;;  %v236_v34 = vld [vmem:[%s1805_s9 + $0x220] sm:$0xff]  ;;  %v238_v35 = vld [vmem:[%s1805_s9 + $0x228] sm:$0xff]  ;;  %235 = vst [vmem:[%s1810_s10 + $0x108] sm:$0xff] %v234_v33 }
  0x2e   : > { %237 = vst [vmem:[%s1810_s10 + $0x110] sm:$0xff] %v236_v34  ;;  %239 = vst [vmem:[%s1810_s10 + $0x118] sm:$0xff] %v238_v35  ;;  %v240_v36 = vld [vmem:[%s1805_s9 + $0x240] sm:$0xff]  ;;  %v242_v37 = vld [vmem:[%s1805_s9 + $0x248] sm:$0xff] }
  0x2f   : > { %v244_v38 = vld [vmem:[%s1805_s9 + $0x260] sm:$0xff]  ;;  %241 = vst [vmem:[%s1810_s10 + $0x120] sm:$0xff] %v240_v36  ;;  %243 = vst [vmem:[%s1810_s10 + $0x128] sm:$0xff] %v242_v37  ;;  %v246_v39 = vld [vmem:[%s1805_s9 + $0x268] sm:$0xff] }
  0x30   : > { %245 = vst [vmem:[%s1810_s10 + $0x130] sm:$0xff] %v244_v38  ;;  %v248_v40 = vld [vmem:[%s1805_s9 + $0x280] sm:$0xff]  ;;  %v250_v41 = vld [vmem:[%s1805_s9 + $0x288] sm:$0xff]  ;;  %247 = vst [vmem:[%s1810_s10 + $0x138] sm:$0xff] %v246_v39 }
  0x31   : > { %249 = vst [vmem:[%s1810_s10 + $0x140] sm:$0xff] %v248_v40  ;;  %251 = vst [vmem:[%s1810_s10 + $0x148] sm:$0xff] %v250_v41  ;;  %v252_v42 = vld [vmem:[%s1805_s9 + $0x2a0] sm:$0xff]  ;;  %v254_v43 = vld [vmem:[%s1805_s9 + $0x2a8] sm:$0xff] }
  0x32   : > { %v256_v44 = vld [vmem:[%s1805_s9 + $0x2c0] sm:$0xff]  ;;  %253 = vst [vmem:[%s1810_s10 + $0x150] sm:$0xff] %v252_v42  ;;  %255 = vst [vmem:[%s1810_s10 + $0x158] sm:$0xff] %v254_v43  ;;  %v258_v45 = vld [vmem:[%s1805_s9 + $0x2c8] sm:$0xff] }
  0x33   : > { %257 = vst [vmem:[%s1810_s10 + $0x160] sm:$0xff] %v256_v44  ;;  %v260_v46 = vld [vmem:[%s1805_s9 + $0x2e0] sm:$0xff]  ;;  %v262_v47 = vld [vmem:[%s1805_s9 + $0x2e8] sm:$0xff]  ;;  %259 = vst [vmem:[%s1810_s10 + $0x168] sm:$0xff] %v258_v45 }
  0x34   : > { %261 = vst [vmem:[%s1810_s10 + $0x170] sm:$0xff] %v260_v46  ;;  %263 = vst [vmem:[%s1810_s10 + $0x178] sm:$0xff] %v262_v47  ;;  %v264_v48 = vld [vmem:[%s1805_s9 + $0x300] sm:$0xff]  ;;  %v266_v49 = vld [vmem:[%s1805_s9 + $0x308] sm:$0xff] }
  0x35   : > { %v268_v50 = vld [vmem:[%s1805_s9 + $0x320] sm:$0xff]  ;;  %265 = vst [vmem:[%s1810_s10 + $0x180] sm:$0xff] %v264_v48  ;;  %267 = vst [vmem:[%s1810_s10 + $0x188] sm:$0xff] %v266_v49  ;;  %v270_v51 = vld [vmem:[%s1805_s9 + $0x328] sm:$0xff] }
  0x36   : > { %269 = vst [vmem:[%s1810_s10 + $0x190] sm:$0xff] %v268_v50  ;;  %v272_v52 = vld [vmem:[%s1805_s9 + $0x340] sm:$0xff]  ;;  %v274_v53 = vld [vmem:[%s1805_s9 + $0x348] sm:$0xff]  ;;  %271 = vst [vmem:[%s1810_s10 + $0x198] sm:$0xff] %v270_v51 }
  0x37   : > { %273 = vst [vmem:[%s1810_s10 + $0x1a0] sm:$0xff] %v272_v52  ;;  %275 = vst [vmem:[%s1810_s10 + $0x1a8] sm:$0xff] %v274_v53  ;;  %v276_v54 = vld [vmem:[%s1805_s9 + $0x360] sm:$0xff]  ;;  %v278_v55 = vld [vmem:[%s1805_s9 + $0x368] sm:$0xff] }
  0x38   : > { %v280_v56 = vld [vmem:[%s1805_s9 + $0x380] sm:$0xff]  ;;  %277 = vst [vmem:[%s1810_s10 + $0x1b0] sm:$0xff] %v276_v54  ;;  %279 = vst [vmem:[%s1810_s10 + $0x1b8] sm:$0xff] %v278_v55  ;;  %v282_v57 = vld [vmem:[%s1805_s9 + $0x388] sm:$0xff] }
  0x39   : > { %281 = vst [vmem:[%s1810_s10 + $0x1c0] sm:$0xff] %v280_v56  ;;  %v284_v58 = vld [vmem:[%s1805_s9 + $0x3a0] sm:$0xff]  ;;  %v286_v59 = vld [vmem:[%s1805_s9 + $0x3a8] sm:$0xff]  ;;  %283 = vst [vmem:[%s1810_s10 + $0x1c8] sm:$0xff] %v282_v57 }
  0x3a   : > { %285 = vst [vmem:[%s1810_s10 + $0x1d0] sm:$0xff] %v284_v58  ;;  %287 = vst [vmem:[%s1810_s10 + $0x1d8] sm:$0xff] %v286_v59  ;;  %v288_v60 = vld [vmem:[%s1805_s9 + $0x3c0] sm:$0xff]  ;;  %v290_v61 = vld [vmem:[%s1805_s9 + $0x3c8] sm:$0xff] }
  0x3b   : > { %v292_v62 = vld [vmem:[%s1805_s9 + $0x3e0] sm:$0xff]  ;;  %289 = vst [vmem:[%s1810_s10 + $0x1e0] sm:$0xff] %v288_v60  ;;  %291 = vst [vmem:[%s1810_s10 + $0x1e8] sm:$0xff] %v290_v61  ;;  %v294_v63 = vld [vmem:[%s1805_s9 + $0x3e8] sm:$0xff] }
  0x3c   : > { %293 = vst [vmem:[%s1810_s10 + $0x1f0] sm:$0xff] %v292_v62  ;;  %v296_v0 = vld [vmem:[%s1805_s9 + $0x400] sm:$0xff]  ;;  %v298_v1 = vld [vmem:[%s1805_s9 + $0x408] sm:$0xff]  ;;  %295 = vst [vmem:[%s1810_s10 + $0x1f8] sm:$0xff] %v294_v63 }
  0x3d   : > { %297 = vst [vmem:[%s1810_s10 + $0x200] sm:$0xff] %v296_v0  ;;  %299 = vst [vmem:[%s1810_s10 + $0x208] sm:$0xff] %v298_v1  ;;  %v300_v2 = vld [vmem:[%s1805_s9 + $0x420] sm:$0xff]  ;;  %v302_v3 = vld [vmem:[%s1805_s9 + $0x428] sm:$0xff] }
  0x3e   : > { %v304_v4 = vld [vmem:[%s1805_s9 + $0x440] sm:$0xff]  ;;  %301 = vst [vmem:[%s1810_s10 + $0x210] sm:$0xff] %v300_v2  ;;  %303 = vst [vmem:[%s1810_s10 + $0x218] sm:$0xff] %v302_v3  ;;  %v306_v5 = vld [vmem:[%s1805_s9 + $0x448] sm:$0xff] }
  0x3f   : > { %305 = vst [vmem:[%s1810_s10 + $0x220] sm:$0xff] %v304_v4  ;;  %v308_v6 = vld [vmem:[%s1805_s9 + $0x460] sm:$0xff]  ;;  %v310_v7 = vld [vmem:[%s1805_s9 + $0x468] sm:$0xff]  ;;  %307 = vst [vmem:[%s1810_s10 + $0x228] sm:$0xff] %v306_v5 }
  0x40   : > { %309 = vst [vmem:[%s1810_s10 + $0x230] sm:$0xff] %v308_v6  ;;  %311 = vst [vmem:[%s1810_s10 + $0x238] sm:$0xff] %v310_v7  ;;  %v312_v8 = vld [vmem:[%s1805_s9 + $0x480] sm:$0xff]  ;;  %v314_v9 = vld [vmem:[%s1805_s9 + $0x488] sm:$0xff] }
  0x41   : > { %v316_v10 = vld [vmem:[%s1805_s9 + $0x4a0] sm:$0xff]  ;;  %313 = vst [vmem:[%s1810_s10 + $0x240] sm:$0xff] %v312_v8  ;;  %315 = vst [vmem:[%s1810_s10 + $0x248] sm:$0xff] %v314_v9  ;;  %v318_v11 = vld [vmem:[%s1805_s9 + $0x4a8] sm:$0xff] }
  0x42   : > { %317 = vst [vmem:[%s1810_s10 + $0x250] sm:$0xff] %v316_v10  ;;  %v320_v12 = vld [vmem:[%s1805_s9 + $0x4c0] sm:$0xff]  ;;  %v322_v13 = vld [vmem:[%s1805_s9 + $0x4c8] sm:$0xff]  ;;  %319 = vst [vmem:[%s1810_s10 + $0x258] sm:$0xff] %v318_v11 }
  0x43   : > { %321 = vst [vmem:[%s1810_s10 + $0x260] sm:$0xff] %v320_v12  ;;  %323 = vst [vmem:[%s1810_s10 + $0x268] sm:$0xff] %v322_v13  ;;  %v324_v14 = vld [vmem:[%s1805_s9 + $0x4e0] sm:$0xff]  ;;  %v326_v15 = vld [vmem:[%s1805_s9 + $0x4e8] sm:$0xff] }
  0x44   : > { %v328_v16 = vld [vmem:[%s1805_s9 + $0x500] sm:$0xff]  ;;  %325 = vst [vmem:[%s1810_s10 + $0x270] sm:$0xff] %v324_v14  ;;  %327 = vst [vmem:[%s1810_s10 + $0x278] sm:$0xff] %v326_v15  ;;  %v330_v17 = vld [vmem:[%s1805_s9 + $0x508] sm:$0xff] }
  0x45   : > { %329 = vst [vmem:[%s1810_s10 + $0x280] sm:$0xff] %v328_v16  ;;  %v332_v18 = vld [vmem:[%s1805_s9 + $0x520] sm:$0xff]  ;;  %v334_v19 = vld [vmem:[%s1805_s9 + $0x528] sm:$0xff]  ;;  %331 = vst [vmem:[%s1810_s10 + $0x288] sm:$0xff] %v330_v17 }
  0x46   : > { %333 = vst [vmem:[%s1810_s10 + $0x290] sm:$0xff] %v332_v18  ;;  %335 = vst [vmem:[%s1810_s10 + $0x298] sm:$0xff] %v334_v19  ;;  %v336_v20 = vld [vmem:[%s1805_s9 + $0x540] sm:$0xff]  ;;  %v338_v21 = vld [vmem:[%s1805_s9 + $0x548] sm:$0xff] }
  0x47   : > { %v340_v22 = vld [vmem:[%s1805_s9 + $0x560] sm:$0xff]  ;;  %337 = vst [vmem:[%s1810_s10 + $0x2a0] sm:$0xff] %v336_v20  ;;  %339 = vst [vmem:[%s1810_s10 + $0x2a8] sm:$0xff] %v338_v21  ;;  %v342_v23 = vld [vmem:[%s1805_s9 + $0x568] sm:$0xff] }
  0x48   : > { %341 = vst [vmem:[%s1810_s10 + $0x2b0] sm:$0xff] %v340_v22  ;;  %v344_v24 = vld [vmem:[%s1805_s9 + $0x580] sm:$0xff]  ;;  %v346_v25 = vld [vmem:[%s1805_s9 + $0x588] sm:$0xff]  ;;  %343 = vst [vmem:[%s1810_s10 + $0x2b8] sm:$0xff] %v342_v23 }
  0x49   : > { %345 = vst [vmem:[%s1810_s10 + $0x2c0] sm:$0xff] %v344_v24  ;;  %347 = vst [vmem:[%s1810_s10 + $0x2c8] sm:$0xff] %v346_v25  ;;  %v348_v26 = vld [vmem:[%s1805_s9 + $0x5a0] sm:$0xff]  ;;  %v350_v27 = vld [vmem:[%s1805_s9 + $0x5a8] sm:$0xff] }
  0x4a   : > { %v352_v28 = vld [vmem:[%s1805_s9 + $0x5c0] sm:$0xff]  ;;  %349 = vst [vmem:[%s1810_s10 + $0x2d0] sm:$0xff] %v348_v26  ;;  %351 = vst [vmem:[%s1810_s10 + $0x2d8] sm:$0xff] %v350_v27  ;;  %v354_v29 = vld [vmem:[%s1805_s9 + $0x5c8] sm:$0xff] }
  0x4b   : > { %353 = vst [vmem:[%s1810_s10 + $0x2e0] sm:$0xff] %v352_v28  ;;  %v356_v30 = vld [vmem:[%s1805_s9 + $0x5e0] sm:$0xff]  ;;  %v358_v31 = vld [vmem:[%s1805_s9 + $0x5e8] sm:$0xff]  ;;  %355 = vst [vmem:[%s1810_s10 + $0x2e8] sm:$0xff] %v354_v29 }
  0x4c   : > { %357 = vst [vmem:[%s1810_s10 + $0x2f0] sm:$0xff] %v356_v30  ;;  %359 = vst [vmem:[%s1810_s10 + $0x2f8] sm:$0xff] %v358_v31 }
  0x4d PF: > { %p1331_p9 = scmp.ge.s32.totalorder %s1717_s18, 1  ;;  %p364_p10 = scmp.lt.s32.totalorder %s1717_s18, 5 }
  0x4f   : > { %p365_p11 = pnand %p1331_p9, %p364_p10 }
  0x50   : > { %s371_s11 = sand.u32 (!%p365_p11), 1, %s1693_s12   ;;  %v1613_v32 = vld [vmem:[%s2170_s0 + $0x4] ss:$12 sps:$4 sm:$0xff] (!%p365_p11)   ;;  %v1719_v33 = vmov (!%p365_p11), 0   ;;  %v497_v35 = vld [vmem:[%s2171_s1 + $0x8] sm:$0xff] (!%p365_p11) }
  0x51   : > { %368 = sbr.rel (%p365_p11) target bundleno = 414 (0x19e), region = 51  ;;  %1514 = vset.pattern.permute.xlu0 (!%p365_p11), %v1719_v33  ;;  %v496_v34 = vld [vmem:[%s2171_s1] sm:$0xff] (!%p365_p11)  ;;  %1036 = vmatprep.mubr.bf16.mxu0 (!%p365_p11), %v1613_v32  ;;  %s1332_s8 = sshll.u32 (!%p365_p11), %s371_s11, 6 }
  0x52   : > { %s1456_s21 = smul.u32 (!%p365_p11), 768, %s371_s11  ;;  %500 = vperm.xlu0 (!%p365_p11), %1514, %v496_v34   ;;  %1122 = vmatprep.mubr.bf16.mxu1 (!%p365_p11), %v1613_v32  ;;  %s2124_s12 = scalar_lea.vmem (!%p365_p11), [#allocation3], %s1332_s8 }
  0x54   : > { %s2016_s30 = scalar_lea.vmem (!%p365_p11), [#allocation2], %s1456_s21 }
  0x55   : > { %v1515_v36 = vld [vmem:[%s2016_s30 + $0x4] ss:$16 sps:$4 sm:$0xff] (!%p365_p11)   ;;  %v1517_v37 = vld [vmem:[%s2016_s30 + $0xc] ss:$16 sps:$4 sm:$0xff] (!%p365_p11)   ;;  %v1519_v38 = vld [vmem:[%s2016_s30] ss:$16 sps:$4 sm:$0xff] (!%p365_p11)  }
  0x56   : > { %1004 = vmatprep.subr.bf16.mxu0 (!%p365_p11), %v1515_v36  ;;  %v1520_v39 = vld [vmem:[%s2016_s30 + $0x8] ss:$16 sps:$4 sm:$0xff] (!%p365_p11)   ;;  %505 = vperm.xlu0 (!%p365_p11), %1514, %v497_v35   ;;  %v1521_v40 = vld [vmem:[%s2016_s30 + $0x24] ss:$16 sps:$4 sm:$0xff] (!%p365_p11)   ;;  %v1523_v41 = vld [vmem:[%s2016_s30 + $0x2c] ss:$16 sps:$4 sm:$0xff] (!%p365_p11)  }
  0x57   : > { %1090 = vmatprep.subr.bf16.mxu1 (!%p365_p11), %v1517_v37  ;;  %1005 = vmatpush1.bf16.msra.mxu0 (!%p365_p11), %v1519_v38  ;;  %v1525_v42 = vld [vmem:[%s2016_s30 + $0x20] ss:$16 sps:$4 sm:$0xff] (!%p365_p11)   ;;  %v1526_v43 = vld [vmem:[%s2016_s30 + $0x28] ss:$16 sps:$4 sm:$0xff] (!%p365_p11)   ;;  %v1527_v44 = vld [vmem:[%s2016_s30 + $0x44] ss:$16 sps:$4 sm:$0xff] (!%p365_p11)  }
  0x58   : > { %1091 = vmatpush1.bf16.msra.mxu1 %v1520_v39  ;;  %1006 = vmatprep.subr.bf16.mxu0 %v1521_v40  ;;  %v1529_v45 = vld [vmem:[%s2016_s30 + $0x4c] ss:$16 sps:$4 sm:$0xff]   ;;  %v1531_v46 = vld [vmem:[%s2016_s30 + $0x40] ss:$16 sps:$4 sm:$0xff]   ;;  %v1532_v47 = vld [vmem:[%s2016_s30 + $0x48] ss:$16 sps:$4 sm:$0xff]  }
  0x59   : > { %1092 = vmatprep.subr.bf16.mxu1 %v1523_v41  ;;  %v1533_v48 = vld [vmem:[%s2016_s30 + $0x64] ss:$16 sps:$4 sm:$0xff]   ;;  %v1535_v49 = vld [vmem:[%s2016_s30 + $0x6c] ss:$16 sps:$4 sm:$0xff]   ;;  %v1537_v50 = vld [vmem:[%s2016_s30 + $0x60] ss:$16 sps:$4 sm:$0xff]  }
  0x5a   : > { %v1538_v51 = vld [vmem:[%s2016_s30 + $0x68] ss:$16 sps:$4 sm:$0xff]   ;;  %v1539_v52 = vld [vmem:[%s2016_s30 + $0x84] ss:$16 sps:$4 sm:$0xff]   ;;  %v1541_v53 = vld [vmem:[%s2016_s30 + $0x8c] ss:$16 sps:$4 sm:$0xff]  }
  0x5b   : > { %1007 = vmatpush1.bf16.msra.mxu0 %v1525_v42  ;;  %v1543_v54 = vld [vmem:[%s2016_s30 + $0x80] ss:$16 sps:$4 sm:$0xff]   ;;  %v1544_v55 = vld [vmem:[%s2016_s30 + $0x88] ss:$16 sps:$4 sm:$0xff]   ;;  %v1545_v56 = vld [vmem:[%s2016_s30 + $0xa4] ss:$16 sps:$4 sm:$0xff]  }
  0x5c   : > { %1093 = vmatpush1.bf16.msra.mxu1 %v1526_v43  ;;  %1008 = vmatprep.subr.bf16.mxu0 %v1527_v44  ;;  %v1547_v57 = vld [vmem:[%s2016_s30 + $0xac] ss:$16 sps:$4 sm:$0xff]   ;;  %v1549_v58 = vld [vmem:[%s2016_s30 + $0xa0] ss:$16 sps:$4 sm:$0xff]   ;;  %v1550_v59 = vld [vmem:[%s2016_s30 + $0xa8] ss:$16 sps:$4 sm:$0xff]  }
  0x5d   : > { %1094 = vmatprep.subr.bf16.mxu1 %v1529_v45  ;;  %v1551_v60 = vld [vmem:[%s2016_s30 + $0xc4] ss:$16 sps:$4 sm:$0xff]   ;;  %v1553_v61 = vld [vmem:[%s2016_s30 + $0xcc] ss:$16 sps:$4 sm:$0xff]   ;;  %v1555_v62 = vld [vmem:[%s2016_s30 + $0xc0] ss:$16 sps:$4 sm:$0xff]  }
  0x5e   : > { %v1556_v63 = vld [vmem:[%s2016_s30 + $0xc8] ss:$16 sps:$4 sm:$0xff]   ;;  %v1557_v0 = vld [vmem:[%s2016_s30 + $0xe4] ss:$16 sps:$4 sm:$0xff]   ;;  %v1559_v1 = vld [vmem:[%s2016_s30 + $0xec] ss:$16 sps:$4 sm:$0xff]  }
  0x5f   : > { %1009 = vmatpush1.bf16.msra.mxu0 %v1531_v46  ;;  %v1561_v2 = vld [vmem:[%s2016_s30 + $0xe0] ss:$16 sps:$4 sm:$0xff]   ;;  %v1562_v3 = vld [vmem:[%s2016_s30 + $0xe8] ss:$16 sps:$4 sm:$0xff]   ;;  %v1563_v4 = vld [vmem:[%s2016_s30 + $0x104] ss:$16 sps:$4 sm:$0xff]  }
  0x60   : > { %1095 = vmatpush1.bf16.msra.mxu1 %v1532_v47  ;;  %1010 = vmatprep.subr.bf16.mxu0 %v1533_v48  ;;  %v1565_v5 = vld [vmem:[%s2016_s30 + $0x10c] ss:$16 sps:$4 sm:$0xff]   ;;  %v1567_v6 = vld [vmem:[%s2016_s30 + $0x100] ss:$16 sps:$4 sm:$0xff]   ;;  %v1568_v7 = vld [vmem:[%s2016_s30 + $0x108] ss:$16 sps:$4 sm:$0xff]  }
  0x61   : > { %1096 = vmatprep.subr.bf16.mxu1 %v1535_v49  ;;  %v1569_v8 = vld [vmem:[%s2016_s30 + $0x124] ss:$16 sps:$4 sm:$0xff]   ;;  %v1571_v9 = vld [vmem:[%s2016_s30 + $0x12c] ss:$16 sps:$4 sm:$0xff]   ;;  %v1573_v10 = vld [vmem:[%s2016_s30 + $0x120] ss:$16 sps:$4 sm:$0xff]  }
  0x62   : > { %v1574_v11 = vld [vmem:[%s2016_s30 + $0x128] ss:$16 sps:$4 sm:$0xff]   ;;  %v1575_v12 = vld [vmem:[%s2016_s30 + $0x144] ss:$16 sps:$4 sm:$0xff]   ;;  %v1577_v13 = vld [vmem:[%s2016_s30 + $0x14c] ss:$16 sps:$4 sm:$0xff]  }
  0x63   : > { %1011 = vmatpush1.bf16.msra.mxu0 %v1537_v50  ;;  %v1579_v14 = vld [vmem:[%s2016_s30 + $0x140] ss:$16 sps:$4 sm:$0xff]   ;;  %v1580_v15 = vld [vmem:[%s2016_s30 + $0x148] ss:$16 sps:$4 sm:$0xff]   ;;  %v1581_v16 = vld [vmem:[%s2016_s30 + $0x164] ss:$16 sps:$4 sm:$0xff]  }
  0x64   : > { %1097 = vmatpush1.bf16.msra.mxu1 %v1538_v51  ;;  %1012 = vmatprep.subr.bf16.mxu0 %v1539_v52  ;;  %v1583_v17 = vld [vmem:[%s2016_s30 + $0x16c] ss:$16 sps:$4 sm:$0xff]   ;;  %v1585_v18 = vld [vmem:[%s2016_s30 + $0x160] ss:$16 sps:$4 sm:$0xff]   ;;  %v1586_v19 = vld [vmem:[%s2016_s30 + $0x168] ss:$16 sps:$4 sm:$0xff]  }
  0x65   : > { %1098 = vmatprep.subr.bf16.mxu1 %v1541_v53  ;;  %v1587_v20 = vld [vmem:[%s2016_s30 + $0x184] ss:$16 sps:$4 sm:$0xff]   ;;  %v1589_v21 = vld [vmem:[%s2016_s30 + $0x18c] ss:$16 sps:$4 sm:$0xff]   ;;  %v1591_v22 = vld [vmem:[%s2016_s30 + $0x180] ss:$16 sps:$4 sm:$0xff]  }
  0x66   : > { %v1592_v23 = vld [vmem:[%s2016_s30 + $0x188] ss:$16 sps:$4 sm:$0xff]   ;;  %v1593_v24 = vld [vmem:[%s2016_s30 + $0x1a4] ss:$16 sps:$4 sm:$0xff]   ;;  %v1595_v25 = vld [vmem:[%s2016_s30 + $0x1ac] ss:$16 sps:$4 sm:$0xff]  }
  0x67   : > { %1013 = vmatpush1.bf16.msra.mxu0 %v1543_v54  ;;  %v1597_v26 = vld [vmem:[%s2016_s30 + $0x1a0] ss:$16 sps:$4 sm:$0xff]   ;;  %v1598_v27 = vld [vmem:[%s2016_s30 + $0x1a8] ss:$16 sps:$4 sm:$0xff]   ;;  %v1599_v28 = vld [vmem:[%s2016_s30 + $0x1c4] ss:$16 sps:$4 sm:$0xff]  }
  0x68   : > { %1099 = vmatpush1.bf16.msra.mxu1 %v1544_v55  ;;  %1014 = vmatprep.subr.bf16.mxu0 %v1545_v56  ;;  %v1601_v29 = vld [vmem:[%s2016_s30 + $0x1cc] ss:$16 sps:$4 sm:$0xff]   ;;  %v1603_v30 = vld [vmem:[%s2016_s30 + $0x1c0] ss:$16 sps:$4 sm:$0xff]   ;;  %v1604_v31 = vld [vmem:[%s2016_s30 + $0x1c8] ss:$16 sps:$4 sm:$0xff]  }
  0x69   : > { %1100 = vmatprep.subr.bf16.mxu1 %v1547_v57  ;;  %v1605_v32 = vld [vmem:[%s2016_s30 + $0x1e4] ss:$16 sps:$4 sm:$0xff]   ;;  %v1607_v34 = vld [vmem:[%s2016_s30 + $0x1ec] ss:$16 sps:$4 sm:$0xff]   ;;  %v1609_v35 = vld [vmem:[%s2016_s30 + $0x1e0] ss:$16 sps:$4 sm:$0xff]  }
  0x6a   : > { %v1610_v36 = vld [vmem:[%s2016_s30 + $0x1e8] ss:$16 sps:$4 sm:$0xff]   ;;  %v1616_v37 = vld [vmem:[%s2016_s30 + $0x204] ss:$16 sps:$4 sm:$0xff]   ;;  %v1619_v38 = vld [vmem:[%s2016_s30 + $0x20c] ss:$16 sps:$4 sm:$0xff]  }
  0x6b   : > { %1015 = vmatpush1.bf16.msra.mxu0 %v1549_v58  ;;  %v1611_v39 = vld [vmem:[%s2170_s0] ss:$12 sps:$4 sm:$0xff]   ;;  %v1617_v41 = vld [vmem:[%s2016_s30 + $0x208] ss:$16 sps:$4 sm:$0xff]   ;;  %v1622_v42 = vld [vmem:[%s2016_s30 + $0x224] ss:$16 sps:$4 sm:$0xff]  }
  0x6c   : > { %1101 = vmatpush1.bf16.msra.mxu1 %v1550_v59  ;;  %1016 = vmatprep.subr.bf16.mxu0 %v1551_v60  ;;  %v1614_v40 = vld [vmem:[%s2016_s30 + $0x200] ss:$16 sps:$4 sm:$0xff]   ;;  %v1625_v43 = vld [vmem:[%s2016_s30 + $0x22c] ss:$16 sps:$4 sm:$0xff]   ;;  %v1623_v45 = vld [vmem:[%s2016_s30 + $0x228] ss:$16 sps:$4 sm:$0xff]  }
  0x6d   : > { %1102 = vmatprep.subr.bf16.mxu1 %v1553_v61  ;;  %v1620_v44 = vld [vmem:[%s2016_s30 + $0x220] ss:$16 sps:$4 sm:$0xff]   ;;  %v1628_v46 = vld [vmem:[%s2016_s30 + $0x244] ss:$16 sps:$4 sm:$0xff]   ;;  %v1631_v47 = vld [vmem:[%s2016_s30 + $0x24c] ss:$16 sps:$4 sm:$0xff]  }
  0x6e   : > { %v1626_v48 = vld [vmem:[%s2016_s30 + $0x240] ss:$16 sps:$4 sm:$0xff]   ;;  %v1629_v49 = vld [vmem:[%s2016_s30 + $0x248] ss:$16 sps:$4 sm:$0xff]   ;;  %v1634_v50 = vld [vmem:[%s2016_s30 + $0x264] ss:$16 sps:$4 sm:$0xff]  }
  0x6f   : > { %1017 = vmatpush1.bf16.msra.mxu0 %v1555_v62  ;;  %v1637_v51 = vld [vmem:[%s2016_s30 + $0x26c] ss:$16 sps:$4 sm:$0xff]   ;;  %v1632_v52 = vld [vmem:[%s2016_s30 + $0x260] ss:$16 sps:$4 sm:$0xff]   ;;  %v1635_v53 = vld [vmem:[%s2016_s30 + $0x268] ss:$16 sps:$4 sm:$0xff]  }
  0x70   : > { %1103 = vmatpush1.bf16.msra.mxu1 %v1556_v63  ;;  %1018 = vmatprep.subr.bf16.mxu0 %v1557_v0  ;;  %v1643_v54 = vld [vmem:[%s2016_s30 + $0x28c] ss:$16 sps:$4 sm:$0xff]   ;;  %v1638_v55 = vld [vmem:[%s2016_s30 + $0x280] ss:$16 sps:$4 sm:$0xff]   ;;  %v1641_v56 = vld [vmem:[%s2016_s30 + $0x288] ss:$16 sps:$4 sm:$0xff]  }
  0x71   : > { %1104 = vmatprep.subr.bf16.mxu1 %v1559_v1  ;;  %v1646_v57 = vld [vmem:[%s2016_s30 + $0x2a4] ss:$16 sps:$4 sm:$0xff]   ;;  %v1649_v58 = vld [vmem:[%s2016_s30 + $0x2ac] ss:$16 sps:$4 sm:$0xff]   ;;  %v1644_v59 = vld [vmem:[%s2016_s30 + $0x2a0] ss:$16 sps:$4 sm:$0xff]  }
  0x72   : > { %v1647_v60 = vld [vmem:[%s2016_s30 + $0x2a8] ss:$16 sps:$4 sm:$0xff]   ;;  %v1652_v61 = vld [vmem:[%s2016_s30 + $0x2c4] ss:$16 sps:$4 sm:$0xff]   ;;  %v1655_v62 = vld [vmem:[%s2016_s30 + $0x2cc] ss:$16 sps:$4 sm:$0xff]  }
  0x73   : > { %1019 = vmatpush1.bf16.msra.mxu0 %v1561_v2  ;;  %v1650_v63 = vld [vmem:[%s2016_s30 + $0x2c0] ss:$16 sps:$4 sm:$0xff]   ;;  %v1653_v0 = vld [vmem:[%s2016_s30 + $0x2c8] ss:$16 sps:$4 sm:$0xff]   ;;  %v1658_v1 = vld [vmem:[%s2016_s30 + $0x2e4] ss:$16 sps:$4 sm:$0xff]  }
  0x74   : > { %1105 = vmatpush1.bf16.msra.mxu1 %v1562_v3  ;;  %1020 = vmatprep.subr.bf16.mxu0 %v1563_v4  ;;  %v1661_v2 = vld [vmem:[%s2016_s30 + $0x2ec] ss:$16 sps:$4 sm:$0xff]   ;;  %v1656_v3 = vld [vmem:[%s2016_s30 + $0x2e0] ss:$16 sps:$4 sm:$0xff]   ;;  %v1659_v4 = vld [vmem:[%s2016_s30 + $0x2e8] ss:$16 sps:$4 sm:$0xff]  }
  0x75   : > { %1106 = vmatprep.subr.bf16.mxu1 %v1565_v5  ;;  %v1662_v5 = vld [vmem:[%s2170_s0 + $0x8] ss:$12 sps:$4 sm:$0xff]   ;;  %s1433_s9 = sshll.u32 (%p1788_p6), %s1701_s14, 2  ;;  %s1434_s10 = sshll.u32 (%p1788_p6), %s1705_s15, 4 }
  0x76   : > { %s1217_s11 = sadd.s32 (%p1788_p6), %s1434_s10, %s1433_s9 }
  0x77   : > { %1021 = vmatpush1.bf16.msra.mxu0 %v1567_v6  ;;  %s1435_s23 = sshll.u32 (%p1788_p6), %s1217_s11, 3 }
  0x78   : > { %1107 = vmatpush1.bf16.msra.mxu1 %v1568_v7  ;;  %1022 = vmatprep.subr.bf16.mxu0 %v1569_v8  ;;  %s1219_s24 = scalar_lea.vmem (%p1788_p6), %s2173_s3, %s1435_s23 }
  0x79   : > { %1108 = vmatprep.subr.bf16.mxu1 %v1571_v9 }
  0x7b   : > { %1023 = vmatpush1.bf16.msra.mxu0 %v1573_v10 }
  0x7c   : > { %1109 = vmatpush1.bf16.msra.mxu1 %v1574_v11  ;;  %1024 = vmatprep.subr.bf16.mxu0 %v1575_v12 }
  0x7d   : > { %1110 = vmatprep.subr.bf16.mxu1 %v1577_v13 }
  0x7f   : > { %1025 = vmatpush1.bf16.msra.mxu0 %v1579_v14 }
  0x80   : > { %1111 = vmatpush1.bf16.msra.mxu1 %v1580_v15  ;;  %1026 = vmatprep.subr.bf16.mxu0 %v1581_v16 }
  0x81   : > { %1112 = vmatprep.subr.bf16.mxu1 %v1583_v17 }
  0x83   : > { %1027 = vmatpush1.bf16.msra.mxu0 %v1585_v18 }
  0x84   : > { %1113 = vmatpush1.bf16.msra.mxu1 %v1586_v19  ;;  %1028 = vmatprep.subr.bf16.mxu0 %v1587_v20 }
  0x85   : > { %1114 = vmatprep.subr.bf16.mxu1 %v1589_v21 }
  0x87   : > { %1029 = vmatpush1.bf16.msra.mxu0 %v1591_v22 }
  0x88   : > { %1115 = vmatpush1.bf16.msra.mxu1 %v1592_v23  ;;  %1030 = vmatprep.subr.bf16.mxu0 %v1593_v24 }
  0x89   : > { %1116 = vmatprep.subr.bf16.mxu1 %v1595_v25 }
  0x8b   : > { %1031 = vmatpush1.bf16.msra.mxu0 %v1597_v26 }
  0x8c   : > { %1117 = vmatpush1.bf16.msra.mxu1 %v1598_v27  ;;  %1032 = vmatprep.subr.bf16.mxu0 %v1599_v28 }
  0x8d   : > { %1118 = vmatprep.subr.bf16.mxu1 %v1601_v29 }
  0x8f   : > { %1033 = vmatpush1.bf16.msra.mxu0 %v1603_v30 }
  0x90   : > { %1119 = vmatpush1.bf16.msra.mxu1 %v1604_v31  ;;  %1034 = vmatprep.subr.bf16.mxu0 %v1605_v32 }
  0x91   : > { %1120 = vmatprep.subr.bf16.mxu1 %v1607_v34 }
  0x93   : > { %1035 = vmatpush1.bf16.msra.mxu0 %v1609_v35 }
  0x94   : > { %1121 = vmatpush1.bf16.msra.mxu1 %v1610_v36  ;;  %1047 = vmatprep.subr.bf16.mxu0 %v1616_v37 }
  0x95   : > { %1133 = vmatprep.subr.bf16.mxu1 %v1619_v38 }
  0x96   : > { %1037 = vmatmul.mubr.bf16.vlgmr.msra.gmra.mrb[0].mxu0 %v1611_v39 }
  0x97   : > { %1123 = vmatmul.mubr.bf16.vlgmr.msra.gmra.mrb[0].mxu1 %v1611_v39  ;;  %1048 = vmatpush1.bf16.msra.mxu0 %v1614_v40 }
  0x98   : > { %1134 = vmatpush1.bf16.msra.mxu1 %v1617_v41  ;;  %1049 = vmatprep.subr.bf16.mxu0 %v1622_v42 }
  0x99   : > { %1135 = vmatprep.subr.bf16.mxu1 %v1625_v43  ;;  %1079 = vmatprep.mubr.bf16.mxu0 %v1719_v33 }
  0x9a   : > { %1165 = vmatprep.mubr.bf16.mxu1 %v1719_v33  ;;  %v1640_v33 = vld [vmem:[%s2016_s30 + $0x284] ss:$16 sps:$4 sm:$0xff]  }
  0x9b   : > { %1050 = vmatpush1.bf16.msra.mxu0 %v1620_v44 }
  0x9c   : > { %1136 = vmatpush1.bf16.msra.mxu1 %v1623_v45  ;;  %1051 = vmatprep.subr.bf16.mxu0 %v1628_v46 }
  0x9d   : > { %1137 = vmatprep.subr.bf16.mxu1 %v1631_v47 }
  0x9f   : > { %1052 = vmatpush1.bf16.msra.mxu0 %v1626_v48 }
  0xa0   : > { %1138 = vmatpush1.bf16.msra.mxu1 %v1629_v49  ;;  %1053 = vmatprep.subr.bf16.mxu0 %v1634_v50 }
  0xa1   : > { %1139 = vmatprep.subr.bf16.mxu1 %v1637_v51 }
  0xa3   : > { %1054 = vmatpush1.bf16.msra.mxu0 %v1632_v52 }
  0xa4   : > { %1140 = vmatpush1.bf16.msra.mxu1 %v1635_v53  ;;  %1055 = vmatprep.subr.bf16.mxu0 %v1640_v33 }
  0xa5   : > { %1141 = vmatprep.subr.bf16.mxu1 %v1643_v54 }
  0xa7   : > { %1056 = vmatpush1.bf16.msra.mxu0 %v1638_v55 }
  0xa8   : > { %1142 = vmatpush1.bf16.msra.mxu1 %v1641_v56  ;;  %1057 = vmatprep.subr.bf16.mxu0 %v1646_v57 }
  0xa9   : > { %1143 = vmatprep.subr.bf16.mxu1 %v1649_v58 }
  0xab   : > { %1058 = vmatpush1.bf16.msra.mxu0 %v1644_v59 }
  0xac   : > { %1144 = vmatpush1.bf16.msra.mxu1 %v1647_v60  ;;  %1059 = vmatprep.subr.bf16.mxu0 %v1652_v61 }
  0xad   : > { %1145 = vmatprep.subr.bf16.mxu1 %v1655_v62 }
  0xaf   : > { %1060 = vmatpush1.bf16.msra.mxu0 %v1650_v63 }
  0xb0   : > { %1146 = vmatpush1.bf16.msra.mxu1 %v1653_v0  ;;  %1061 = vmatprep.subr.bf16.mxu0 %v1658_v1 }
  0xb1   : > { %1147 = vmatprep.subr.bf16.mxu1 %v1661_v2 }
  0xb3   : > { %1062 = vmatpush1.bf16.msra.mxu0 %v1656_v3 }
  0xb4   : > { %1148 = vmatpush1.bf16.msra.mxu1 %v1659_v4 }
  0xb6   : > { %1080 = vmatmul.mubr.bf16.vlgmr.msra.gmra.mrb[0].mxu0 %v1662_v5 }
  0xb7   : > { %1166 = vmatmul.mubr.bf16.vlgmr.msra.gmra.mrb[0].mxu1 %v1662_v5 }
  0xd1   : > { %v501_v6 = vpop.permute.xlu0 %500 }
  0xd5   : > { %v506_v19 = vpop.permute.xlu0 %505 }
 0x189   : > { %v1081_v7 = vpop.f32.mrb[0].mxu0 }
 0x18a   : > { %v1167_v8 = vpop.f32.mrb[0].mxu1  ;;  %v1438_v9 = vadd.f32 %v1081_v7, %v501_v6  ;;  %v1083_v11 = vpop.f32.mrb[1].mxu0 }
 0x18b   : > { %v1442_v10 = vadd.f32 %v1167_v8, %v501_v6  ;;  %v1169_v12 = vpop.f32.mrb[1].mxu1  ;;  %v1439_v13 = vadd.f32 %v1083_v11, %v501_v6  ;;  %v1085_v15 = vpop.f32.mrb[2].mxu0 }
 0x18c   : > { %v1443_v14 = vadd.f32 %v1169_v12, %v501_v6  ;;  %v1171_v16 = vpop.f32.mrb[2].mxu1  ;;  %vm1176_vm0 = vcmp.gt.f32.partialorder %v1438_v9, 0.0  ;;  %v1184_v17 = vmul.f32 0.2, %v1438_v9  ;;  %v1440_v24 = vadd.f32 %v1085_v15, %v506_v19  ;;  %v1087_v26 = vpop.f32.mrb[3].mxu0 }
 0x18d   : > { %vm1178_vm1 = vcmp.gt.f32.partialorder %v1442_v10, 0.0  ;;  %v1186_v18 = vmul.f32 0.2, %v1442_v10  ;;  %vm1177_vm2 = vcmp.gt.f32.partialorder %v1439_v13, 0.0  ;;  %v1185_v20 = vmul.f32 0.2, %v1439_v13 }
 0x18e   : > { %vm1179_vm3 = vcmp.gt.f32.partialorder %v1443_v14, 0.0  ;;  %v1187_v21 = vmul.f32 0.2, %v1443_v14  ;;  %v1192_v22 = vsel %vm1176_vm0, %v1438_v9, %v1184_v17  ;;  %v1444_v25 = vadd.f32 %v1171_v16, %v506_v19  ;;  %v1173_v27 = vpop.f32.mrb[3].mxu1 }
 0x18f   : > { %v1194_v23 = vsel %vm1178_vm1, %v1442_v10, %v1186_v18  ;;  %1200 = vst [vmem:[%s2124_s12] sm:$0xff] %v1192_v22  ;;  %v1193_v28 = vsel %vm1177_vm2, %v1439_v13, %v1185_v20  ;;  %v1441_v30 = vadd.f32 %v1087_v26, %v506_v19  ;;  %v1445_v31 = vadd.f32 %v1173_v27, %v506_v19  ;;  %1214 = sbr.rel (!%p1788_p6) target bundleno = 414 (0x19e), region = 59 }
 0x190   : > { %1202 = vst [vmem:[%s2124_s12 + $0x10] sm:$0xff] %v1194_v23  ;;  %v1195_v29 = vsel %vm1179_vm3, %v1443_v14, %v1187_v21  ;;  %1201 = vst [vmem:[%s2124_s12 + $0x8] sm:$0xff] %v1193_v28  ;;  %vm1180_vm4 = vcmp.gt.f32.partialorder %v1440_v24, 0.0  ;;  %v1188_v32 = vmul.f32 0.2, %v1440_v24  ;;  %vm1182_vm5 = vcmp.gt.f32.partialorder %v1444_v25, 0.0 }
 0x191   : > { %1203 = vst [vmem:[%s2124_s12 + $0x18] sm:$0xff] %v1195_v29  ;;  %v1190_v34 = vmul.f32 0.2, %v1444_v25  ;;  %vm1181_vm6 = vcmp.gt.f32.partialorder %v1441_v30, 0.0  ;;  %v1189_v35 = vmul.f32 0.2, %v1441_v30 }
 0x192   : > { %vm1183_vm7 = vcmp.gt.f32.partialorder %v1445_v31, 0.0  ;;  %v1191_v36 = vmul.f32 0.2, %v1445_v31  ;;  %v1196_v37 = vsel %vm1180_vm4, %v1440_v24, %v1188_v32 }
 0x193   : > { %v1198_v38 = vsel %vm1182_vm5, %v1444_v25, %v1190_v34  ;;  %1204 = vst [vmem:[%s2124_s12 + $0x20] sm:$0xff] %v1196_v37  ;;  %v1197_v39 = vsel %vm1181_vm6, %v1441_v30, %v1189_v35 }
 0x194   : > { %1206 = vst [vmem:[%s2124_s12 + $0x30] sm:$0xff] %v1198_v38  ;;  %v1199_v40 = vsel %vm1183_vm7, %v1445_v31, %v1191_v36  ;;  %1205 = vst [vmem:[%s2124_s12 + $0x28] sm:$0xff] %v1197_v39 }
 0x195   : > { %1207 = vst [vmem:[%s2124_s12 + $0x38] sm:$0xff] %v1199_v40 }
 0x196   : > { %v1232_v41 = vld [vmem:[%s2124_s12] sm:$0xff] }
 0x197   : > { %v1234_v42 = vld [vmem:[%s2124_s12 + $0x8] sm:$0xff]  ;;  %v1236_v43 = vld [vmem:[%s2124_s12 + $0x10] sm:$0xff]  ;;  %1233 = vst [vmem:[%s1219_s24] sm:$0xff] %v1232_v41 }
 0x198   : > { %v1238_v44 = vld [vmem:[%s2124_s12 + $0x18] sm:$0xff]  ;;  %1235 = vst [vmem:[%s1219_s24 + $0x8] sm:$0xff] %v1234_v42  ;;  %1237 = vst [vmem:[%s1219_s24 + $0x10] sm:$0xff] %v1236_v43 }
 0x199   : > { %1239 = vst [vmem:[%s1219_s24 + $0x18] sm:$0xff] %v1238_v44 }
 0x19a   : > { %v1240_v45 = vld [vmem:[%s2124_s12 + $0x20] sm:$0xff] }
 0x19b   : > { %v1242_v46 = vld [vmem:[%s2124_s12 + $0x28] sm:$0xff]  ;;  %v1244_v47 = vld [vmem:[%s2124_s12 + $0x30] sm:$0xff]  ;;  %1241 = vst [vmem:[%s1219_s24 + $0x40] sm:$0xff] %v1240_v45 }
 0x19c   : > { %v1246_v48 = vld [vmem:[%s2124_s12 + $0x38] sm:$0xff]  ;;  %1243 = vst [vmem:[%s1219_s24 + $0x48] sm:$0xff] %v1242_v46  ;;  %1245 = vst [vmem:[%s1219_s24 + $0x50] sm:$0xff] %v1244_v47 }
 0x19d   : > { %1247 = vst [vmem:[%s1219_s24 + $0x58] sm:$0xff] %v1246_v48 }
 0x19e PF: > { %s13_s18 = sadd.s32 1, %s1717_s18   ;;  %s2175_s12 = smov %s1697_s13 }
 0x19f   : > { %p10_p12 = scmp.ge.s32.totalorder %s13_s18, 6   ;;  %s2176_s13 = smov %s1796_s27 }
 0x1a0   : > { %s2177_s14 = smov %s1709_s16  ;;  %s2178_s15 = smov %s1713_s17 }
 0x1a1   : > { %s2179_s16 = smov %s2182_s19  ;;  %s2180_s17 = smov %s2186_s20 }
 0x1a2   :  { %12 = sbr.rel (!%p10_p12) target bundleno = 4 (0x4), region = 113 }

// kernel: downsample_module_forward.14
= control target key start
LH: loop header
LB: loop body
LE: loop exit
PB: predicated region body
PF: predicated region fallthrough
CT: control target
= control target key end

     0   :  { %s1878_s12 = smov 0   ;;  %s1880_s13 = smov 0   ;;  %s2344_s0 = inlined_call_operand.vmem [shape: bf16[16,432], index: 0, kind: input, shape index: {}]   ;;  %s2345_s1 = inlined_call_operand.vmem [shape: f32[16,1], index: 1, kind: input, shape index: {}]   ;;  %s2346_s2 = inlined_call_operand.vmem [shape: bf16[2,432,1024], index: 2, kind: input, shape index: {}]   ;;  %s2347_s3 = inlined_call_operand.vmem [shape: f32[2,16,1024], index: 3, kind: output, shape index: {}]  }
   0x1   :  { %s1882_s14 = smov 0   ;;  %s1884_s15 = smov 0  }
   0x2   :  { %s1886_s16 = smov 0   ;;  %s1888_s17 = smov 0  }
   0x3   :  { %s1890_s18 = smov 0  }
   0x4 LB: > { %s22_s19 = sadd.s32 1, %s1847_s16  ;;  %s25_s20 = sadd.s32 1, %s1851_s17  ;;  %s1855_s18 = sphi %s1890_s18, %s13_s18   ;;  %s1851_s17 = sphi %s1888_s17, %s2354_s17   ;;  %s1847_s16 = sphi %s1886_s16, %s2353_s16   ;;  %s1843_s15 = sphi %s1884_s15, %s2352_s15   ;;  %s1839_s14 = sphi %s1882_s14, %s2351_s14   ;;  %s1835_s13 = sphi %s1880_s13, %s2350_s13   ;;  %s1831_s12 = sphi %s1878_s12, %s2349_s12  }
   0x5   : > { %p23_p0 = scmp.ge.s32.totalorder %s22_s19, 2  ;;  %s1428_s21 = sadd.s32 4294967295, %s1855_s18  }
   0x6   : > { %p83_p1 = scmp.ne.s32.totalorder %s1835_s13, %s1831_s12  ;;  %p84_p2 = scmp.eq.s32.totalorder %s1855_s18, 0 }
   0x7   : > { %s2356_s19 = smov (%p23_p0, %s22_s19), 0  ;;  %s2358_s20 = smov (!%p23_p0, %s25_s20), %s1851_s17 }
   0x8   : > { %p27_p3 = scmp.ge.s32.totalorder %s2358_s20, 2  ;;  %p115_p4 = scmp.eq.s32.totalorder %s1428_s21, 3 }
   0x9   : > { %s72_s22 = ssub.s32 %s1847_s16, %s2356_s19  ;;  %p85_p5 = por %p84_p2, %p83_p1 }
   0xa   : > { %s2360_s20 = smov (%p27_p3, %s2358_s20), 0  ;;  %p1926_p6 = por %p115_p4, %p83_p1 }
   0xb   : > { %s71_s24 = ssub.s32 %s1851_s17, %s2360_s20  ;;  %s76_s26 = sadd.s32 1, %s1835_s13 }
   0xc   : > { %s73_s25 = sor.u32 %s72_s22, %s71_s24  ;;  %p1431_p8 = scmp.ge.s32.totalorder %s1855_s18, 4 }
   0xd   : > { %p74_p7 = scmp.eq.s32.totalorder %s73_s25, 0 }
   0xe   : > { %143 = sbr.rel (%p1431_p8) target bundleno = 83 (0x53), region = 24 }
   0xf   : > { %s1934_s27 = scalar_select %p74_p7, %s1835_s13, %s76_s26  }
  0x15   : > { %146 = sbr.rel (!%p85_p5) target bundleno = 83 (0x53), region = 28  ;;  %s148_s28 = sand.u32 (%p85_p5), 1, %s1835_s13  }
  0x16   : > { %s1572_s29 = smul.u32 (%p85_p5), 864, %s148_s28  ;;  %s1432_s30 = sshll.u32 (%p85_p5), %s1847_s16, 2 }
  0x17   : > { %s1573_s4 = smul.u32 (%p85_p5), 432, %s1851_s17 }
  0x18   : > { %s1948_s10 = scalar_lea.vmem (%p85_p5), [#allocation2], %s1572_s29 }
  0x19   : > { %s153_s5 = sadd.s32 (%p85_p5), %s1573_s4, %s1432_s30 }
  0x1a   : > { %s1433_s6 = sshll.u32 (%p85_p5), %s153_s5, 2 }
  0x1b   : > { %s1943_s9 = scalar_lea.vmem (%p85_p5), %s2346_s2, %s1433_s6 }
  0x1c   : > { %v168_v0 = vld [vmem:[%s1943_s9] sm:$0xff]  ;;  %v170_v1 = vld [vmem:[%s1943_s9 + $0x8] sm:$0xff] }
  0x1d   : > { %v172_v2 = vld [vmem:[%s1943_s9 + $0x20] sm:$0xff]  ;;  %169 = vst [vmem:[%s1948_s10] sm:$0xff] %v168_v0  ;;  %171 = vst [vmem:[%s1948_s10 + $0x8] sm:$0xff] %v170_v1  ;;  %v174_v3 = vld [vmem:[%s1943_s9 + $0x28] sm:$0xff] }
  0x1e   : > { %173 = vst [vmem:[%s1948_s10 + $0x10] sm:$0xff] %v172_v2  ;;  %v176_v4 = vld [vmem:[%s1943_s9 + $0x40] sm:$0xff]  ;;  %v178_v5 = vld [vmem:[%s1943_s9 + $0x48] sm:$0xff]  ;;  %175 = vst [vmem:[%s1948_s10 + $0x18] sm:$0xff] %v174_v3 }
  0x1f   : > { %177 = vst [vmem:[%s1948_s10 + $0x20] sm:$0xff] %v176_v4  ;;  %179 = vst [vmem:[%s1948_s10 + $0x28] sm:$0xff] %v178_v5  ;;  %v180_v6 = vld [vmem:[%s1943_s9 + $0x60] sm:$0xff]  ;;  %v182_v7 = vld [vmem:[%s1943_s9 + $0x68] sm:$0xff] }
  0x20   : > { %v184_v8 = vld [vmem:[%s1943_s9 + $0x80] sm:$0xff]  ;;  %181 = vst [vmem:[%s1948_s10 + $0x30] sm:$0xff] %v180_v6  ;;  %183 = vst [vmem:[%s1948_s10 + $0x38] sm:$0xff] %v182_v7  ;;  %v186_v9 = vld [vmem:[%s1943_s9 + $0x88] sm:$0xff] }
  0x21   : > { %185 = vst [vmem:[%s1948_s10 + $0x40] sm:$0xff] %v184_v8  ;;  %v188_v10 = vld [vmem:[%s1943_s9 + $0xa0] sm:$0xff]  ;;  %v190_v11 = vld [vmem:[%s1943_s9 + $0xa8] sm:$0xff]  ;;  %187 = vst [vmem:[%s1948_s10 + $0x48] sm:$0xff] %v186_v9 }
  0x22   : > { %189 = vst [vmem:[%s1948_s10 + $0x50] sm:$0xff] %v188_v10  ;;  %191 = vst [vmem:[%s1948_s10 + $0x58] sm:$0xff] %v190_v11  ;;  %v192_v12 = vld [vmem:[%s1943_s9 + $0xc0] sm:$0xff]  ;;  %v194_v13 = vld [vmem:[%s1943_s9 + $0xc8] sm:$0xff] }
  0x23   : > { %v196_v14 = vld [vmem:[%s1943_s9 + $0xe0] sm:$0xff]  ;;  %193 = vst [vmem:[%s1948_s10 + $0x60] sm:$0xff] %v192_v12  ;;  %195 = vst [vmem:[%s1948_s10 + $0x68] sm:$0xff] %v194_v13  ;;  %v198_v15 = vld [vmem:[%s1943_s9 + $0xe8] sm:$0xff] }
  0x24   : > { %197 = vst [vmem:[%s1948_s10 + $0x70] sm:$0xff] %v196_v14  ;;  %v200_v16 = vld [vmem:[%s1943_s9 + $0x100] sm:$0xff]  ;;  %v202_v17 = vld [vmem:[%s1943_s9 + $0x108] sm:$0xff]  ;;  %199 = vst [vmem:[%s1948_s10 + $0x78] sm:$0xff] %v198_v15 }
  0x25   : > { %201 = vst [vmem:[%s1948_s10 + $0x80] sm:$0xff] %v200_v16  ;;  %203 = vst [vmem:[%s1948_s10 + $0x88] sm:$0xff] %v202_v17  ;;  %v204_v18 = vld [vmem:[%s1943_s9 + $0x120] sm:$0xff]  ;;  %v206_v19 = vld [vmem:[%s1943_s9 + $0x128] sm:$0xff] }
  0x26   : > { %v208_v20 = vld [vmem:[%s1943_s9 + $0x140] sm:$0xff]  ;;  %205 = vst [vmem:[%s1948_s10 + $0x90] sm:$0xff] %v204_v18  ;;  %207 = vst [vmem:[%s1948_s10 + $0x98] sm:$0xff] %v206_v19  ;;  %v210_v21 = vld [vmem:[%s1943_s9 + $0x148] sm:$0xff] }
  0x27   : > { %209 = vst [vmem:[%s1948_s10 + $0xa0] sm:$0xff] %v208_v20  ;;  %v212_v22 = vld [vmem:[%s1943_s9 + $0x160] sm:$0xff]  ;;  %v214_v23 = vld [vmem:[%s1943_s9 + $0x168] sm:$0xff]  ;;  %211 = vst [vmem:[%s1948_s10 + $0xa8] sm:$0xff] %v210_v21 }
  0x28   : > { %213 = vst [vmem:[%s1948_s10 + $0xb0] sm:$0xff] %v212_v22  ;;  %215 = vst [vmem:[%s1948_s10 + $0xb8] sm:$0xff] %v214_v23  ;;  %v216_v24 = vld [vmem:[%s1943_s9 + $0x180] sm:$0xff]  ;;  %v218_v25 = vld [vmem:[%s1943_s9 + $0x188] sm:$0xff] }
  0x29   : > { %v220_v26 = vld [vmem:[%s1943_s9 + $0x1a0] sm:$0xff]  ;;  %217 = vst [vmem:[%s1948_s10 + $0xc0] sm:$0xff] %v216_v24  ;;  %219 = vst [vmem:[%s1948_s10 + $0xc8] sm:$0xff] %v218_v25  ;;  %v222_v27 = vld [vmem:[%s1943_s9 + $0x1a8] sm:$0xff] }
  0x2a   : > { %221 = vst [vmem:[%s1948_s10 + $0xd0] sm:$0xff] %v220_v26  ;;  %v224_v28 = vld [vmem:[%s1943_s9 + $0x1c0] sm:$0xff]  ;;  %v226_v29 = vld [vmem:[%s1943_s9 + $0x1c8] sm:$0xff]  ;;  %223 = vst [vmem:[%s1948_s10 + $0xd8] sm:$0xff] %v222_v27 }
  0x2b   : > { %225 = vst [vmem:[%s1948_s10 + $0xe0] sm:$0xff] %v224_v28  ;;  %227 = vst [vmem:[%s1948_s10 + $0xe8] sm:$0xff] %v226_v29  ;;  %v228_v30 = vld [vmem:[%s1943_s9 + $0x1e0] sm:$0xff]  ;;  %v230_v31 = vld [vmem:[%s1943_s9 + $0x1e8] sm:$0xff] }
  0x2c   : > { %v232_v32 = vld [vmem:[%s1943_s9 + $0x200] sm:$0xff]  ;;  %229 = vst [vmem:[%s1948_s10 + $0xf0] sm:$0xff] %v228_v30  ;;  %231 = vst [vmem:[%s1948_s10 + $0xf8] sm:$0xff] %v230_v31  ;;  %v234_v33 = vld [vmem:[%s1943_s9 + $0x208] sm:$0xff] }
  0x2d   : > { %233 = vst [vmem:[%s1948_s10 + $0x100] sm:$0xff] %v232_v32  ;;  %v236_v34 = vld [vmem:[%s1943_s9 + $0x220] sm:$0xff]  ;;  %v238_v35 = vld [vmem:[%s1943_s9 + $0x228] sm:$0xff]  ;;  %235 = vst [vmem:[%s1948_s10 + $0x108] sm:$0xff] %v234_v33 }
  0x2e   : > { %237 = vst [vmem:[%s1948_s10 + $0x110] sm:$0xff] %v236_v34  ;;  %239 = vst [vmem:[%s1948_s10 + $0x118] sm:$0xff] %v238_v35  ;;  %v240_v36 = vld [vmem:[%s1943_s9 + $0x240] sm:$0xff]  ;;  %v242_v37 = vld [vmem:[%s1943_s9 + $0x248] sm:$0xff] }
  0x2f   : > { %v244_v38 = vld [vmem:[%s1943_s9 + $0x260] sm:$0xff]  ;;  %241 = vst [vmem:[%s1948_s10 + $0x120] sm:$0xff] %v240_v36  ;;  %243 = vst [vmem:[%s1948_s10 + $0x128] sm:$0xff] %v242_v37  ;;  %v246_v39 = vld [vmem:[%s1943_s9 + $0x268] sm:$0xff] }
  0x30   : > { %245 = vst [vmem:[%s1948_s10 + $0x130] sm:$0xff] %v244_v38  ;;  %v248_v40 = vld [vmem:[%s1943_s9 + $0x280] sm:$0xff]  ;;  %v250_v41 = vld [vmem:[%s1943_s9 + $0x288] sm:$0xff]  ;;  %247 = vst [vmem:[%s1948_s10 + $0x138] sm:$0xff] %v246_v39 }
  0x31   : > { %249 = vst [vmem:[%s1948_s10 + $0x140] sm:$0xff] %v248_v40  ;;  %251 = vst [vmem:[%s1948_s10 + $0x148] sm:$0xff] %v250_v41  ;;  %v252_v42 = vld [vmem:[%s1943_s9 + $0x2a0] sm:$0xff]  ;;  %v254_v43 = vld [vmem:[%s1943_s9 + $0x2a8] sm:$0xff] }
  0x32   : > { %v256_v44 = vld [vmem:[%s1943_s9 + $0x2c0] sm:$0xff]  ;;  %253 = vst [vmem:[%s1948_s10 + $0x150] sm:$0xff] %v252_v42  ;;  %255 = vst [vmem:[%s1948_s10 + $0x158] sm:$0xff] %v254_v43  ;;  %v258_v45 = vld [vmem:[%s1943_s9 + $0x2c8] sm:$0xff] }
  0x33   : > { %257 = vst [vmem:[%s1948_s10 + $0x160] sm:$0xff] %v256_v44  ;;  %v260_v46 = vld [vmem:[%s1943_s9 + $0x2e0] sm:$0xff]  ;;  %v262_v47 = vld [vmem:[%s1943_s9 + $0x2e8] sm:$0xff]  ;;  %259 = vst [vmem:[%s1948_s10 + $0x168] sm:$0xff] %v258_v45 }
  0x34   : > { %261 = vst [vmem:[%s1948_s10 + $0x170] sm:$0xff] %v260_v46  ;;  %263 = vst [vmem:[%s1948_s10 + $0x178] sm:$0xff] %v262_v47  ;;  %v264_v48 = vld [vmem:[%s1943_s9 + $0x300] sm:$0xff]  ;;  %v266_v49 = vld [vmem:[%s1943_s9 + $0x308] sm:$0xff] }
  0x35   : > { %v268_v50 = vld [vmem:[%s1943_s9 + $0x320] sm:$0xff]  ;;  %265 = vst [vmem:[%s1948_s10 + $0x180] sm:$0xff] %v264_v48  ;;  %267 = vst [vmem:[%s1948_s10 + $0x188] sm:$0xff] %v266_v49  ;;  %v270_v51 = vld [vmem:[%s1943_s9 + $0x328] sm:$0xff] }
  0x36   : > { %269 = vst [vmem:[%s1948_s10 + $0x190] sm:$0xff] %v268_v50  ;;  %v272_v52 = vld [vmem:[%s1943_s9 + $0x340] sm:$0xff]  ;;  %v274_v53 = vld [vmem:[%s1943_s9 + $0x348] sm:$0xff]  ;;  %271 = vst [vmem:[%s1948_s10 + $0x198] sm:$0xff] %v270_v51 }
  0x37   : > { %273 = vst [vmem:[%s1948_s10 + $0x1a0] sm:$0xff] %v272_v52  ;;  %275 = vst [vmem:[%s1948_s10 + $0x1a8] sm:$0xff] %v274_v53  ;;  %v276_v54 = vld [vmem:[%s1943_s9 + $0x360] sm:$0xff]  ;;  %v278_v55 = vld [vmem:[%s1943_s9 + $0x368] sm:$0xff] }
  0x38   : > { %v280_v56 = vld [vmem:[%s1943_s9 + $0x380] sm:$0xff]  ;;  %277 = vst [vmem:[%s1948_s10 + $0x1b0] sm:$0xff] %v276_v54  ;;  %279 = vst [vmem:[%s1948_s10 + $0x1b8] sm:$0xff] %v278_v55  ;;  %v282_v57 = vld [vmem:[%s1943_s9 + $0x388] sm:$0xff] }
  0x39   : > { %281 = vst [vmem:[%s1948_s10 + $0x1c0] sm:$0xff] %v280_v56  ;;  %v284_v58 = vld [vmem:[%s1943_s9 + $0x3a0] sm:$0xff]  ;;  %v286_v59 = vld [vmem:[%s1943_s9 + $0x3a8] sm:$0xff]  ;;  %283 = vst [vmem:[%s1948_s10 + $0x1c8] sm:$0xff] %v282_v57 }
  0x3a   : > { %285 = vst [vmem:[%s1948_s10 + $0x1d0] sm:$0xff] %v284_v58  ;;  %287 = vst [vmem:[%s1948_s10 + $0x1d8] sm:$0xff] %v286_v59  ;;  %v288_v60 = vld [vmem:[%s1943_s9 + $0x3c0] sm:$0xff]  ;;  %v290_v61 = vld [vmem:[%s1943_s9 + $0x3c8] sm:$0xff] }
  0x3b   : > { %v292_v62 = vld [vmem:[%s1943_s9 + $0x3e0] sm:$0xff]  ;;  %289 = vst [vmem:[%s1948_s10 + $0x1e0] sm:$0xff] %v288_v60  ;;  %291 = vst [vmem:[%s1948_s10 + $0x1e8] sm:$0xff] %v290_v61  ;;  %v294_v63 = vld [vmem:[%s1943_s9 + $0x3e8] sm:$0xff] }
  0x3c   : > { %293 = vst [vmem:[%s1948_s10 + $0x1f0] sm:$0xff] %v292_v62  ;;  %v296_v0 = vld [vmem:[%s1943_s9 + $0x400] sm:$0xff]  ;;  %v298_v1 = vld [vmem:[%s1943_s9 + $0x408] sm:$0xff]  ;;  %295 = vst [vmem:[%s1948_s10 + $0x1f8] sm:$0xff] %v294_v63 }
  0x3d   : > { %297 = vst [vmem:[%s1948_s10 + $0x200] sm:$0xff] %v296_v0  ;;  %299 = vst [vmem:[%s1948_s10 + $0x208] sm:$0xff] %v298_v1  ;;  %v300_v2 = vld [vmem:[%s1943_s9 + $0x420] sm:$0xff]  ;;  %v302_v3 = vld [vmem:[%s1943_s9 + $0x428] sm:$0xff] }
  0x3e   : > { %v304_v4 = vld [vmem:[%s1943_s9 + $0x440] sm:$0xff]  ;;  %301 = vst [vmem:[%s1948_s10 + $0x210] sm:$0xff] %v300_v2  ;;  %303 = vst [vmem:[%s1948_s10 + $0x218] sm:$0xff] %v302_v3  ;;  %v306_v5 = vld [vmem:[%s1943_s9 + $0x448] sm:$0xff] }
  0x3f   : > { %305 = vst [vmem:[%s1948_s10 + $0x220] sm:$0xff] %v304_v4  ;;  %v308_v6 = vld [vmem:[%s1943_s9 + $0x460] sm:$0xff]  ;;  %v310_v7 = vld [vmem:[%s1943_s9 + $0x468] sm:$0xff]  ;;  %307 = vst [vmem:[%s1948_s10 + $0x228] sm:$0xff] %v306_v5 }
  0x40   : > { %309 = vst [vmem:[%s1948_s10 + $0x230] sm:$0xff] %v308_v6  ;;  %311 = vst [vmem:[%s1948_s10 + $0x238] sm:$0xff] %v310_v7  ;;  %v312_v8 = vld [vmem:[%s1943_s9 + $0x480] sm:$0xff]  ;;  %v314_v9 = vld [vmem:[%s1943_s9 + $0x488] sm:$0xff] }
  0x41   : > { %v316_v10 = vld [vmem:[%s1943_s9 + $0x4a0] sm:$0xff]  ;;  %313 = vst [vmem:[%s1948_s10 + $0x240] sm:$0xff] %v312_v8  ;;  %315 = vst [vmem:[%s1948_s10 + $0x248] sm:$0xff] %v314_v9  ;;  %v318_v11 = vld [vmem:[%s1943_s9 + $0x4a8] sm:$0xff] }
  0x42   : > { %317 = vst [vmem:[%s1948_s10 + $0x250] sm:$0xff] %v316_v10  ;;  %v320_v12 = vld [vmem:[%s1943_s9 + $0x4c0] sm:$0xff]  ;;  %v322_v13 = vld [vmem:[%s1943_s9 + $0x4c8] sm:$0xff]  ;;  %319 = vst [vmem:[%s1948_s10 + $0x258] sm:$0xff] %v318_v11 }
  0x43   : > { %321 = vst [vmem:[%s1948_s10 + $0x260] sm:$0xff] %v320_v12  ;;  %323 = vst [vmem:[%s1948_s10 + $0x268] sm:$0xff] %v322_v13  ;;  %v324_v14 = vld [vmem:[%s1943_s9 + $0x4e0] sm:$0xff]  ;;  %v326_v15 = vld [vmem:[%s1943_s9 + $0x4e8] sm:$0xff] }
  0x44   : > { %v328_v16 = vld [vmem:[%s1943_s9 + $0x500] sm:$0xff]  ;;  %325 = vst [vmem:[%s1948_s10 + $0x270] sm:$0xff] %v324_v14  ;;  %327 = vst [vmem:[%s1948_s10 + $0x278] sm:$0xff] %v326_v15  ;;  %v330_v17 = vld [vmem:[%s1943_s9 + $0x508] sm:$0xff] }
  0x45   : > { %329 = vst [vmem:[%s1948_s10 + $0x280] sm:$0xff] %v328_v16  ;;  %v332_v18 = vld [vmem:[%s1943_s9 + $0x520] sm:$0xff]  ;;  %v334_v19 = vld [vmem:[%s1943_s9 + $0x528] sm:$0xff]  ;;  %331 = vst [vmem:[%s1948_s10 + $0x288] sm:$0xff] %v330_v17 }
  0x46   : > { %333 = vst [vmem:[%s1948_s10 + $0x290] sm:$0xff] %v332_v18  ;;  %335 = vst [vmem:[%s1948_s10 + $0x298] sm:$0xff] %v334_v19  ;;  %v336_v20 = vld [vmem:[%s1943_s9 + $0x540] sm:$0xff]  ;;  %v338_v21 = vld [vmem:[%s1943_s9 + $0x548] sm:$0xff] }
  0x47   : > { %v340_v22 = vld [vmem:[%s1943_s9 + $0x560] sm:$0xff]  ;;  %337 = vst [vmem:[%s1948_s10 + $0x2a0] sm:$0xff] %v336_v20  ;;  %339 = vst [vmem:[%s1948_s10 + $0x2a8] sm:$0xff] %v338_v21  ;;  %v342_v23 = vld [vmem:[%s1943_s9 + $0x568] sm:$0xff] }
  0x48   : > { %341 = vst [vmem:[%s1948_s10 + $0x2b0] sm:$0xff] %v340_v22  ;;  %v344_v24 = vld [vmem:[%s1943_s9 + $0x580] sm:$0xff]  ;;  %v346_v25 = vld [vmem:[%s1943_s9 + $0x588] sm:$0xff]  ;;  %343 = vst [vmem:[%s1948_s10 + $0x2b8] sm:$0xff] %v342_v23 }
  0x49   : > { %345 = vst [vmem:[%s1948_s10 + $0x2c0] sm:$0xff] %v344_v24  ;;  %347 = vst [vmem:[%s1948_s10 + $0x2c8] sm:$0xff] %v346_v25  ;;  %v348_v26 = vld [vmem:[%s1943_s9 + $0x5a0] sm:$0xff]  ;;  %v350_v27 = vld [vmem:[%s1943_s9 + $0x5a8] sm:$0xff] }
  0x4a   : > { %v352_v28 = vld [vmem:[%s1943_s9 + $0x5c0] sm:$0xff]  ;;  %349 = vst [vmem:[%s1948_s10 + $0x2d0] sm:$0xff] %v348_v26  ;;  %351 = vst [vmem:[%s1948_s10 + $0x2d8] sm:$0xff] %v350_v27  ;;  %v354_v29 = vld [vmem:[%s1943_s9 + $0x5c8] sm:$0xff] }
  0x4b   : > { %353 = vst [vmem:[%s1948_s10 + $0x2e0] sm:$0xff] %v352_v28  ;;  %v356_v30 = vld [vmem:[%s1943_s9 + $0x5e0] sm:$0xff]  ;;  %v358_v31 = vld [vmem:[%s1943_s9 + $0x5e8] sm:$0xff]  ;;  %355 = vst [vmem:[%s1948_s10 + $0x2e8] sm:$0xff] %v354_v29 }
  0x4c   : > { %357 = vst [vmem:[%s1948_s10 + $0x2f0] sm:$0xff] %v356_v30  ;;  %359 = vst [vmem:[%s1948_s10 + $0x2f8] sm:$0xff] %v358_v31  ;;  %v360_v32 = vld [vmem:[%s1943_s9 + $0x600] sm:$0xff]  ;;  %v362_v33 = vld [vmem:[%s1943_s9 + $0x608] sm:$0xff] }
  0x4d   : > { %v364_v34 = vld [vmem:[%s1943_s9 + $0x620] sm:$0xff]  ;;  %361 = vst [vmem:[%s1948_s10 + $0x300] sm:$0xff] %v360_v32  ;;  %363 = vst [vmem:[%s1948_s10 + $0x308] sm:$0xff] %v362_v33  ;;  %v366_v35 = vld [vmem:[%s1943_s9 + $0x628] sm:$0xff] }
  0x4e   : > { %365 = vst [vmem:[%s1948_s10 + $0x310] sm:$0xff] %v364_v34  ;;  %v368_v36 = vld [vmem:[%s1943_s9 + $0x640] sm:$0xff]  ;;  %v370_v37 = vld [vmem:[%s1943_s9 + $0x648] sm:$0xff]  ;;  %367 = vst [vmem:[%s1948_s10 + $0x318] sm:$0xff] %v366_v35 }
  0x4f   : > { %369 = vst [vmem:[%s1948_s10 + $0x320] sm:$0xff] %v368_v36  ;;  %371 = vst [vmem:[%s1948_s10 + $0x328] sm:$0xff] %v370_v37  ;;  %v372_v38 = vld [vmem:[%s1943_s9 + $0x660] sm:$0xff]  ;;  %v374_v39 = vld [vmem:[%s1943_s9 + $0x668] sm:$0xff] }
  0x50   : > { %v376_v40 = vld [vmem:[%s1943_s9 + $0x680] sm:$0xff]  ;;  %373 = vst [vmem:[%s1948_s10 + $0x330] sm:$0xff] %v372_v38  ;;  %375 = vst [vmem:[%s1948_s10 + $0x338] sm:$0xff] %v374_v39  ;;  %v378_v41 = vld [vmem:[%s1943_s9 + $0x688] sm:$0xff] }
  0x51   : > { %377 = vst [vmem:[%s1948_s10 + $0x340] sm:$0xff] %v376_v40  ;;  %v380_v42 = vld [vmem:[%s1943_s9 + $0x6a0] sm:$0xff]  ;;  %v382_v43 = vld [vmem:[%s1943_s9 + $0x6a8] sm:$0xff]  ;;  %379 = vst [vmem:[%s1948_s10 + $0x348] sm:$0xff] %v378_v41 }
  0x52   : > { %381 = vst [vmem:[%s1948_s10 + $0x350] sm:$0xff] %v380_v42  ;;  %383 = vst [vmem:[%s1948_s10 + $0x358] sm:$0xff] %v382_v43 }
  0x53 PF: > { %p1434_p9 = scmp.ge.s32.totalorder %s1855_s18, 1  ;;  %p388_p10 = scmp.lt.s32.totalorder %s1855_s18, 5 }
  0x55   : > { %p389_p11 = pnand %p1434_p9, %p388_p10 }
  0x56   : > { %s395_s11 = sand.u32 (!%p389_p11), 1, %s1831_s12   ;;  %v1731_v44 = vld [vmem:[%s2344_s0 + $0x4] ss:$16 sps:$4 sm:$0xff] (!%p389_p11)   ;;  %v1857_v45 = vmov (!%p389_p11), 0   ;;  %v533_v48 = vld [vmem:[%s2345_s1 + $0x8] sm:$0xff] (!%p389_p11)  ;;  %vm1103_vm0 = vcmask (!%p389_p11), 392192  }
  0x57   : > { %392 = sbr.rel (%p389_p11) target bundleno = 432 (0x1b0), region = 51  ;;  %1632 = vset.pattern.permute.xlu0 (!%p389_p11), %v1857_v45  ;;  %v532_v46 = vld [vmem:[%s2345_s1] sm:$0xff] (!%p389_p11)  ;;  %1139 = vmatprep.mubr.bf16.mxu0 (!%p389_p11), %v1731_v44  ;;  %s1435_s10 = sshll.u32 (!%p389_p11), %s395_s11, 6 }
  0x58   : > { %s1574_s21 = smul.u32 (!%p389_p11), 864, %s395_s11  ;;  %1225 = vmatprep.mubr.bf16.mxu1 (!%p389_p11), %v1731_v44  ;;  %536 = vperm.xlu0 (!%p389_p11), %1632, %v532_v46   ;;  %s2298_s12 = scalar_lea.vmem (!%p389_p11), [#allocation3], %s1435_s10 }
  0x5a   : > { %s2174_s28 = scalar_lea.vmem (!%p389_p11), [#allocation2], %s1574_s21 }
  0x5b   : > { %v1633_v47 = vld [vmem:[%s2174_s28 + $0x4] ss:$16 sps:$4 sm:$0xff] (!%p389_p11)   ;;  %v1635_v49 = vld [vmem:[%s2174_s28 + $0xc] ss:$16 sps:$4 sm:$0xff] (!%p389_p11)   ;;  %v1637_v50 = vld [vmem:[%s2174_s28] ss:$16 sps:$4 sm:$0xff] (!%p389_p11)  }
  0x5c   : > { %1107 = vmatprep.subr.bf16.mxu0 (!%p389_p11), %v1633_v47  ;;  %v1638_v51 = vld [vmem:[%s2174_s28 + $0x8] ss:$16 sps:$4 sm:$0xff] (!%p389_p11)   ;;  %1193 = vmatprep.subr.bf16.mxu1 (!%p389_p11), %v1635_v49  ;;  %v1639_v52 = vld [vmem:[%s2174_s28 + $0x24] ss:$16 sps:$4 sm:$0xff] (!%p389_p11)   ;;  %v1641_v53 = vld [vmem:[%s2174_s28 + $0x2c] ss:$16 sps:$4 sm:$0xff] (!%p389_p11)  }
  0x5d   : > { %1108 = vmatpush1.bf16.msra.mxu0 (!%p389_p11), %v1637_v50  ;;  %1194 = vmatpush1.bf16.msra.mxu1 (!%p389_p11), %v1638_v51  ;;  %v1643_v54 = vld [vmem:[%s2174_s28 + $0x20] ss:$16 sps:$4 sm:$0xff] (!%p389_p11)   ;;  %v1644_v55 = vld [vmem:[%s2174_s28 + $0x28] ss:$16 sps:$4 sm:$0xff] (!%p389_p11)   ;;  %v1645_v56 = vld [vmem:[%s2174_s28 + $0x44] ss:$16 sps:$4 sm:$0xff] (!%p389_p11)  }
  0x5e   : > { %1109 = vmatprep.subr.bf16.mxu0 %v1639_v52  ;;  %541 = vperm.xlu0 %1632, %v533_v48   ;;  %v1647_v57 = vld [vmem:[%s2174_s28 + $0x4c] ss:$16 sps:$4 sm:$0xff]   ;;  %v1649_v58 = vld [vmem:[%s2174_s28 + $0x40] ss:$16 sps:$4 sm:$0xff]   ;;  %v1650_v59 = vld [vmem:[%s2174_s28 + $0x48] ss:$16 sps:$4 sm:$0xff]  }
  0x5f   : > { %1195 = vmatprep.subr.bf16.mxu1 %v1641_v53  ;;  %v1651_v60 = vld [vmem:[%s2174_s28 + $0x64] ss:$16 sps:$4 sm:$0xff]   ;;  %v1653_v61 = vld [vmem:[%s2174_s28 + $0x6c] ss:$16 sps:$4 sm:$0xff]   ;;  %v1655_v62 = vld [vmem:[%s2174_s28 + $0x60] ss:$16 sps:$4 sm:$0xff]  }
  0x60   : > { %v1656_v63 = vld [vmem:[%s2174_s28 + $0x68] ss:$16 sps:$4 sm:$0xff]   ;;  %v1657_v0 = vld [vmem:[%s2174_s28 + $0x84] ss:$16 sps:$4 sm:$0xff]   ;;  %v1659_v1 = vld [vmem:[%s2174_s28 + $0x8c] ss:$16 sps:$4 sm:$0xff]  }
  0x61   : > { %1110 = vmatpush1.bf16.msra.mxu0 %v1643_v54  ;;  %1196 = vmatpush1.bf16.msra.mxu1 %v1644_v55  ;;  %v1661_v2 = vld [vmem:[%s2174_s28 + $0x80] ss:$16 sps:$4 sm:$0xff]   ;;  %v1662_v3 = vld [vmem:[%s2174_s28 + $0x88] ss:$16 sps:$4 sm:$0xff]   ;;  %v1663_v4 = vld [vmem:[%s2174_s28 + $0xa4] ss:$16 sps:$4 sm:$0xff]  }
  0x62   : > { %1111 = vmatprep.subr.bf16.mxu0 %v1645_v56  ;;  %1197 = vmatprep.subr.bf16.mxu1 %v1647_v57  ;;  %v1665_v5 = vld [vmem:[%s2174_s28 + $0xac] ss:$16 sps:$4 sm:$0xff]   ;;  %v1667_v6 = vld [vmem:[%s2174_s28 + $0xa0] ss:$16 sps:$4 sm:$0xff]   ;;  %v1668_v7 = vld [vmem:[%s2174_s28 + $0xa8] ss:$16 sps:$4 sm:$0xff]  }
  0x63   : > { %v1669_v8 = vld [vmem:[%s2174_s28 + $0xc4] ss:$16 sps:$4 sm:$0xff]   ;;  %v1671_v9 = vld [vmem:[%s2174_s28 + $0xcc] ss:$16 sps:$4 sm:$0xff]   ;;  %v1673_v10 = vld [vmem:[%s2174_s28 + $0xc0] ss:$16 sps:$4 sm:$0xff]  }
  0x64   : > { %v1674_v11 = vld [vmem:[%s2174_s28 + $0xc8] ss:$16 sps:$4 sm:$0xff]   ;;  %v1675_v12 = vld [vmem:[%s2174_s28 + $0xe4] ss:$16 sps:$4 sm:$0xff]   ;;  %v1677_v13 = vld [vmem:[%s2174_s28 + $0xec] ss:$16 sps:$4 sm:$0xff]  }
  0x65   : > { %1112 = vmatpush1.bf16.msra.mxu0 %v1649_v58  ;;  %1198 = vmatpush1.bf16.msra.mxu1 %v1650_v59  ;;  %v1679_v14 = vld [vmem:[%s2174_s28 + $0xe0] ss:$16 sps:$4 sm:$0xff]   ;;  %v1680_v15 = vld [vmem:[%s2174_s28 + $0xe8] ss:$16 sps:$4 sm:$0xff]   ;;  %v1681_v16 = vld [vmem:[%s2174_s28 + $0x104] ss:$16 sps:$4 sm:$0xff]  }
  0x66   : > { %1113 = vmatprep.subr.bf16.mxu0 %v1651_v60  ;;  %1199 = vmatprep.subr.bf16.mxu1 %v1653_v61  ;;  %v1683_v17 = vld [vmem:[%s2174_s28 + $0x10c] ss:$16 sps:$4 sm:$0xff]   ;;  %v1685_v18 = vld [vmem:[%s2174_s28 + $0x100] ss:$16 sps:$4 sm:$0xff]   ;;  %v1686_v19 = vld [vmem:[%s2174_s28 + $0x108] ss:$16 sps:$4 sm:$0xff]  }
  0x67   : > { %v1687_v20 = vld [vmem:[%s2174_s28 + $0x124] ss:$16 sps:$4 sm:$0xff]   ;;  %v1689_v21 = vld [vmem:[%s2174_s28 + $0x12c] ss:$16 sps:$4 sm:$0xff]   ;;  %v1691_v22 = vld [vmem:[%s2174_s28 + $0x120] ss:$16 sps:$4 sm:$0xff]  }
  0x68   : > { %v1692_v23 = vld [vmem:[%s2174_s28 + $0x128] ss:$16 sps:$4 sm:$0xff]   ;;  %v1693_v24 = vld [vmem:[%s2174_s28 + $0x144] ss:$16 sps:$4 sm:$0xff]   ;;  %v1695_v25 = vld [vmem:[%s2174_s28 + $0x14c] ss:$16 sps:$4 sm:$0xff]  }
  0x69   : > { %1114 = vmatpush1.bf16.msra.mxu0 %v1655_v62  ;;  %1200 = vmatpush1.bf16.msra.mxu1 %v1656_v63  ;;  %v1697_v26 = vld [vmem:[%s2174_s28 + $0x140] ss:$16 sps:$4 sm:$0xff]   ;;  %v1698_v27 = vld [vmem:[%s2174_s28 + $0x148] ss:$16 sps:$4 sm:$0xff]   ;;  %v1699_v28 = vld [vmem:[%s2174_s28 + $0x164] ss:$16 sps:$4 sm:$0xff]  }
  0x6a   : > { %1115 = vmatprep.subr.bf16.mxu0 %v1657_v0  ;;  %1201 = vmatprep.subr.bf16.mxu1 %v1659_v1  ;;  %v1701_v29 = vld [vmem:[%s2174_s28 + $0x16c] ss:$16 sps:$4 sm:$0xff]   ;;  %v1703_v30 = vld [vmem:[%s2174_s28 + $0x160] ss:$16 sps:$4 sm:$0xff]   ;;  %v1704_v31 = vld [vmem:[%s2174_s28 + $0x168] ss:$16 sps:$4 sm:$0xff]  }
  0x6b   : > { %v1705_v32 = vld [vmem:[%s2174_s28 + $0x184] ss:$16 sps:$4 sm:$0xff]   ;;  %v1707_v33 = vld [vmem:[%s2174_s28 + $0x18c] ss:$16 sps:$4 sm:$0xff]   ;;  %v1709_v34 = vld [vmem:[%s2174_s28 + $0x180] ss:$16 sps:$4 sm:$0xff]  }
  0x6c   : > { %v1710_v35 = vld [vmem:[%s2174_s28 + $0x188] ss:$16 sps:$4 sm:$0xff]   ;;  %v1711_v36 = vld [vmem:[%s2174_s28 + $0x1a4] ss:$16 sps:$4 sm:$0xff]   ;;  %v1713_v37 = vld [vmem:[%s2174_s28 + $0x1ac] ss:$16 sps:$4 sm:$0xff]  }
  0x6d   : > { %1116 = vmatpush1.bf16.msra.mxu0 %v1661_v2  ;;  %1202 = vmatpush1.bf16.msra.mxu1 %v1662_v3  ;;  %v1715_v38 = vld [vmem:[%s2174_s28 + $0x1a0] ss:$16 sps:$4 sm:$0xff]   ;;  %v1716_v39 = vld [vmem:[%s2174_s28 + $0x1a8] ss:$16 sps:$4 sm:$0xff]   ;;  %v1717_v40 = vld [vmem:[%s2174_s28 + $0x1c4] ss:$16 sps:$4 sm:$0xff]  }
  0x6e   : > { %1117 = vmatprep.subr.bf16.mxu0 %v1663_v4  ;;  %1203 = vmatprep.subr.bf16.mxu1 %v1665_v5  ;;  %v1719_v41 = vld [vmem:[%s2174_s28 + $0x1cc] ss:$16 sps:$4 sm:$0xff]   ;;  %v1721_v42 = vld [vmem:[%s2174_s28 + $0x1c0] ss:$16 sps:$4 sm:$0xff]   ;;  %v1722_v43 = vld [vmem:[%s2174_s28 + $0x1c8] ss:$16 sps:$4 sm:$0xff]  }
  0x6f   : > { %v1723_v44 = vld [vmem:[%s2174_s28 + $0x1e4] ss:$16 sps:$4 sm:$0xff]   ;;  %v1725_v45 = vld [vmem:[%s2174_s28 + $0x1ec] ss:$16 sps:$4 sm:$0xff]   ;;  %v1727_v46 = vld [vmem:[%s2174_s28 + $0x1e0] ss:$16 sps:$4 sm:$0xff]  }
  0x70   : > { %v1728_v47 = vld [vmem:[%s2174_s28 + $0x1e8] ss:$16 sps:$4 sm:$0xff]   ;;  %v1734_v48 = vld [vmem:[%s2174_s28 + $0x204] ss:$16 sps:$4 sm:$0xff]   ;;  %v1737_v49 = vld [vmem:[%s2174_s28 + $0x20c] ss:$16 sps:$4 sm:$0xff]  }
  0x71   : > { %1118 = vmatpush1.bf16.msra.mxu0 %v1667_v6  ;;  %1204 = vmatpush1.bf16.msra.mxu1 %v1668_v7  ;;  %v1729_v50 = vld [vmem:[%s2344_s0] ss:$16 sps:$4 sm:$0xff]   ;;  %v1735_v52 = vld [vmem:[%s2174_s28 + $0x208] ss:$16 sps:$4 sm:$0xff]   ;;  %v1740_v53 = vld [vmem:[%s2174_s28 + $0x224] ss:$16 sps:$4 sm:$0xff]  }
  0x72   : > { %1119 = vmatprep.subr.bf16.mxu0 %v1669_v8  ;;  %1205 = vmatprep.subr.bf16.mxu1 %v1671_v9  ;;  %v1732_v51 = vld [vmem:[%s2174_s28 + $0x200] ss:$16 sps:$4 sm:$0xff]   ;;  %v1743_v54 = vld [vmem:[%s2174_s28 + $0x22c] ss:$16 sps:$4 sm:$0xff]   ;;  %v1741_v57 = vld [vmem:[%s2174_s28 + $0x228] ss:$16 sps:$4 sm:$0xff]  }
  0x73   : > { %v1798_v55 = vld [vmem:[%s2344_s0 + $0xc] ss:$16 sps:$4 sm:$0xff]   ;;  %v1738_v56 = vld [vmem:[%s2174_s28 + $0x220] ss:$16 sps:$4 sm:$0xff]   ;;  %v1746_v58 = vld [vmem:[%s2174_s28 + $0x244] ss:$16 sps:$4 sm:$0xff]  }
  0x74   : > { %v1749_v59 = vld [vmem:[%s2174_s28 + $0x24c] ss:$16 sps:$4 sm:$0xff]   ;;  %v1744_v60 = vld [vmem:[%s2174_s28 + $0x240] ss:$16 sps:$4 sm:$0xff]   ;;  %v1747_v61 = vld [vmem:[%s2174_s28 + $0x248] ss:$16 sps:$4 sm:$0xff]  }
  0x75   : > { %1120 = vmatpush1.bf16.msra.mxu0 %v1673_v10  ;;  %1206 = vmatpush1.bf16.msra.mxu1 %v1674_v11  ;;  %v1752_v62 = vld [vmem:[%s2174_s28 + $0x264] ss:$16 sps:$4 sm:$0xff]   ;;  %v1755_v63 = vld [vmem:[%s2174_s28 + $0x26c] ss:$16 sps:$4 sm:$0xff]   ;;  %v1750_v0 = vld [vmem:[%s2174_s28 + $0x260] ss:$16 sps:$4 sm:$0xff]  }
  0x76   : > { %1121 = vmatprep.subr.bf16.mxu0 %v1675_v12  ;;  %1207 = vmatprep.subr.bf16.mxu1 %v1677_v13  ;;  %v1753_v1 = vld [vmem:[%s2174_s28 + $0x268] ss:$16 sps:$4 sm:$0xff]   ;;  %v1758_v2 = vld [vmem:[%s2174_s28 + $0x284] ss:$16 sps:$4 sm:$0xff]   ;;  %v1761_v3 = vld [vmem:[%s2174_s28 + $0x28c] ss:$16 sps:$4 sm:$0xff]  }
  0x77   : > { %v1756_v4 = vld [vmem:[%s2174_s28 + $0x280] ss:$16 sps:$4 sm:$0xff]   ;;  %v1759_v5 = vld [vmem:[%s2174_s28 + $0x288] ss:$16 sps:$4 sm:$0xff]   ;;  %v1764_v6 = vld [vmem:[%s2174_s28 + $0x2a4] ss:$16 sps:$4 sm:$0xff]  }
  0x78   : > { %v1767_v7 = vld [vmem:[%s2174_s28 + $0x2ac] ss:$16 sps:$4 sm:$0xff]   ;;  %v1762_v8 = vld [vmem:[%s2174_s28 + $0x2a0] ss:$16 sps:$4 sm:$0xff]   ;;  %v1765_v9 = vld [vmem:[%s2174_s28 + $0x2a8] ss:$16 sps:$4 sm:$0xff]  }
  0x79   : > { %1122 = vmatpush1.bf16.msra.mxu0 %v1679_v14  ;;  %1208 = vmatpush1.bf16.msra.mxu1 %v1680_v15  ;;  %v1770_v10 = vld [vmem:[%s2174_s28 + $0x2c4] ss:$16 sps:$4 sm:$0xff]   ;;  %v1773_v11 = vld [vmem:[%s2174_s28 + $0x2cc] ss:$16 sps:$4 sm:$0xff]   ;;  %v1768_v12 = vld [vmem:[%s2174_s28 + $0x2c0] ss:$16 sps:$4 sm:$0xff]  }
  0x7a   : > { %1123 = vmatprep.subr.bf16.mxu0 %v1681_v16  ;;  %1209 = vmatprep.subr.bf16.mxu1 %v1683_v17  ;;  %v1771_v13 = vld [vmem:[%s2174_s28 + $0x2c8] ss:$16 sps:$4 sm:$0xff]   ;;  %v1776_v14 = vld [vmem:[%s2174_s28 + $0x2e4] ss:$16 sps:$4 sm:$0xff]   ;;  %v1779_v15 = vld [vmem:[%s2174_s28 + $0x2ec] ss:$16 sps:$4 sm:$0xff]  }
  0x7b   : > { %v1774_v16 = vld [vmem:[%s2174_s28 + $0x2e0] ss:$16 sps:$4 sm:$0xff]   ;;  %v1777_v17 = vld [vmem:[%s2174_s28 + $0x2e8] ss:$16 sps:$4 sm:$0xff]   ;;  %s1551_s11 = sshll.u32 (%p1926_p6), %s1839_s14, 2  ;;  %s1552_s21 = sshll.u32 (%p1926_p6), %s1843_s15, 4 }
  0x7c   : > { %s1320_s22 = sadd.s32 (%p1926_p6), %s1552_s21, %s1551_s11 }
  0x7d   : > { %1124 = vmatpush1.bf16.msra.mxu0 %v1685_v18  ;;  %1210 = vmatpush1.bf16.msra.mxu1 %v1686_v19  ;;  %v1782_v18 = vld [vmem:[%s2174_s28 + $0x304] ss:$16 sps:$4 sm:$0xff]   ;;  %v1785_v19 = vld [vmem:[%s2174_s28 + $0x30c] ss:$16 sps:$4 sm:$0xff]   ;;  %s1553_s23 = sshll.u32 (%p1926_p6), %s1320_s22, 3 }
  0x7e   : > { %1125 = vmatprep.subr.bf16.mxu0 %v1687_v20  ;;  %1211 = vmatprep.subr.bf16.mxu1 %v1689_v21  ;;  %v1780_v20 = vld [vmem:[%s2174_s28 + $0x300] ss:$16 sps:$4 sm:$0xff]   ;;  %v1783_v21 = vld [vmem:[%s2174_s28 + $0x308] ss:$16 sps:$4 sm:$0xff]   ;;  %s1322_s26 = scalar_lea.vmem (%p1926_p6), %s2347_s3, %s1553_s23 }
  0x81   : > { %1126 = vmatpush1.bf16.msra.mxu0 %v1691_v22  ;;  %1212 = vmatpush1.bf16.msra.mxu1 %v1692_v23  ;;  %v1788_v22 = vld [vmem:[%s2174_s28 + $0x324] ss:$16 sps:$4 sm:$0xff]   ;;  %v1791_v23 = vld [vmem:[%s2174_s28 + $0x32c] ss:$16 sps:$4 sm:$0xff]  }
  0x82   : > { %1127 = vmatprep.subr.bf16.mxu0 %v1693_v24  ;;  %1213 = vmatprep.subr.bf16.mxu1 %v1695_v25  ;;  %v1786_v24 = vld [vmem:[%s2174_s28 + $0x320] ss:$16 sps:$4 sm:$0xff]   ;;  %v1789_v25 = vld [vmem:[%s2174_s28 + $0x328] ss:$16 sps:$4 sm:$0xff]  }
  0x85   : > { %1128 = vmatpush1.bf16.msra.mxu0 %v1697_v26  ;;  %1214 = vmatpush1.bf16.msra.mxu1 %v1698_v27  ;;  %v1794_v26 = vld [vmem:[%s2174_s28 + $0x344] ss:$16 sps:$4 sm:$0xff]   ;;  %v1797_v27 = vld [vmem:[%s2174_s28 + $0x34c] ss:$16 sps:$4 sm:$0xff]  }
  0x86   : > { %1129 = vmatprep.subr.bf16.mxu0 %v1699_v28  ;;  %1215 = vmatprep.subr.bf16.mxu1 %v1701_v29  ;;  %v1792_v28 = vld [vmem:[%s2174_s28 + $0x340] ss:$16 sps:$4 sm:$0xff]   ;;  %v1795_v29 = vld [vmem:[%s2174_s28 + $0x348] ss:$16 sps:$4 sm:$0xff]  }
  0x89   : > { %1130 = vmatpush1.bf16.msra.mxu0 %v1703_v30  ;;  %1216 = vmatpush1.bf16.msra.mxu1 %v1704_v31  ;;  %v1800_v30 = vld [vmem:[%s2344_s0 + $0x8] ss:$16 sps:$4 sm:$0xff]  }
  0x8a   : > { %1131 = vmatprep.subr.bf16.mxu0 %v1705_v32  ;;  %1217 = vmatprep.subr.bf16.mxu1 %v1707_v33 }
  0x8d   : > { %1132 = vmatpush1.bf16.msra.mxu0 %v1709_v34  ;;  %1218 = vmatpush1.bf16.msra.mxu1 %v1710_v35 }
  0x8e   : > { %1133 = vmatprep.subr.bf16.mxu0 %v1711_v36  ;;  %1219 = vmatprep.subr.bf16.mxu1 %v1713_v37 }
  0x91   : > { %1134 = vmatpush1.bf16.msra.mxu0 %v1715_v38  ;;  %1220 = vmatpush1.bf16.msra.mxu1 %v1716_v39 }
  0x92   : > { %1135 = vmatprep.subr.bf16.mxu0 %v1717_v40  ;;  %1221 = vmatprep.subr.bf16.mxu1 %v1719_v41 }
  0x95   : > { %1136 = vmatpush1.bf16.msra.mxu0 %v1721_v42  ;;  %1222 = vmatpush1.bf16.msra.mxu1 %v1722_v43 }
  0x96   : > { %1137 = vmatprep.subr.bf16.mxu0 %v1723_v44  ;;  %1223 = vmatprep.subr.bf16.mxu1 %v1725_v45 }
  0x99   : > { %1138 = vmatpush1.bf16.msra.mxu0 %v1727_v46  ;;  %1224 = vmatpush1.bf16.msra.mxu1 %v1728_v47 }
  0x9a   : > { %1150 = vmatprep.subr.bf16.mxu0 %v1734_v48  ;;  %1236 = vmatprep.subr.bf16.mxu1 %v1737_v49 }
  0x9c   : > { %1140 = vmatmul.mubr.bf16.vlgmr.msra.gmra.mrb[0].mxu0 %v1729_v50  ;;  %1226 = vmatmul.mubr.bf16.vlgmr.msra.gmra.mrb[0].mxu1 %v1729_v50 }
  0x9d   : > { %1151 = vmatpush1.bf16.msra.mxu0 %v1732_v51  ;;  %1237 = vmatpush1.bf16.msra.mxu1 %v1735_v52 }
  0x9e   : > { %1152 = vmatprep.subr.bf16.mxu0 %v1740_v53  ;;  %1238 = vmatprep.subr.bf16.mxu1 %v1743_v54 }
  0x9f   : > { %1548 = vmatprep.mubr.msk.bf16.mxu0 %vm1103_vm0, %v1798_v55  ;;  %1549 = vmatprep.mubr.msk.bf16.mxu1 %vm1103_vm0, %v1798_v55 }
  0xa1   : > { %1153 = vmatpush1.bf16.msra.mxu0 %v1738_v56  ;;  %1239 = vmatpush1.bf16.msra.mxu1 %v1741_v57 }
  0xa2   : > { %1154 = vmatprep.subr.bf16.mxu0 %v1746_v58  ;;  %1240 = vmatprep.subr.bf16.mxu1 %v1749_v59 }
  0xa5   : > { %1155 = vmatpush1.bf16.msra.mxu0 %v1744_v60  ;;  %1241 = vmatpush1.bf16.msra.mxu1 %v1747_v61 }
  0xa6   : > { %1156 = vmatprep.subr.bf16.mxu0 %v1752_v62  ;;  %1242 = vmatprep.subr.bf16.mxu1 %v1755_v63 }
  0xa9   : > { %1157 = vmatpush1.bf16.msra.mxu0 %v1750_v0  ;;  %1243 = vmatpush1.bf16.msra.mxu1 %v1753_v1 }
  0xaa   : > { %1158 = vmatprep.subr.bf16.mxu0 %v1758_v2  ;;  %1244 = vmatprep.subr.bf16.mxu1 %v1761_v3 }
  0xad   : > { %1159 = vmatpush1.bf16.msra.mxu0 %v1756_v4  ;;  %1245 = vmatpush1.bf16.msra.mxu1 %v1759_v5 }
  0xae   : > { %1160 = vmatprep.subr.bf16.mxu0 %v1764_v6  ;;  %1246 = vmatprep.subr.bf16.mxu1 %v1767_v7 }
  0xb1   : > { %1161 = vmatpush1.bf16.msra.mxu0 %v1762_v8  ;;  %1247 = vmatpush1.bf16.msra.mxu1 %v1765_v9 }
  0xb2   : > { %1162 = vmatprep.subr.bf16.mxu0 %v1770_v10  ;;  %1248 = vmatprep.subr.bf16.mxu1 %v1773_v11 }
  0xb5   : > { %1163 = vmatpush1.bf16.msra.mxu0 %v1768_v12  ;;  %1249 = vmatpush1.bf16.msra.mxu1 %v1771_v13 }
  0xb6   : > { %1164 = vmatprep.subr.bf16.mxu0 %v1776_v14  ;;  %1250 = vmatprep.subr.bf16.mxu1 %v1779_v15 }
  0xb9   : > { %1165 = vmatpush1.bf16.msra.mxu0 %v1774_v16  ;;  %1251 = vmatpush1.bf16.msra.mxu1 %v1777_v17 }
  0xba   : > { %1166 = vmatprep.subr.bf16.mxu0 %v1782_v18  ;;  %1252 = vmatprep.subr.bf16.mxu1 %v1785_v19 }
  0xbd   : > { %1167 = vmatpush1.bf16.msra.mxu0 %v1780_v20  ;;  %1253 = vmatpush1.bf16.msra.mxu1 %v1783_v21 }
  0xbe   : > { %1168 = vmatprep.subr.bf16.mxu0 %v1788_v22  ;;  %1254 = vmatprep.subr.bf16.mxu1 %v1791_v23 }
  0xc1   : > { %1169 = vmatpush1.bf16.msra.mxu0 %v1786_v24  ;;  %1255 = vmatpush1.bf16.msra.mxu1 %v1789_v25 }
  0xc2   : > { %1170 = vmatprep.subr.bf16.mxu0 %v1794_v26  ;;  %1256 = vmatprep.subr.bf16.mxu1 %v1797_v27 }
  0xc5   : > { %1171 = vmatpush1.bf16.msra.mxu0 %v1792_v28  ;;  %1257 = vmatpush1.bf16.msra.mxu1 %v1795_v29 }
  0xc8   : > { %1183 = vmatmul.mubr.bf16.vlgmr.msra.gmra.mrb[0].mxu0 %v1800_v30  ;;  %1269 = vmatmul.mubr.bf16.vlgmr.msra.gmra.mrb[0].mxu1 %v1800_v30 }
  0xd7   : > { %v537_v31 = vpop.permute.xlu0 %536 }
  0xdd   : > { %v542_v44 = vpop.permute.xlu0 %541 }
 0x19b   : > { %v1184_v32 = vpop.f32.mrb[0].mxu0  ;;  %v1270_v33 = vpop.f32.mrb[0].mxu1 }
 0x19c   : > { %v1556_v34 = vadd.f32 %v1184_v32, %v537_v31  ;;  %v1560_v35 = vadd.f32 %v1270_v33, %v537_v31  ;;  %v1186_v36 = vpop.f32.mrb[1].mxu0  ;;  %v1272_v37 = vpop.f32.mrb[1].mxu1 }
 0x19d   : > { %v1557_v38 = vadd.f32 %v1186_v36, %v537_v31  ;;  %v1561_v39 = vadd.f32 %v1272_v37, %v537_v31  ;;  %v1188_v40 = vpop.f32.mrb[2].mxu0  ;;  %v1274_v41 = vpop.f32.mrb[2].mxu1 }
 0x19e   : > { %vm1279_vm1 = vcmp.gt.f32.partialorder %v1556_v34, 0.0  ;;  %v1287_v42 = vmul.f32 0.2, %v1556_v34  ;;  %vm1281_vm2 = vcmp.gt.f32.partialorder %v1560_v35, 0.0  ;;  %v1289_v43 = vmul.f32 0.2, %v1560_v35 }
 0x19f   : > { %vm1280_vm3 = vcmp.gt.f32.partialorder %v1557_v38, 0.0  ;;  %v1288_v45 = vmul.f32 0.2, %v1557_v38  ;;  %vm1282_vm4 = vcmp.gt.f32.partialorder %v1561_v39, 0.0  ;;  %v1290_v46 = vmul.f32 0.2, %v1561_v39 }
 0x1a0   : > { %v1295_v47 = vsel %vm1279_vm1, %v1556_v34, %v1287_v42  ;;  %v1297_v48 = vsel %vm1281_vm2, %v1560_v35, %v1289_v43  ;;  %v1558_v49 = vadd.f32 %v1188_v40, %v542_v44  ;;  %v1562_v50 = vadd.f32 %v1274_v41, %v542_v44  ;;  %v1190_v51 = vpop.f32.mrb[3].mxu0  ;;  %v1276_v52 = vpop.f32.mrb[3].mxu1 }
 0x1a1   : > { %1303 = vst [vmem:[%s2298_s12] sm:$0xff] %v1295_v47  ;;  %1305 = vst [vmem:[%s2298_s12 + $0x10] sm:$0xff] %v1297_v48  ;;  %v1296_v53 = vsel %vm1280_vm3, %v1557_v38, %v1288_v45  ;;  %v1298_v54 = vsel %vm1282_vm4, %v1561_v39, %v1290_v46  ;;  %v1559_v55 = vadd.f32 %v1190_v51, %v542_v44  ;;  %1317 = sbr.rel (!%p1926_p6) target bundleno = 432 (0x1b0), region = 59 }
 0x1a2   : > { %v1563_v56 = vadd.f32 %v1276_v52, %v542_v44  ;;  %1304 = vst [vmem:[%s2298_s12 + $0x8] sm:$0xff] %v1296_v53  ;;  %1306 = vst [vmem:[%s2298_s12 + $0x18] sm:$0xff] %v1298_v54  ;;  %vm1283_vm5 = vcmp.gt.f32.partialorder %v1558_v49, 0.0  ;;  %v1291_v57 = vmul.f32 0.2, %v1558_v49  ;;  %vm1285_vm6 = vcmp.gt.f32.partialorder %v1562_v50, 0.0 }
 0x1a3   : > { %v1293_v58 = vmul.f32 0.2, %v1562_v50  ;;  %vm1284_vm7 = vcmp.gt.f32.partialorder %v1559_v55, 0.0  ;;  %v1292_v59 = vmul.f32 0.2, %v1559_v55 }
 0x1a4   : > { %vm1286_vm8 = vcmp.gt.f32.partialorder %v1563_v56, 0.0  ;;  %v1294_v60 = vmul.f32 0.2, %v1563_v56  ;;  %v1299_v61 = vsel %vm1283_vm5, %v1558_v49, %v1291_v57 }
 0x1a5   : > { %v1301_v62 = vsel %vm1285_vm6, %v1562_v50, %v1293_v58  ;;  %1307 = vst [vmem:[%s2298_s12 + $0x20] sm:$0xff] %v1299_v61  ;;  %v1300_v63 = vsel %vm1284_vm7, %v1559_v55, %v1292_v59 }
 0x1a6   : > { %1309 = vst [vmem:[%s2298_s12 + $0x30] sm:$0xff] %v1301_v62  ;;  %v1302_v0 = vsel %vm1286_vm8, %v1563_v56, %v1294_v60  ;;  %1308 = vst [vmem:[%s2298_s12 + $0x28] sm:$0xff] %v1300_v63 }
 0x1a7   : > { %1310 = vst [vmem:[%s2298_s12 + $0x38] sm:$0xff] %v1302_v0 }
 0x1a8   : > { %v1335_v1 = vld [vmem:[%s2298_s12] sm:$0xff]  ;;  %v1339_v3 = vld [vmem:[%s2298_s12 + $0x10] sm:$0xff] }
 0x1a9   : > { %v1337_v2 = vld [vmem:[%s2298_s12 + $0x8] sm:$0xff]  ;;  %v1341_v4 = vld [vmem:[%s2298_s12 + $0x18] sm:$0xff]  ;;  %1336 = vst [vmem:[%s1322_s26] sm:$0xff] %v1335_v1  ;;  %1340 = vst [vmem:[%s1322_s26 + $0x10] sm:$0xff] %v1339_v3 }
 0x1aa   : > { %1338 = vst [vmem:[%s1322_s26 + $0x8] sm:$0xff] %v1337_v2  ;;  %1342 = vst [vmem:[%s1322_s26 + $0x18] sm:$0xff] %v1341_v4 }
 0x1ac   : > { %v1343_v5 = vld [vmem:[%s2298_s12 + $0x20] sm:$0xff] }
 0x1ad   : > { %v1345_v6 = vld [vmem:[%s2298_s12 + $0x28] sm:$0xff]  ;;  %v1347_v7 = vld [vmem:[%s2298_s12 + $0x30] sm:$0xff]  ;;  %1344 = vst [vmem:[%s1322_s26 + $0x40] sm:$0xff] %v1343_v5 }
 0x1ae   : > { %v1349_v8 = vld [vmem:[%s2298_s12 + $0x38] sm:$0xff]  ;;  %1346 = vst [vmem:[%s1322_s26 + $0x48] sm:$0xff] %v1345_v6  ;;  %1348 = vst [vmem:[%s1322_s26 + $0x50] sm:$0xff] %v1347_v7 }
 0x1af   : > { %1350 = vst [vmem:[%s1322_s26 + $0x58] sm:$0xff] %v1349_v8 }
 0x1b0 PF: > { %s13_s18 = sadd.s32 1, %s1855_s18   ;;  %s2349_s12 = smov %s1835_s13 }
 0x1b1   : > { %p10_p12 = scmp.ge.s32.totalorder %s13_s18, 6   ;;  %s2350_s13 = smov %s1934_s27 }
 0x1b2   : > { %s2351_s14 = smov %s1847_s16  ;;  %s2352_s15 = smov %s1851_s17 }
 0x1b3   : > { %s2353_s16 = smov %s2356_s19  ;;  %s2354_s17 = smov %s2360_s20 }
 0x1b4   :  { %12 = sbr.rel (!%p10_p12) target bundleno = 4 (0x4), region = 113 }

// kernel: downsample_module_forward.15
= control target key start
LH: loop header
LB: loop body
LE: loop exit
PB: predicated region body
PF: predicated region fallthrough
CT: control target
= control target key end

     0   :  { %s1570_s12 = smov 0   ;;  %s1572_s13 = smov 0   ;;  %s1763_s0 = inlined_call_operand.vmem [shape: bf16[32,768], index: 0, kind: input, shape index: {}]   ;;  %s1764_s1 = inlined_call_operand.vmem [shape: f32[32,1], index: 1, kind: input, shape index: {}]   ;;  %s1765_s2 = inlined_call_operand.vmem [shape: bf16[2,768,256], index: 2, kind: input, shape index: {}]   ;;  %s1766_s3 = inlined_call_operand.vmem [shape: f32[2,32,256], index: 3, kind: output, shape index: {}]  }
   0x1   :  { %s1574_s14 = smov 0  }
   0x2 LB: > { %s25_s15 = sadd.s32 1, %s1543_s13  ;;  %p1164_p0 = scmp.ge.s32.totalorder %s1547_s14, 1  ;;  %s1547_s14 = sphi %s1574_s14, %s13_s14   ;;  %s1543_s13 = sphi %s1572_s13, %s1768_s13   ;;  %s1539_s12 = sphi %s1570_s12, %s1767_s12  }
   0x3   : > { %p27_p1 = scmp.ge.s32.totalorder %s25_s15, 2  ;;  %p158_p2 = scmp.lt.s32.totalorder %s1547_s14, 3 }
   0x5   : > { %s1770_s15 = smov (%p27_p1, %s25_s15), 0  ;;  %p159_p3 = pnand %p1164_p0, %p158_p2 }
   0x6   : > { %p191_p4 = scmp.lt.s32.totalorder (!%p159_p3), %s1539_s12, 1  ;;  %v1461_v0 = vld [vmem:[%s1763_s0 + $0x4] ss:$24 sps:$4 sm:$0xff] (!%p159_p3)   ;;  %v1549_v10 = vmov (!%p159_p3), 0  }
   0x7   : > { %162 = sbr.rel (%p159_p3) target bundleno = 371 (0x173), region = 32  ;;  %v1464_v1 = vld [vmem:[%s1763_s0 + $0xc] ss:$24 sps:$4 sm:$0xff] (!%p159_p3)   ;;  %914 = vmatprep.mubr.bf16.mxu1 (!%p159_p3), %v1461_v0  ;;  %1362 = vset.pattern.permute.xlu1 (!%p159_p3), %v1549_v10 }
   0x8   : > { %967 = vmatprep.mubr.bf16.mxu0 (!%p159_p3), %v1464_v1  ;;  %1361 = vset.pattern.permute.xlu0 (!%p159_p3), %v1549_v10  ;;  %v1507_v10 = vld [vmem:[%s1763_s0 + $0x3c] ss:$24 sps:$4 sm:$0xff] (!%p159_p3)  }
   0xe   : > { %s1772_s12 = smov (!%p191_p4, %s1539_s12), 1 }
   0xf   : > { %s1335_s20 = smul.u32 768, %s1772_s12 }
  0x11   : > { %s1600_s23 = scalar_lea.vmem %s1765_s2, %s1335_s20 }
  0x12   : > { %v1363_v2 = vld [vmem:[%s1600_s23 + $0x4] ss:$8 sps:$4 sm:$0xff]   ;;  %v1367_v4 = vld [vmem:[%s1600_s23] ss:$8 sps:$4 sm:$0xff]   ;;  %v1369_v6 = vld [vmem:[%s1600_s23 + $0x14] ss:$8 sps:$4 sm:$0xff]  }
  0x13   : > { %v1365_v3 = vld [vmem:[%s1600_s23 + $0x104] ss:$8 sps:$4 sm:$0xff]   ;;  %882 = vmatprep.subr.bf16.mxu1 %v1363_v2  ;;  %v1368_v5 = vld [vmem:[%s1600_s23 + $0x100] ss:$8 sps:$4 sm:$0xff]   ;;  %v1371_v7 = vld [vmem:[%s1600_s23 + $0x114] ss:$8 sps:$4 sm:$0xff]  }
  0x14   : > { %935 = vmatprep.subr.bf16.mxu0 %v1365_v3  ;;  %883 = vmatpush1.bf16.msra.mxu1 %v1367_v4  ;;  %v1373_v8 = vld [vmem:[%s1600_s23 + $0x10] ss:$8 sps:$4 sm:$0xff]   ;;  %v1375_v11 = vld [vmem:[%s1600_s23 + $0x24] ss:$8 sps:$4 sm:$0xff]   ;;  %v1379_v13 = vld [vmem:[%s1600_s23 + $0x20] ss:$8 sps:$4 sm:$0xff]  }
  0x15   : > { %936 = vmatpush1.bf16.msra.mxu0 %v1368_v5  ;;  %884 = vmatprep.subr.bf16.mxu1 %v1369_v6  ;;  %v1374_v9 = vld [vmem:[%s1600_s23 + $0x110] ss:$8 sps:$4 sm:$0xff]   ;;  %v1377_v12 = vld [vmem:[%s1600_s23 + $0x124] ss:$8 sps:$4 sm:$0xff]   ;;  %v1380_v14 = vld [vmem:[%s1600_s23 + $0x120] ss:$8 sps:$4 sm:$0xff]  }
  0x16   : > { %937 = vmatprep.subr.bf16.mxu0 %v1371_v7  ;;  %v1381_v15 = vld [vmem:[%s1600_s23 + $0x34] ss:$8 sps:$4 sm:$0xff]   ;;  %v1385_v17 = vld [vmem:[%s1600_s23 + $0x30] ss:$8 sps:$4 sm:$0xff]   ;;  %v1387_v19 = vld [vmem:[%s1600_s23 + $0x44] ss:$8 sps:$4 sm:$0xff]  }
  0x17   : > { %v1383_v16 = vld [vmem:[%s1600_s23 + $0x134] ss:$8 sps:$4 sm:$0xff]   ;;  %v1386_v18 = vld [vmem:[%s1600_s23 + $0x130] ss:$8 sps:$4 sm:$0xff]   ;;  %v1389_v20 = vld [vmem:[%s1600_s23 + $0x144] ss:$8 sps:$4 sm:$0xff]  }
  0x18   : > { %885 = vmatpush1.bf16.msra.mxu1 %v1373_v8  ;;  %v1391_v21 = vld [vmem:[%s1600_s23 + $0x40] ss:$8 sps:$4 sm:$0xff]   ;;  %v1393_v23 = vld [vmem:[%s1600_s23 + $0x54] ss:$8 sps:$4 sm:$0xff]   ;;  %v1397_v25 = vld [vmem:[%s1600_s23 + $0x50] ss:$8 sps:$4 sm:$0xff]  }
  0x19   : > { %938 = vmatpush1.bf16.msra.mxu0 %v1374_v9  ;;  %886 = vmatprep.subr.bf16.mxu1 %v1375_v11  ;;  %v1392_v22 = vld [vmem:[%s1600_s23 + $0x140] ss:$8 sps:$4 sm:$0xff]   ;;  %v1395_v24 = vld [vmem:[%s1600_s23 + $0x154] ss:$8 sps:$4 sm:$0xff]   ;;  %v1398_v26 = vld [vmem:[%s1600_s23 + $0x150] ss:$8 sps:$4 sm:$0xff]  }
  0x1a   : > { %939 = vmatprep.subr.bf16.mxu0 %v1377_v12  ;;  %v1399_v27 = vld [vmem:[%s1600_s23 + $0x64] ss:$8 sps:$4 sm:$0xff]   ;;  %v1403_v29 = vld [vmem:[%s1600_s23 + $0x60] ss:$8 sps:$4 sm:$0xff]   ;;  %v1405_v31 = vld [vmem:[%s1600_s23 + $0x74] ss:$8 sps:$4 sm:$0xff]  }
  0x1b   : > { %v1401_v28 = vld [vmem:[%s1600_s23 + $0x164] ss:$8 sps:$4 sm:$0xff]   ;;  %v1404_v30 = vld [vmem:[%s1600_s23 + $0x160] ss:$8 sps:$4 sm:$0xff]   ;;  %v1407_v32 = vld [vmem:[%s1600_s23 + $0x174] ss:$8 sps:$4 sm:$0xff]  }
  0x1c   : > { %887 = vmatpush1.bf16.msra.mxu1 %v1379_v13  ;;  %v1409_v33 = vld [vmem:[%s1600_s23 + $0x70] ss:$8 sps:$4 sm:$0xff]   ;;  %v1411_v35 = vld [vmem:[%s1600_s23 + $0x84] ss:$8 sps:$4 sm:$0xff]   ;;  %v1415_v37 = vld [vmem:[%s1600_s23 + $0x80] ss:$8 sps:$4 sm:$0xff]  }
  0x1d   : > { %940 = vmatpush1.bf16.msra.mxu0 %v1380_v14  ;;  %888 = vmatprep.subr.bf16.mxu1 %v1381_v15  ;;  %v1410_v34 = vld [vmem:[%s1600_s23 + $0x170] ss:$8 sps:$4 sm:$0xff]   ;;  %v1413_v36 = vld [vmem:[%s1600_s23 + $0x184] ss:$8 sps:$4 sm:$0xff]   ;;  %v1416_v38 = vld [vmem:[%s1600_s23 + $0x180] ss:$8 sps:$4 sm:$0xff]  }
  0x1e   : > { %941 = vmatprep.subr.bf16.mxu0 %v1383_v16  ;;  %v1417_v39 = vld [vmem:[%s1600_s23 + $0x94] ss:$8 sps:$4 sm:$0xff]   ;;  %v1421_v41 = vld [vmem:[%s1600_s23 + $0x90] ss:$8 sps:$4 sm:$0xff]   ;;  %v1423_v43 = vld [vmem:[%s1600_s23 + $0xa4] ss:$8 sps:$4 sm:$0xff]  }
  0x1f   : > { %v1419_v40 = vld [vmem:[%s1600_s23 + $0x194] ss:$8 sps:$4 sm:$0xff]   ;;  %v1422_v42 = vld [vmem:[%s1600_s23 + $0x190] ss:$8 sps:$4 sm:$0xff]   ;;  %v1425_v44 = vld [vmem:[%s1600_s23 + $0x1a4] ss:$8 sps:$4 sm:$0xff]  }
  0x20   : > { %889 = vmatpush1.bf16.msra.mxu1 %v1385_v17  ;;  %v1427_v45 = vld [vmem:[%s1600_s23 + $0xa0] ss:$8 sps:$4 sm:$0xff]   ;;  %v1429_v47 = vld [vmem:[%s1600_s23 + $0xb4] ss:$8 sps:$4 sm:$0xff]   ;;  %v1433_v49 = vld [vmem:[%s1600_s23 + $0xb0] ss:$8 sps:$4 sm:$0xff]  }
  0x21   : > { %942 = vmatpush1.bf16.msra.mxu0 %v1386_v18  ;;  %890 = vmatprep.subr.bf16.mxu1 %v1387_v19  ;;  %v1428_v46 = vld [vmem:[%s1600_s23 + $0x1a0] ss:$8 sps:$4 sm:$0xff]   ;;  %v1431_v48 = vld [vmem:[%s1600_s23 + $0x1b4] ss:$8 sps:$4 sm:$0xff]   ;;  %v1434_v50 = vld [vmem:[%s1600_s23 + $0x1b0] ss:$8 sps:$4 sm:$0xff]  }
  0x22   : > { %943 = vmatprep.subr.bf16.mxu0 %v1389_v20  ;;  %v1435_v51 = vld [vmem:[%s1600_s23 + $0xc4] ss:$8 sps:$4 sm:$0xff]   ;;  %v1439_v53 = vld [vmem:[%s1600_s23 + $0xc0] ss:$8 sps:$4 sm:$0xff]   ;;  %v1441_v55 = vld [vmem:[%s1600_s23 + $0xd4] ss:$8 sps:$4 sm:$0xff]  }
  0x23   : > { %v1437_v52 = vld [vmem:[%s1600_s23 + $0x1c4] ss:$8 sps:$4 sm:$0xff]   ;;  %v1440_v54 = vld [vmem:[%s1600_s23 + $0x1c0] ss:$8 sps:$4 sm:$0xff]   ;;  %v1443_v56 = vld [vmem:[%s1600_s23 + $0x1d4] ss:$8 sps:$4 sm:$0xff]  }
  0x24   : > { %891 = vmatpush1.bf16.msra.mxu1 %v1391_v21  ;;  %v1445_v57 = vld [vmem:[%s1600_s23 + $0xd0] ss:$8 sps:$4 sm:$0xff]   ;;  %v1447_v59 = vld [vmem:[%s1600_s23 + $0xe4] ss:$8 sps:$4 sm:$0xff]   ;;  %v1451_v61 = vld [vmem:[%s1600_s23 + $0xe0] ss:$8 sps:$4 sm:$0xff]  }
  0x25   : > { %944 = vmatpush1.bf16.msra.mxu0 %v1392_v22  ;;  %892 = vmatprep.subr.bf16.mxu1 %v1393_v23  ;;  %v1446_v58 = vld [vmem:[%s1600_s23 + $0x1d0] ss:$8 sps:$4 sm:$0xff]   ;;  %v1449_v60 = vld [vmem:[%s1600_s23 + $0x1e4] ss:$8 sps:$4 sm:$0xff]   ;;  %v1452_v62 = vld [vmem:[%s1600_s23 + $0x1e0] ss:$8 sps:$4 sm:$0xff]  }
  0x26   : > { %945 = vmatprep.subr.bf16.mxu0 %v1395_v24  ;;  %v1453_v63 = vld [vmem:[%s1600_s23 + $0xf4] ss:$8 sps:$4 sm:$0xff]   ;;  %v1457_v1 = vld [vmem:[%s1600_s23 + $0xf0] ss:$8 sps:$4 sm:$0xff]   ;;  %v1467_v3 = vld [vmem:[%s1600_s23 + $0x204] ss:$8 sps:$4 sm:$0xff]  }
  0x27   : > { %v1455_v0 = vld [vmem:[%s1600_s23 + $0x1f4] ss:$8 sps:$4 sm:$0xff]   ;;  %v1458_v2 = vld [vmem:[%s1600_s23 + $0x1f0] ss:$8 sps:$4 sm:$0xff]   ;;  %v1462_v5 = vld [vmem:[%s1763_s0 + $0x8] ss:$24 sps:$4 sm:$0xff]  }
  0x28   : > { %893 = vmatpush1.bf16.msra.mxu1 %v1397_v25  ;;  %v1459_v4 = vld [vmem:[%s1763_s0] ss:$24 sps:$4 sm:$0xff]   ;;  %v1470_v7 = vld [vmem:[%s1600_s23 + $0x214] ss:$8 sps:$4 sm:$0xff]   ;;  %v319_v12 = vld [vmem:[%s1764_s1 + $0x8] sm:$0xff] }
  0x29   : > { %946 = vmatpush1.bf16.msra.mxu0 %v1398_v26  ;;  %894 = vmatprep.subr.bf16.mxu1 %v1399_v27  ;;  %v1465_v6 = vld [vmem:[%s1600_s23 + $0x200] ss:$8 sps:$4 sm:$0xff]   ;;  %v1504_v9 = vld [vmem:[%s1763_s0 + $0x34] ss:$24 sps:$4 sm:$0xff]   ;;  %v1468_v11 = vld [vmem:[%s1600_s23 + $0x210] ss:$8 sps:$4 sm:$0xff]  }
  0x2a   : > { %947 = vmatprep.subr.bf16.mxu0 %v1401_v28  ;;  %v318_v8 = vld [vmem:[%s1764_s1] sm:$0xff]  ;;  %v320_v13 = vld [vmem:[%s1764_s1 + $0x10] sm:$0xff]  ;;  %v321_v22 = vld [vmem:[%s1764_s1 + $0x18] sm:$0xff] }
  0x2b   : > { %324 = vperm.xlu1 %1362, %v318_v8   ;;  %v1473_v14 = vld [vmem:[%s1600_s23 + $0x224] ss:$8 sps:$4 sm:$0xff]   ;;  %v1506_v15 = vld [vmem:[%s1763_s0 + $0x30] ss:$24 sps:$4 sm:$0xff]   ;;  %334 = vperm.xlu0 %1361, %v320_v13   ;;  %v1476_v18 = vld [vmem:[%s1600_s23 + $0x234] ss:$8 sps:$4 sm:$0xff]  }
  0x2c   : > { %895 = vmatpush1.bf16.msra.mxu1 %v1403_v29  ;;  %v1512_v16 = vld [vmem:[%s1763_s0 + $0x38] ss:$24 sps:$4 sm:$0xff]   ;;  %v1471_v17 = vld [vmem:[%s1600_s23 + $0x220] ss:$8 sps:$4 sm:$0xff]   ;;  %v1521_v19 = vld [vmem:[%s1763_s0 + $0x14] ss:$24 sps:$4 sm:$0xff]  }
  0x2d   : > { %948 = vmatpush1.bf16.msra.mxu0 %v1404_v30  ;;  %896 = vmatprep.subr.bf16.mxu1 %v1405_v31  ;;  %v1524_v20 = vld [vmem:[%s1763_s0 + $0x44] ss:$24 sps:$4 sm:$0xff]   ;;  %v1474_v21 = vld [vmem:[%s1600_s23 + $0x230] ss:$8 sps:$4 sm:$0xff]   ;;  %v1477_v24 = vld [vmem:[%s1600_s23 + $0x240] ss:$8 sps:$4 sm:$0xff]  }
  0x2e   : > { %949 = vmatprep.subr.bf16.mxu0 %v1407_v32  ;;  %v1479_v23 = vld [vmem:[%s1600_s23 + $0x244] ss:$8 sps:$4 sm:$0xff]   ;;  %v1482_v25 = vld [vmem:[%s1600_s23 + $0x254] ss:$8 sps:$4 sm:$0xff]   ;;  %v1480_v26 = vld [vmem:[%s1600_s23 + $0x250] ss:$8 sps:$4 sm:$0xff]  }
  0x2f   : > { %329 = vperm.xlu1 %1362, %v319_v12   ;;  %339 = vperm.xlu0 %1361, %v321_v22   ;;  %v1485_v27 = vld [vmem:[%s1600_s23 + $0x264] ss:$8 sps:$4 sm:$0xff]   ;;  %v1483_v28 = vld [vmem:[%s1600_s23 + $0x260] ss:$8 sps:$4 sm:$0xff]   ;;  %v1488_v29 = vld [vmem:[%s1600_s23 + $0x274] ss:$8 sps:$4 sm:$0xff]  }
  0x30   : > { %897 = vmatpush1.bf16.msra.mxu1 %v1409_v33  ;;  %v1486_v30 = vld [vmem:[%s1600_s23 + $0x270] ss:$8 sps:$4 sm:$0xff]   ;;  %v1491_v31 = vld [vmem:[%s1600_s23 + $0x284] ss:$8 sps:$4 sm:$0xff]   ;;  %v1489_v32 = vld [vmem:[%s1600_s23 + $0x280] ss:$8 sps:$4 sm:$0xff]  }
  0x31   : > { %950 = vmatpush1.bf16.msra.mxu0 %v1410_v34  ;;  %898 = vmatprep.subr.bf16.mxu1 %v1411_v35  ;;  %v1494_v33 = vld [vmem:[%s1600_s23 + $0x294] ss:$8 sps:$4 sm:$0xff]   ;;  %v1492_v34 = vld [vmem:[%s1600_s23 + $0x290] ss:$8 sps:$4 sm:$0xff]   ;;  %v1497_v35 = vld [vmem:[%s1600_s23 + $0x2a4] ss:$8 sps:$4 sm:$0xff]  }
  0x32   : > { %951 = vmatprep.subr.bf16.mxu0 %v1413_v36  ;;  %v1495_v36 = vld [vmem:[%s1600_s23 + $0x2a0] ss:$8 sps:$4 sm:$0xff]  }
  0x34   : > { %899 = vmatpush1.bf16.msra.mxu1 %v1415_v37  ;;  %v1500_v37 = vld [vmem:[%s1600_s23 + $0x2b4] ss:$8 sps:$4 sm:$0xff]  }
  0x35   : > { %952 = vmatpush1.bf16.msra.mxu0 %v1416_v38  ;;  %900 = vmatprep.subr.bf16.mxu1 %v1417_v39  ;;  %v1498_v38 = vld [vmem:[%s1600_s23 + $0x2b0] ss:$8 sps:$4 sm:$0xff]   ;;  %v1503_v39 = vld [vmem:[%s1600_s23 + $0x2c4] ss:$8 sps:$4 sm:$0xff]  }
  0x36   : > { %953 = vmatprep.subr.bf16.mxu0 %v1419_v40  ;;  %v1501_v40 = vld [vmem:[%s1600_s23 + $0x2c0] ss:$8 sps:$4 sm:$0xff]  }
  0x38   : > { %901 = vmatpush1.bf16.msra.mxu1 %v1421_v41  ;;  %v1511_v41 = vld [vmem:[%s1600_s23 + $0x2d4] ss:$8 sps:$4 sm:$0xff]  }
  0x39   : > { %954 = vmatpush1.bf16.msra.mxu0 %v1422_v42  ;;  %902 = vmatprep.subr.bf16.mxu1 %v1423_v43  ;;  %v1509_v42 = vld [vmem:[%s1600_s23 + $0x2d0] ss:$8 sps:$4 sm:$0xff]   ;;  %v1515_v43 = vld [vmem:[%s1600_s23 + $0x2e4] ss:$8 sps:$4 sm:$0xff]  }
  0x3a   : > { %955 = vmatprep.subr.bf16.mxu0 %v1425_v44  ;;  %v1513_v44 = vld [vmem:[%s1600_s23 + $0x2e0] ss:$8 sps:$4 sm:$0xff]  }
  0x3c   : > { %903 = vmatpush1.bf16.msra.mxu1 %v1427_v45  ;;  %v1518_v45 = vld [vmem:[%s1600_s23 + $0x2f4] ss:$8 sps:$4 sm:$0xff]  }
  0x3d   : > { %956 = vmatpush1.bf16.msra.mxu0 %v1428_v46  ;;  %904 = vmatprep.subr.bf16.mxu1 %v1429_v47  ;;  %v1516_v46 = vld [vmem:[%s1600_s23 + $0x2f0] ss:$8 sps:$4 sm:$0xff]   ;;  %s1278_s23 = sshll.u32 %s1772_s12, 6 }
  0x3e   : > { %957 = vmatprep.subr.bf16.mxu0 %v1431_v48  ;;  %v1519_v47 = vld [vmem:[%s1763_s0 + $0x10] ss:$24 sps:$4 sm:$0xff]   ;;  %v1522_v48 = vld [vmem:[%s1763_s0 + $0x40] ss:$24 sps:$4 sm:$0xff]   ;;  %s1744_s5 = scalar_lea.vmem %s1766_s3, %s1278_s23 }
  0x40   : > { %905 = vmatpush1.bf16.msra.mxu1 %v1433_v49 }
  0x41   : > { %958 = vmatpush1.bf16.msra.mxu0 %v1434_v50  ;;  %906 = vmatprep.subr.bf16.mxu1 %v1435_v51 }
  0x42   : > { %959 = vmatprep.subr.bf16.mxu0 %v1437_v52 }
  0x44   : > { %907 = vmatpush1.bf16.msra.mxu1 %v1439_v53 }
  0x45   : > { %960 = vmatpush1.bf16.msra.mxu0 %v1440_v54  ;;  %908 = vmatprep.subr.bf16.mxu1 %v1441_v55 }
  0x46   : > { %961 = vmatprep.subr.bf16.mxu0 %v1443_v56 }
  0x48   : > { %909 = vmatpush1.bf16.msra.mxu1 %v1445_v57 }
  0x49   : > { %962 = vmatpush1.bf16.msra.mxu0 %v1446_v58  ;;  %910 = vmatprep.subr.bf16.mxu1 %v1447_v59 }
  0x4a   : > { %963 = vmatprep.subr.bf16.mxu0 %v1449_v60 }
  0x4c   : > { %911 = vmatpush1.bf16.msra.mxu1 %v1451_v61 }
  0x4d   : > { %964 = vmatpush1.bf16.msra.mxu0 %v1452_v62  ;;  %912 = vmatprep.subr.bf16.mxu1 %v1453_v63 }
  0x4e   : > { %965 = vmatprep.subr.bf16.mxu0 %v1455_v0 }
  0x50   : > { %913 = vmatpush1.bf16.msra.mxu1 %v1457_v1 }
  0x51   : > { %966 = vmatpush1.bf16.msra.mxu0 %v1458_v2  ;;  %1279 = vmatprep.subr.bf16.mxu1 %v1467_v3 }
  0x52   : > { %988 = vmatprep.subr.bf16.mxu0 %v1467_v3 }
  0x53   : > { %915 = vmatmul.mubr.bf16.vlgmr.msra.gmra.mrb[0].mxu1 %v1459_v4 }
  0x54   : > { %968 = vmatmul.mubr.bf16.vlgmr.msra.gmra.mrb[0].mxu0 %v1462_v5  ;;  %1295 = vmatpush1.bf16.msra.mxu1 %v1465_v6 }
  0x55   : > { %989 = vmatpush1.bf16.msra.mxu0 %v1465_v6  ;;  %1280 = vmatprep.subr.bf16.mxu1 %v1470_v7 }
  0x56   : > { %990 = vmatprep.subr.bf16.mxu0 %v1470_v7  ;;  %924 = vmatprep.mubr.bf16.mxu1 %v1504_v9 }
  0x57   : > { %977 = vmatprep.mubr.bf16.mxu0 %v1507_v10 }
  0x58   : > { %1296 = vmatpush1.bf16.msra.mxu1 %v1468_v11 }
  0x59   : > { %991 = vmatpush1.bf16.msra.mxu0 %v1468_v11  ;;  %1281 = vmatprep.subr.bf16.mxu1 %v1473_v14 }
  0x5a   : > { %992 = vmatprep.subr.bf16.mxu0 %v1473_v14 }
  0x5b   : > { %925 = vmatmul.mubr.bf16.gmra.mrb[4].mxu1 %v1506_v15 }
  0x5c   : > { %978 = vmatmul.mubr.bf16.gmra.mrb[4].mxu0 %v1512_v16  ;;  %1297 = vmatpush1.bf16.msra.mxu1 %v1471_v17 }
  0x5d   : > { %993 = vmatpush1.bf16.msra.mxu0 %v1471_v17  ;;  %1282 = vmatprep.subr.bf16.mxu1 %v1476_v18 }
  0x5e   : > { %994 = vmatprep.subr.bf16.mxu0 %v1476_v18  ;;  %1020 = vmatprep.mubr.bf16.mxu0 %v1521_v19 }
  0x5f   : > { %1030 = vmatprep.mubr.bf16.mxu1 %v1524_v20 }
  0x60   : > { %1298 = vmatpush1.bf16.msra.mxu1 %v1474_v21 }
  0x61   : > { %995 = vmatpush1.bf16.msra.mxu0 %v1474_v21  ;;  %1283 = vmatprep.subr.bf16.mxu1 %v1479_v23 }
  0x62   : > { %996 = vmatprep.subr.bf16.mxu0 %v1479_v23 }
  0x64   : > { %1299 = vmatpush1.bf16.msra.mxu1 %v1477_v24 }
  0x65   : > { %997 = vmatpush1.bf16.msra.mxu0 %v1477_v24  ;;  %1284 = vmatprep.subr.bf16.mxu1 %v1482_v25 }
  0x66   : > { %998 = vmatprep.subr.bf16.mxu0 %v1482_v25 }
  0x68   : > { %1300 = vmatpush1.bf16.msra.mxu1 %v1480_v26 }
  0x69   : > { %999 = vmatpush1.bf16.msra.mxu0 %v1480_v26  ;;  %1285 = vmatprep.subr.bf16.mxu1 %v1485_v27 }
  0x6a   : > { %1000 = vmatprep.subr.bf16.mxu0 %v1485_v27 }
  0x6c   : > { %1301 = vmatpush1.bf16.msra.mxu1 %v1483_v28 }
  0x6d   : > { %1001 = vmatpush1.bf16.msra.mxu0 %v1483_v28  ;;  %1286 = vmatprep.subr.bf16.mxu1 %v1488_v29 }
  0x6e   : > { %1002 = vmatprep.subr.bf16.mxu0 %v1488_v29 }
  0x70   : > { %1302 = vmatpush1.bf16.msra.mxu1 %v1486_v30 }
  0x71   : > { %1003 = vmatpush1.bf16.msra.mxu0 %v1486_v30  ;;  %1287 = vmatprep.subr.bf16.mxu1 %v1491_v31 }
  0x72   : > { %1004 = vmatprep.subr.bf16.mxu0 %v1491_v31 }
  0x74   : > { %1303 = vmatpush1.bf16.msra.mxu1 %v1489_v32 }
  0x75   : > { %1005 = vmatpush1.bf16.msra.mxu0 %v1489_v32  ;;  %1288 = vmatprep.subr.bf16.mxu1 %v1494_v33 }
  0x76   : > { %1006 = vmatprep.subr.bf16.mxu0 %v1494_v33 }
  0x78   : > { %1304 = vmatpush1.bf16.msra.mxu1 %v1492_v34 }
  0x79   : > { %1007 = vmatpush1.bf16.msra.mxu0 %v1492_v34  ;;  %1289 = vmatprep.subr.bf16.mxu1 %v1497_v35 }
  0x7a   : > { %1008 = vmatprep.subr.bf16.mxu0 %v1497_v35 }
  0x7c   : > { %1305 = vmatpush1.bf16.msra.mxu1 %v1495_v36 }
  0x7d   : > { %1009 = vmatpush1.bf16.msra.mxu0 %v1495_v36  ;;  %1290 = vmatprep.subr.bf16.mxu1 %v1500_v37 }
  0x7e   : > { %1010 = vmatprep.subr.bf16.mxu0 %v1500_v37 }
  0x80   : > { %1306 = vmatpush1.bf16.msra.mxu1 %v1498_v38 }
  0x81   : > { %1011 = vmatpush1.bf16.msra.mxu0 %v1498_v38  ;;  %1291 = vmatprep.subr.bf16.mxu1 %v1503_v39 }
  0x82   : > { %1012 = vmatprep.subr.bf16.mxu0 %v1503_v39 }
  0x84   : > { %1307 = vmatpush1.bf16.msra.mxu1 %v1501_v40 }
  0x85   : > { %1013 = vmatpush1.bf16.msra.mxu0 %v1501_v40  ;;  %1292 = vmatprep.subr.bf16.mxu1 %v1511_v41 }
  0x86   : > { %1014 = vmatprep.subr.bf16.mxu0 %v1511_v41 }
  0x88   : > { %1308 = vmatpush1.bf16.msra.mxu1 %v1509_v42 }
  0x89   : > { %1015 = vmatpush1.bf16.msra.mxu0 %v1509_v42  ;;  %1293 = vmatprep.subr.bf16.mxu1 %v1515_v43 }
  0x8a   : > { %1016 = vmatprep.subr.bf16.mxu0 %v1515_v43 }
  0x8c   : > { %1309 = vmatpush1.bf16.msra.mxu1 %v1513_v44 }
  0x8d   : > { %1017 = vmatpush1.bf16.msra.mxu0 %v1513_v44  ;;  %1294 = vmatprep.subr.bf16.mxu1 %v1518_v45 }
  0x8e   : > { %1018 = vmatprep.subr.bf16.mxu0 %v1518_v45 }
  0x90   : > { %1310 = vmatpush1.bf16.msra.mxu1 %v1516_v46 }
  0x91   : > { %1019 = vmatpush1.bf16.msra.mxu0 %v1516_v46 }
  0x93   : > { %1031 = vmatmul.mubr.bf16.vlgmr.msra.gmra.mrb[8].mxu1 %v1522_v48 }
  0x94   : > { %1021 = vmatmul.mubr.bf16.vlgmr.msra.gmra.mrb[0].mxu0 %v1519_v47 }
  0xaa   : > { %v335_v51 = vpop.permute.xlu0 %334  ;;  %v325_v7 = vpop.permute.xlu1 %324 }
  0xae   : > { %v340_v54 = vpop.permute.xlu0 %339  ;;  %v330_v9 = vpop.permute.xlu1 %329 }
 0x126   : > { %v916_v49 = vpop.f32.mrb[0].mxu1 }
 0x127   : > { %v918_v50 = vpop.f32.mrb[1].mxu1  ;;  %v917_v8 = vadd.f32 %v916_v49, %v325_v7 }
 0x128   : > { %v920_v52 = vpop.f32.mrb[2].mxu1  ;;  %v919_v10 = vadd.f32 %v918_v50, %v325_v7 }
 0x129   : > { %v922_v53 = vpop.f32.mrb[3].mxu1  ;;  %v921_v17 = vadd.f32 %v920_v52, %v330_v9 }
 0x12a   : > { %v923_v18 = vadd.f32 %v922_v53, %v330_v9 }
 0x12e   : > { %v926_v55 = vpop.f32.mrb[4].mxu1 }
 0x12f   : > { %v979_v56 = vpop.f32.mrb[4].mxu0  ;;  %v927_v57 = vadd.f32 %v926_v55, %v335_v51  ;;  %v928_v58 = vpop.f32.mrb[5].mxu1 }
 0x130   : > { %v981_v59 = vpop.f32.mrb[5].mxu0  ;;  %v929_v60 = vadd.f32 %v928_v58, %v335_v51  ;;  %v930_v61 = vpop.f32.mrb[6].mxu1 }
 0x131   : > { %v983_v62 = vpop.f32.mrb[6].mxu0  ;;  %v980_v63 = vadd.f32 %v979_v56, %v927_v57  ;;  %v931_v0 = vadd.f32 %v930_v61, %v340_v54  ;;  %v932_v1 = vpop.f32.mrb[7].mxu1 }
 0x132   : > { %v985_v2 = vpop.f32.mrb[7].mxu0  ;;  %v933_v3 = vadd.f32 %v932_v1, %v340_v54  ;;  %v982_v4 = vadd.f32 %v981_v59, %v929_v60 }
 0x133   : > { %v984_v5 = vadd.f32 %v983_v62, %v931_v0 }
 0x134   : > { %v986_v6 = vadd.f32 %v985_v2, %v933_v3 }
 0x166   : > { %v1032_v12 = vpop.f32.mrb[8].mxu1 }
 0x167   : > { %v1022_v11 = vpop.f32.mrb[0].mxu0  ;;  %v1033_v14 = vadd.f32 %v1032_v12, %v980_v63  ;;  %v1034_v16 = vpop.f32.mrb[9].mxu1 }
 0x168   : > { %v1312_v13 = vadd.f32 %v1022_v11, %v917_v8  ;;  %v1024_v15 = vpop.f32.mrb[1].mxu0  ;;  %v1035_v20 = vadd.f32 %v1034_v16, %v982_v4  ;;  %v1036_v22 = vpop.f32.mrb[10].mxu1 }
 0x169   : > { %v1314_v19 = vadd.f32 %v1024_v15, %v919_v10  ;;  %v1026_v21 = vpop.f32.mrb[2].mxu0  ;;  %vm1045_vm1 = vcmp.gt.f32.partialorder %v1033_v14, 0.0  ;;  %v1053_v24 = vmul.f32 0.2, %v1033_v14  ;;  %v1037_v30 = vadd.f32 %v1036_v22, %v984_v5  ;;  %v1038_v32 = vpop.f32.mrb[11].mxu1 }
 0x16a   : > { %vm1041_vm0 = vcmp.gt.f32.partialorder %v1312_v13, 0.0  ;;  %v1049_v23 = vmul.f32 0.2, %v1312_v13  ;;  %vm1046_vm3 = vcmp.gt.f32.partialorder %v1035_v20, 0.0  ;;  %v1054_v26 = vmul.f32 0.2, %v1035_v20 }
 0x16b   : > { %vm1042_vm2 = vcmp.gt.f32.partialorder %v1314_v19, 0.0  ;;  %v1050_v25 = vmul.f32 0.2, %v1314_v19  ;;  %v1061_v28 = vsel %vm1045_vm1, %v1033_v14, %v1053_v24  ;;  %v1316_v29 = vadd.f32 %v1026_v21, %v921_v17  ;;  %v1028_v31 = vpop.f32.mrb[3].mxu0 }
 0x16c   : > { %v1057_v27 = vsel %vm1041_vm0, %v1312_v13, %v1049_v23  ;;  %1069 = vst [vmem:[%s1744_s5 + $0x20] sm:$0xff] %v1061_v28  ;;  %v1062_v34 = vsel %vm1046_vm3, %v1035_v20, %v1054_v26  ;;  %v1318_v35 = vadd.f32 %v1028_v31, %v923_v18  ;;  %v1039_v36 = vadd.f32 %v1038_v32, %v986_v6 }
 0x16d   : > { %1065 = vst [vmem:[%s1744_s5] sm:$0xff] %v1057_v27  ;;  %v1058_v33 = vsel %vm1042_vm2, %v1314_v19, %v1050_v25  ;;  %1070 = vst [vmem:[%s1744_s5 + $0x28] sm:$0xff] %v1062_v34  ;;  %vm1043_vm4 = vcmp.gt.f32.partialorder %v1316_v29, 0.0  ;;  %v1051_v37 = vmul.f32 0.2, %v1316_v29  ;;  %vm1047_vm5 = vcmp.gt.f32.partialorder %v1037_v30, 0.0 }
 0x16e   : > { %1066 = vst [vmem:[%s1744_s5 + $0x8] sm:$0xff] %v1058_v33  ;;  %v1055_v38 = vmul.f32 0.2, %v1037_v30  ;;  %vm1044_vm6 = vcmp.gt.f32.partialorder %v1318_v35, 0.0  ;;  %v1052_v39 = vmul.f32 0.2, %v1318_v35 }
 0x16f   : > { %vm1048_vm7 = vcmp.gt.f32.partialorder %v1039_v36, 0.0  ;;  %v1056_v40 = vmul.f32 0.2, %v1039_v36  ;;  %v1059_v41 = vsel %vm1043_vm4, %v1316_v29, %v1051_v37 }
 0x170   : > { %v1063_v42 = vsel %vm1047_vm5, %v1037_v30, %v1055_v38  ;;  %1067 = vst [vmem:[%s1744_s5 + $0x10] sm:$0xff] %v1059_v41  ;;  %v1060_v43 = vsel %vm1044_vm6, %v1318_v35, %v1052_v39 }
 0x171   : > { %1071 = vst [vmem:[%s1744_s5 + $0x30] sm:$0xff] %v1063_v42  ;;  %v1064_v44 = vsel %vm1048_vm7, %v1039_v36, %v1056_v40  ;;  %1068 = vst [vmem:[%s1744_s5 + $0x18] sm:$0xff] %v1060_v43 }
 0x172   : > { %1072 = vst [vmem:[%s1744_s5 + $0x38] sm:$0xff] %v1064_v44 }
 0x173 PF: > { %s13_s14 = sadd.s32 1, %s1547_s14   ;;  %s1767_s12 = smov %s1543_s13 }
 0x174   : > { %p10_p5 = scmp.ge.s32.totalorder %s13_s14, 4   ;;  %s1768_s13 = smov %s1770_s15 }
 0x176   :  { %12 = sbr.rel (!%p10_p5) target bundleno = 2 (0x2), region = 62 }

// kernel: downsample_module_forward.16
= control target key start
LH: loop header
LB: loop body
LE: loop exit
PB: predicated region body
PF: predicated region fallthrough
CT: control target
= control target key end

     0   :  { %s1729_s12 = smov 0   ;;  %s1731_s13 = smov 0   ;;  %s1946_s0 = inlined_call_operand.vmem [shape: bf16[32,864], index: 0, kind: input, shape index: {}]   ;;  %s1947_s1 = inlined_call_operand.vmem [shape: f32[32,1], index: 1, kind: input, shape index: {}]   ;;  %s1948_s2 = inlined_call_operand.vmem [shape: bf16[2,864,256], index: 2, kind: input, shape index: {}]   ;;  %s1949_s3 = inlined_call_operand.vmem [shape: f32[2,32,256], index: 3, kind: output, shape index: {}]  }
   0x1   :  { %s1733_s14 = smov 0  }
   0x2 LB: > { %s25_s15 = sadd.s32 1, %s1702_s13  ;;  %p1311_p0 = scmp.ge.s32.totalorder %s1706_s14, 1  ;;  %s1706_s14 = sphi %s1733_s14, %s13_s14   ;;  %s1702_s13 = sphi %s1731_s13, %s1951_s13   ;;  %s1698_s12 = sphi %s1729_s12, %s1950_s12  }
   0x3   : > { %p27_p1 = scmp.ge.s32.totalorder %s25_s15, 2  ;;  %p158_p2 = scmp.lt.s32.totalorder %s1706_s14, 3 }
   0x5   : > { %s1953_s15 = smov (%p27_p1, %s25_s15), 0  ;;  %p159_p3 = pnand %p1311_p0, %p158_p2 }
   0x6   : > { %p191_p4 = scmp.lt.s32.totalorder (!%p159_p3), %s1698_s12, 1  ;;  %v1588_v0 = vld [vmem:[%s1946_s0 + $0x4] ss:$28 sps:$4 sm:$0xff] (!%p159_p3)   ;;  %v1708_v1 = vmov (!%p159_p3), 0   ;;  %v1618_v2 = vld [vmem:[%s1946_s0 + $0x14] ss:$28 sps:$4 sm:$0xff] (!%p159_p3)  }
   0x7   : > { %162 = sbr.rel (%p159_p3) target bundleno = 378 (0x17a), region = 32  ;;  %1500 = vset.pattern.permute.xlu0 (!%p159_p3), %v1708_v1  ;;  %1501 = vset.pattern.permute.xlu1 (!%p159_p3), %v1708_v1  ;;  %vm969_vm0 = vcmask (!%p159_p3), 785408  }
   0x8   : > { %1008 = vmatprep.mubr.bf16.mxu1 (!%p159_p3), %v1588_v0  ;;  %1114 = vmatprep.mubr.bf16.mxu0 (!%p159_p3), %v1618_v2  ;;  %v1586_v2 = vld [vmem:[%s1946_s0] ss:$28 sps:$4 sm:$0xff] (!%p159_p3)  }
   0xe   : > { %s1955_s12 = smov (!%p191_p4, %s1698_s12), 1 }
   0xf   : > { %s1474_s20 = smul.u32 864, %s1955_s12 }
  0x11   : > { %s1761_s23 = scalar_lea.vmem %s1948_s2, %s1474_s20 }
  0x12   : > { %v1502_v3 = vld [vmem:[%s1761_s23 + $0x4] ss:$8 sps:$4 sm:$0xff]   ;;  %v1504_v4 = vld [vmem:[%s1761_s23] ss:$8 sps:$4 sm:$0xff]   ;;  %v1505_v5 = vld [vmem:[%s1761_s23 + $0x14] ss:$8 sps:$4 sm:$0xff]  }
  0x13   : > { %976 = vmatprep.subr.bf16.mxu1 %v1502_v3  ;;  %v1507_v6 = vld [vmem:[%s1761_s23 + $0x10] ss:$8 sps:$4 sm:$0xff]   ;;  %v1508_v7 = vld [vmem:[%s1761_s23 + $0x24] ss:$8 sps:$4 sm:$0xff]   ;;  %v1510_v8 = vld [vmem:[%s1761_s23 + $0x20] ss:$8 sps:$4 sm:$0xff]  }
  0x14   : > { %977 = vmatpush1.bf16.msra.mxu1 %v1504_v4  ;;  %v1516_v9 = vld [vmem:[%s1761_s23 + $0x204] ss:$8 sps:$4 sm:$0xff]   ;;  %v1519_v10 = vld [vmem:[%s1761_s23 + $0x200] ss:$8 sps:$4 sm:$0xff]   ;;  %v1511_v11 = vld [vmem:[%s1761_s23 + $0x34] ss:$8 sps:$4 sm:$0xff]  }
  0x15   : > { %978 = vmatprep.subr.bf16.mxu1 %v1505_v5  ;;  %1082 = vmatprep.subr.bf16.mxu0 %v1516_v9  ;;  %v1522_v12 = vld [vmem:[%s1761_s23 + $0x214] ss:$8 sps:$4 sm:$0xff]   ;;  %v1525_v13 = vld [vmem:[%s1761_s23 + $0x210] ss:$8 sps:$4 sm:$0xff]   ;;  %v1514_v15 = vld [vmem:[%s1761_s23 + $0x44] ss:$8 sps:$4 sm:$0xff]  }
  0x16   : > { %1083 = vmatpush1.bf16.msra.mxu0 %v1519_v10  ;;  %v1513_v14 = vld [vmem:[%s1761_s23 + $0x30] ss:$8 sps:$4 sm:$0xff]   ;;  %v1528_v16 = vld [vmem:[%s1761_s23 + $0x224] ss:$8 sps:$4 sm:$0xff]   ;;  %v1531_v17 = vld [vmem:[%s1761_s23 + $0x220] ss:$8 sps:$4 sm:$0xff]  }
  0x17   : > { %1084 = vmatprep.subr.bf16.mxu0 %v1522_v12  ;;  %v1518_v18 = vld [vmem:[%s1761_s23 + $0x40] ss:$8 sps:$4 sm:$0xff]   ;;  %v1534_v19 = vld [vmem:[%s1761_s23 + $0x234] ss:$8 sps:$4 sm:$0xff]   ;;  %v1524_v21 = vld [vmem:[%s1761_s23 + $0x50] ss:$8 sps:$4 sm:$0xff]  }
  0x18   : > { %979 = vmatpush1.bf16.msra.mxu1 %v1507_v6  ;;  %v1520_v20 = vld [vmem:[%s1761_s23 + $0x54] ss:$8 sps:$4 sm:$0xff]   ;;  %v1537_v22 = vld [vmem:[%s1761_s23 + $0x230] ss:$8 sps:$4 sm:$0xff]   ;;  %v1540_v23 = vld [vmem:[%s1761_s23 + $0x244] ss:$8 sps:$4 sm:$0xff]  }
  0x19   : > { %980 = vmatprep.subr.bf16.mxu1 %v1508_v7  ;;  %v1526_v24 = vld [vmem:[%s1761_s23 + $0x64] ss:$8 sps:$4 sm:$0xff]   ;;  %v1543_v25 = vld [vmem:[%s1761_s23 + $0x240] ss:$8 sps:$4 sm:$0xff]   ;;  %v1546_v27 = vld [vmem:[%s1761_s23 + $0x254] ss:$8 sps:$4 sm:$0xff]  }
  0x1a   : > { %1085 = vmatpush1.bf16.msra.mxu0 %v1525_v13  ;;  %v1530_v26 = vld [vmem:[%s1761_s23 + $0x60] ss:$8 sps:$4 sm:$0xff]   ;;  %v1532_v28 = vld [vmem:[%s1761_s23 + $0x74] ss:$8 sps:$4 sm:$0xff]   ;;  %v1536_v29 = vld [vmem:[%s1761_s23 + $0x70] ss:$8 sps:$4 sm:$0xff]  }
  0x1b   : > { %1086 = vmatprep.subr.bf16.mxu0 %v1528_v16  ;;  %v1549_v30 = vld [vmem:[%s1761_s23 + $0x250] ss:$8 sps:$4 sm:$0xff]   ;;  %v1552_v31 = vld [vmem:[%s1761_s23 + $0x264] ss:$8 sps:$4 sm:$0xff]   ;;  %v1555_v33 = vld [vmem:[%s1761_s23 + $0x260] ss:$8 sps:$4 sm:$0xff]  }
  0x1c   : > { %981 = vmatpush1.bf16.msra.mxu1 %v1510_v8  ;;  %v1538_v32 = vld [vmem:[%s1761_s23 + $0x84] ss:$8 sps:$4 sm:$0xff]   ;;  %v1542_v34 = vld [vmem:[%s1761_s23 + $0x80] ss:$8 sps:$4 sm:$0xff]   ;;  %v1558_v35 = vld [vmem:[%s1761_s23 + $0x274] ss:$8 sps:$4 sm:$0xff]  }
  0x1d   : > { %982 = vmatprep.subr.bf16.mxu1 %v1511_v11  ;;  %v1544_v36 = vld [vmem:[%s1761_s23 + $0x94] ss:$8 sps:$4 sm:$0xff]   ;;  %v1548_v37 = vld [vmem:[%s1761_s23 + $0x90] ss:$8 sps:$4 sm:$0xff]   ;;  %v1564_v39 = vld [vmem:[%s1761_s23 + $0x284] ss:$8 sps:$4 sm:$0xff]  }
  0x1e   : > { %1087 = vmatpush1.bf16.msra.mxu0 %v1531_v17  ;;  %v1561_v38 = vld [vmem:[%s1761_s23 + $0x270] ss:$8 sps:$4 sm:$0xff]   ;;  %v1550_v40 = vld [vmem:[%s1761_s23 + $0xa4] ss:$8 sps:$4 sm:$0xff]   ;;  %v1567_v41 = vld [vmem:[%s1761_s23 + $0x280] ss:$8 sps:$4 sm:$0xff]  }
  0x1f   : > { %1088 = vmatprep.subr.bf16.mxu0 %v1534_v19  ;;  %v1554_v42 = vld [vmem:[%s1761_s23 + $0xa0] ss:$8 sps:$4 sm:$0xff]   ;;  %v1570_v43 = vld [vmem:[%s1761_s23 + $0x294] ss:$8 sps:$4 sm:$0xff]   ;;  %v1573_v45 = vld [vmem:[%s1761_s23 + $0x290] ss:$8 sps:$4 sm:$0xff]  }
  0x20   : > { %983 = vmatpush1.bf16.msra.mxu1 %v1513_v14  ;;  %v1556_v44 = vld [vmem:[%s1761_s23 + $0xb4] ss:$8 sps:$4 sm:$0xff]   ;;  %v1560_v46 = vld [vmem:[%s1761_s23 + $0xb0] ss:$8 sps:$4 sm:$0xff]   ;;  %v1576_v47 = vld [vmem:[%s1761_s23 + $0x2a4] ss:$8 sps:$4 sm:$0xff]  }
  0x21   : > { %984 = vmatprep.subr.bf16.mxu1 %v1514_v15  ;;  %v1562_v48 = vld [vmem:[%s1761_s23 + $0xc4] ss:$8 sps:$4 sm:$0xff]   ;;  %v1579_v49 = vld [vmem:[%s1761_s23 + $0x2a0] ss:$8 sps:$4 sm:$0xff]   ;;  %v1582_v51 = vld [vmem:[%s1761_s23 + $0x2b4] ss:$8 sps:$4 sm:$0xff]  }
  0x22   : > { %1089 = vmatpush1.bf16.msra.mxu0 %v1537_v22  ;;  %v1566_v50 = vld [vmem:[%s1761_s23 + $0xc0] ss:$8 sps:$4 sm:$0xff]   ;;  %v1568_v52 = vld [vmem:[%s1761_s23 + $0xd4] ss:$8 sps:$4 sm:$0xff]   ;;  %v1585_v53 = vld [vmem:[%s1761_s23 + $0x2b0] ss:$8 sps:$4 sm:$0xff]  }
  0x23   : > { %1090 = vmatprep.subr.bf16.mxu0 %v1540_v23  ;;  %v1572_v54 = vld [vmem:[%s1761_s23 + $0xd0] ss:$8 sps:$4 sm:$0xff]   ;;  %v1592_v55 = vld [vmem:[%s1761_s23 + $0x2c4] ss:$8 sps:$4 sm:$0xff]   ;;  %v1594_v57 = vld [vmem:[%s1761_s23 + $0x2c0] ss:$8 sps:$4 sm:$0xff]  }
  0x24   : > { %985 = vmatpush1.bf16.msra.mxu1 %v1518_v18  ;;  %v1574_v56 = vld [vmem:[%s1761_s23 + $0xe4] ss:$8 sps:$4 sm:$0xff]   ;;  %v1578_v58 = vld [vmem:[%s1761_s23 + $0xe0] ss:$8 sps:$4 sm:$0xff]   ;;  %v1598_v59 = vld [vmem:[%s1761_s23 + $0x2d4] ss:$8 sps:$4 sm:$0xff]  }
  0x25   : > { %986 = vmatprep.subr.bf16.mxu1 %v1520_v20  ;;  %v1580_v60 = vld [vmem:[%s1761_s23 + $0xf4] ss:$8 sps:$4 sm:$0xff]   ;;  %v1600_v61 = vld [vmem:[%s1761_s23 + $0x2d0] ss:$8 sps:$4 sm:$0xff]   ;;  %v1604_v63 = vld [vmem:[%s1761_s23 + $0x2e4] ss:$8 sps:$4 sm:$0xff]  }
  0x26   : > { %1091 = vmatpush1.bf16.msra.mxu0 %v1543_v25  ;;  %v1584_v62 = vld [vmem:[%s1761_s23 + $0xf0] ss:$8 sps:$4 sm:$0xff]   ;;  %v1591_v0 = vld [vmem:[%s1761_s23 + $0x104] ss:$8 sps:$4 sm:$0xff]   ;;  %v1606_v3 = vld [vmem:[%s1761_s23 + $0x2e0] ss:$8 sps:$4 sm:$0xff]  }
  0x27   : > { %1092 = vmatprep.subr.bf16.mxu0 %v1546_v27  ;;  %v1668_v4 = vld [vmem:[%s1946_s0 + $0x3c] ss:$28 sps:$4 sm:$0xff]   ;;  %v1589_v5 = vld [vmem:[%s1761_s23 + $0x100] ss:$8 sps:$4 sm:$0xff]   ;;  %v1616_v10 = vld [vmem:[%s1946_s0 + $0x10] ss:$28 sps:$4 sm:$0xff]  }
  0x28   : > { %987 = vmatpush1.bf16.msra.mxu1 %v1524_v21  ;;  %v1610_v6 = vld [vmem:[%s1761_s23 + $0x2f4] ss:$8 sps:$4 sm:$0xff]   ;;  %v1612_v8 = vld [vmem:[%s1761_s23 + $0x2f0] ss:$8 sps:$4 sm:$0xff]   ;;  %v1621_v11 = vld [vmem:[%s1761_s23 + $0x304] ss:$8 sps:$4 sm:$0xff]  }
  0x29   : > { %988 = vmatprep.subr.bf16.mxu1 %v1526_v24  ;;  %v1597_v7 = vld [vmem:[%s1761_s23 + $0x114] ss:$8 sps:$4 sm:$0xff]   ;;  %v1595_v9 = vld [vmem:[%s1761_s23 + $0x110] ss:$8 sps:$4 sm:$0xff]   ;;  %v1603_v12 = vld [vmem:[%s1761_s23 + $0x124] ss:$8 sps:$4 sm:$0xff]  }
  0x2a   : > { %1093 = vmatpush1.bf16.msra.mxu0 %v1549_v30  ;;  %v1601_v13 = vld [vmem:[%s1761_s23 + $0x120] ss:$8 sps:$4 sm:$0xff]   ;;  %v1609_v15 = vld [vmem:[%s1761_s23 + $0x134] ss:$8 sps:$4 sm:$0xff]   ;;  %v1607_v20 = vld [vmem:[%s1761_s23 + $0x130] ss:$8 sps:$4 sm:$0xff]  }
  0x2b   : > { %1094 = vmatprep.subr.bf16.mxu0 %v1552_v31  ;;  %v1640_v14 = vld [vmem:[%s1946_s0 + $0x4c] ss:$28 sps:$4 sm:$0xff]   ;;  %v1627_v17 = vld [vmem:[%s1761_s23 + $0x314] ss:$8 sps:$4 sm:$0xff]   ;;  %v1625_v21 = vld [vmem:[%s1761_s23 + $0x310] ss:$8 sps:$4 sm:$0xff]  }
  0x2c   : > { %989 = vmatpush1.bf16.msra.mxu1 %v1530_v26  ;;  %v1619_v16 = vld [vmem:[%s1761_s23 + $0x300] ss:$8 sps:$4 sm:$0xff]   ;;  %v1671_v18 = vld [vmem:[%s1946_s0 + $0x38] ss:$28 sps:$4 sm:$0xff]   ;;  %v1633_v22 = vld [vmem:[%s1761_s23 + $0x324] ss:$8 sps:$4 sm:$0xff]  }
  0x2d   : > { %990 = vmatprep.subr.bf16.mxu1 %v1532_v28  ;;  %v1680_v19 = vld [vmem:[%s1946_s0 + $0xc] ss:$28 sps:$4 sm:$0xff]   ;;  %v335_v23 = vld [vmem:[%s1947_s1] sm:$0xff]  ;;  %v337_v24 = vld [vmem:[%s1947_s1 + $0x10] sm:$0xff] }
  0x2e   : > { %1095 = vmatpush1.bf16.msra.mxu0 %v1555_v33  ;;  %v1615_v25 = vld [vmem:[%s1761_s23 + $0x144] ss:$8 sps:$4 sm:$0xff]   ;;  %341 = vperm.xlu0 %1500, %v335_v23   ;;  %v1631_v27 = vld [vmem:[%s1761_s23 + $0x320] ss:$8 sps:$4 sm:$0xff]   ;;  %v1639_v30 = vld [vmem:[%s1761_s23 + $0x334] ss:$8 sps:$4 sm:$0xff]  }
  0x2f   : > { %1096 = vmatprep.subr.bf16.mxu0 %v1558_v35  ;;  %v1645_v26 = vld [vmem:[%s1946_s0 + $0x48] ss:$28 sps:$4 sm:$0xff]   ;;  %351 = vperm.xlu1 %1501, %v337_v24   ;;  %v1624_v31 = vld [vmem:[%s1761_s23 + $0x154] ss:$8 sps:$4 sm:$0xff]   ;;  %v1637_v33 = vld [vmem:[%s1761_s23 + $0x330] ss:$8 sps:$4 sm:$0xff]  }
  0x30   : > { %991 = vmatpush1.bf16.msra.mxu1 %v1536_v29  ;;  %v336_v28 = vld [vmem:[%s1947_s1 + $0x8] sm:$0xff] }
  0x31   : > { %992 = vmatprep.subr.bf16.mxu1 %v1538_v32  ;;  %v1613_v29 = vld [vmem:[%s1761_s23 + $0x140] ss:$8 sps:$4 sm:$0xff]   ;;  %v338_v32 = vld [vmem:[%s1947_s1 + $0x18] sm:$0xff]  ;;  %v1648_v35 = vld [vmem:[%s1761_s23 + $0x344] ss:$8 sps:$4 sm:$0xff]  }
  0x32   : > { %1097 = vmatpush1.bf16.msra.mxu0 %v1561_v38  ;;  %346 = vperm.xlu0 %1500, %v336_v28   ;;  %v1628_v38 = vld [vmem:[%s1761_s23 + $0x160] ss:$8 sps:$4 sm:$0xff]  }
  0x33   : > { %1098 = vmatprep.subr.bf16.mxu0 %v1564_v39  ;;  %356 = vperm.xlu1 %1501, %v338_v32   ;;  %v1654_v39 = vld [vmem:[%s1761_s23 + $0x354] ss:$8 sps:$4 sm:$0xff]  }
  0x34   : > { %993 = vmatpush1.bf16.msra.mxu1 %v1542_v34  ;;  %v1622_v34 = vld [vmem:[%s1761_s23 + $0x150] ss:$8 sps:$4 sm:$0xff]  }
  0x35   : > { %994 = vmatprep.subr.bf16.mxu1 %v1544_v36  ;;  %v1630_v36 = vld [vmem:[%s1761_s23 + $0x164] ss:$8 sps:$4 sm:$0xff]  }
  0x36   : > { %1099 = vmatpush1.bf16.msra.mxu0 %v1567_v41  ;;  %v1652_v41 = vld [vmem:[%s1761_s23 + $0x350] ss:$8 sps:$4 sm:$0xff]  }
  0x37   : > { %1100 = vmatprep.subr.bf16.mxu0 %v1570_v43  ;;  %v1644_v43 = vld [vmem:[%s1761_s23 + $0x184] ss:$8 sps:$4 sm:$0xff]  }
  0x38   : > { %995 = vmatpush1.bf16.msra.mxu1 %v1548_v37  ;;  %v1646_v37 = vld [vmem:[%s1761_s23 + $0x340] ss:$8 sps:$4 sm:$0xff]  }
  0x39   : > { %996 = vmatprep.subr.bf16.mxu1 %v1550_v40  ;;  %v1636_v40 = vld [vmem:[%s1761_s23 + $0x174] ss:$8 sps:$4 sm:$0xff]  }
  0x3a   : > { %1101 = vmatpush1.bf16.msra.mxu0 %v1573_v45  ;;  %v1642_v45 = vld [vmem:[%s1761_s23 + $0x180] ss:$8 sps:$4 sm:$0xff]  }
  0x3b   : > { %1102 = vmatprep.subr.bf16.mxu0 %v1576_v47  ;;  %v1649_v47 = vld [vmem:[%s1761_s23 + $0x190] ss:$8 sps:$4 sm:$0xff]  }
  0x3c   : > { %997 = vmatpush1.bf16.msra.mxu1 %v1554_v42  ;;  %v1634_v42 = vld [vmem:[%s1761_s23 + $0x170] ss:$8 sps:$4 sm:$0xff]  }
  0x3d   : > { %998 = vmatprep.subr.bf16.mxu1 %v1556_v44  ;;  %v1658_v44 = vld [vmem:[%s1946_s0 + $0x18] ss:$28 sps:$4 sm:$0xff]  }
  0x3e   : > { %1103 = vmatpush1.bf16.msra.mxu0 %v1579_v49  ;;  %v1670_v49 = vld [vmem:[%s1946_s0 + $0x50] ss:$28 sps:$4 sm:$0xff]  }
  0x3f   : > { %1104 = vmatprep.subr.bf16.mxu0 %v1582_v51  ;;  %v1661_v51 = vld [vmem:[%s1761_s23 + $0x1b4] ss:$8 sps:$4 sm:$0xff]  }
  0x40   : > { %999 = vmatpush1.bf16.msra.mxu1 %v1560_v46  ;;  %v1651_v46 = vld [vmem:[%s1761_s23 + $0x194] ss:$8 sps:$4 sm:$0xff]  }
  0x41   : > { %1000 = vmatprep.subr.bf16.mxu1 %v1562_v48  ;;  %v1657_v48 = vld [vmem:[%s1761_s23 + $0x1a4] ss:$8 sps:$4 sm:$0xff]  }
  0x42   : > { %1105 = vmatpush1.bf16.msra.mxu0 %v1585_v53  ;;  %v1662_v53 = vld [vmem:[%s1761_s23 + $0x1c0] ss:$8 sps:$4 sm:$0xff]  }
  0x43   : > { %1106 = vmatprep.subr.bf16.mxu0 %v1592_v55  ;;  %v1665_v55 = vld [vmem:[%s1761_s23 + $0x1d0] ss:$8 sps:$4 sm:$0xff]  }
  0x44   : > { %1001 = vmatpush1.bf16.msra.mxu1 %v1566_v50  ;;  %v1655_v50 = vld [vmem:[%s1761_s23 + $0x1a0] ss:$8 sps:$4 sm:$0xff]  }
  0x45   : > { %1002 = vmatprep.subr.bf16.mxu1 %v1568_v52  ;;  %v1664_v52 = vld [vmem:[%s1761_s23 + $0x1c4] ss:$8 sps:$4 sm:$0xff]  }
  0x46   : > { %1107 = vmatpush1.bf16.msra.mxu0 %v1594_v57  ;;  %v1672_v57 = vld [vmem:[%s1761_s23 + $0x1e0] ss:$8 sps:$4 sm:$0xff]  }
  0x47   : > { %1108 = vmatprep.subr.bf16.mxu0 %v1598_v59  ;;  %v1675_v59 = vld [vmem:[%s1761_s23 + $0x1f0] ss:$8 sps:$4 sm:$0xff]  }
  0x48   : > { %1003 = vmatpush1.bf16.msra.mxu1 %v1572_v54  ;;  %v1667_v54 = vld [vmem:[%s1761_s23 + $0x1d4] ss:$8 sps:$4 sm:$0xff]  }
  0x49   : > { %1004 = vmatprep.subr.bf16.mxu1 %v1574_v56  ;;  %v1674_v56 = vld [vmem:[%s1761_s23 + $0x1e4] ss:$8 sps:$4 sm:$0xff]  }
  0x4a   : > { %1109 = vmatpush1.bf16.msra.mxu0 %v1600_v61  ;;  %v1681_v61 = vld [vmem:[%s1946_s0 + $0x44] ss:$28 sps:$4 sm:$0xff]  }
  0x4b   : > { %1110 = vmatprep.subr.bf16.mxu0 %v1604_v63 }
  0x4c   : > { %1005 = vmatpush1.bf16.msra.mxu1 %v1578_v58  ;;  %v1677_v58 = vld [vmem:[%s1761_s23 + $0x1f4] ss:$8 sps:$4 sm:$0xff]  }
  0x4d   : > { %1006 = vmatprep.subr.bf16.mxu1 %v1580_v60  ;;  %v1678_v60 = vld [vmem:[%s1946_s0 + $0x8] ss:$28 sps:$4 sm:$0xff]  }
  0x4e   : > { %1111 = vmatpush1.bf16.msra.mxu0 %v1606_v3 }
  0x4f   : > { %1112 = vmatprep.subr.bf16.mxu0 %v1610_v6 }
  0x50   : > { %1007 = vmatpush1.bf16.msra.mxu1 %v1584_v62  ;;  %v1683_v62 = vld [vmem:[%s1946_s0 + $0x40] ss:$28 sps:$4 sm:$0xff]  }
  0x51   : > { %1029 = vmatprep.subr.bf16.mxu1 %v1591_v0 }
  0x52   : > { %1113 = vmatpush1.bf16.msra.mxu0 %v1612_v8 }
  0x53   : > { %1009 = vmatmul.mubr.bf16.vlgmr.msra.gmra.mrb[0].mxu1 %v1586_v2  ;;  %1135 = vmatprep.subr.bf16.mxu0 %v1621_v11 }
  0x54   : > { %1030 = vmatpush1.bf16.msra.mxu1 %v1589_v5  ;;  %1018 = vmatprep.mubr.bf16.mxu1 %v1668_v4 }
  0x55   : > { %1031 = vmatprep.subr.bf16.mxu1 %v1597_v7  ;;  %1115 = vmatmul.mubr.bf16.vlgmr.msra.gmra.mrb[0].mxu0 %v1616_v10 }
  0x56   : > { %1136 = vmatpush1.bf16.msra.mxu0 %v1619_v16  ;;  %1124 = vmatprep.mubr.bf16.mxu0 %v1640_v14 }
  0x57   : > { %1137 = vmatprep.subr.bf16.mxu0 %v1627_v17 }
  0x58   : > { %1032 = vmatpush1.bf16.msra.mxu1 %v1595_v9 }
  0x59   : > { %1033 = vmatprep.subr.bf16.mxu1 %v1603_v12 }
  0x5a   : > { %1138 = vmatpush1.bf16.msra.mxu0 %v1625_v21 }
  0x5b   : > { %1019 = vmatmul.mubr.bf16.gmra.mrb[4].mxu1 %v1671_v18  ;;  %1139 = vmatprep.subr.bf16.mxu0 %v1633_v22 }
  0x5c   : > { %1034 = vmatpush1.bf16.msra.mxu1 %v1601_v13  ;;  %1061 = vmatprep.mubr.bf16.mxu1 %v1680_v19 }
  0x5d   : > { %1035 = vmatprep.subr.bf16.mxu1 %v1609_v15  ;;  %1125 = vmatmul.mubr.bf16.gmra.mrb[4].mxu0 %v1645_v26 }
  0x5e   : > { %1140 = vmatpush1.bf16.msra.mxu0 %v1631_v27  ;;  %1167 = vmatprep.mubr.bf16.mxu0 %v1708_v1 }
  0x5f   : > { %1141 = vmatprep.subr.bf16.mxu0 %v1639_v30 }
  0x60   : > { %1036 = vmatpush1.bf16.msra.mxu1 %v1607_v20 }
  0x61   : > { %1037 = vmatprep.subr.bf16.mxu1 %v1615_v25 }
  0x62   : > { %1142 = vmatpush1.bf16.msra.mxu0 %v1637_v33 }
  0x63   : > { %1143 = vmatprep.subr.bf16.mxu0 %v1648_v35 }
  0x64   : > { %1038 = vmatpush1.bf16.msra.mxu1 %v1613_v29 }
  0x65   : > { %1039 = vmatprep.subr.bf16.mxu1 %v1624_v31 }
  0x66   : > { %1144 = vmatpush1.bf16.msra.mxu0 %v1646_v37 }
  0x67   : > { %1145 = vmatprep.subr.bf16.mxu0 %v1654_v39 }
  0x68   : > { %1040 = vmatpush1.bf16.msra.mxu1 %v1622_v34 }
  0x69   : > { %1041 = vmatprep.subr.bf16.mxu1 %v1630_v36 }
  0x6a   : > { %1146 = vmatpush1.bf16.msra.mxu0 %v1652_v41 }
  0x6c   : > { %1042 = vmatpush1.bf16.msra.mxu1 %v1628_v38 }
  0x6d   : > { %1043 = vmatprep.subr.bf16.mxu1 %v1636_v40  ;;  %1437 = vmatmul.mubr.msk.bf16.vlgmr.msra.gmra.mrb[0].mxu0 %vm969_vm0, %v1658_v44 }
  0x6e   : > { %1177 = vmatprep.mubr.bf16.mxu0 %v1708_v1  ;;  %v1659_v1 = vld [vmem:[%s1761_s23 + $0x1b0] ss:$8 sps:$4 sm:$0xff]   ;;  %s1441_s23 = sshll.u32 %s1955_s12, 6 }
  0x6f   : > { %s1927_s9 = scalar_lea.vmem %s1949_s3, %s1441_s23 }
  0x70   : > { %1044 = vmatpush1.bf16.msra.mxu1 %v1634_v42 }
  0x71   : > { %1045 = vmatprep.subr.bf16.mxu1 %v1644_v43 }
  0x74   : > { %1046 = vmatpush1.bf16.msra.mxu1 %v1642_v45 }
  0x75   : > { %1047 = vmatprep.subr.bf16.mxu1 %v1651_v46  ;;  %1438 = vmatmul.mubr.msk.bf16.gmra.mrb[4].mxu0 %vm969_vm0, %v1670_v49 }
  0x78   : > { %1048 = vmatpush1.bf16.msra.mxu1 %v1649_v47 }
  0x79   : > { %1049 = vmatprep.subr.bf16.mxu1 %v1657_v48 }
  0x7c   : > { %1050 = vmatpush1.bf16.msra.mxu1 %v1655_v50 }
  0x7d   : > { %1051 = vmatprep.subr.bf16.mxu1 %v1661_v51 }
  0x80   : > { %1052 = vmatpush1.bf16.msra.mxu1 %v1659_v1 }
  0x81   : > { %1053 = vmatprep.subr.bf16.mxu1 %v1664_v52 }
  0x84   : > { %1054 = vmatpush1.bf16.msra.mxu1 %v1662_v53 }
  0x85   : > { %1055 = vmatprep.subr.bf16.mxu1 %v1667_v54 }
  0x88   : > { %1056 = vmatpush1.bf16.msra.mxu1 %v1665_v55 }
  0x89   : > { %1057 = vmatprep.subr.bf16.mxu1 %v1674_v56 }
  0x8c   : > { %1058 = vmatpush1.bf16.msra.mxu1 %v1672_v57 }
  0x8d   : > { %1059 = vmatprep.subr.bf16.mxu1 %v1677_v58 }
  0x90   : > { %1060 = vmatpush1.bf16.msra.mxu1 %v1675_v59 }
  0x93   : > { %1062 = vmatmul.mubr.bf16.vlgmr.msra.gmra.mrb[0].mxu1 %v1678_v60 }
  0x94   : > { %1071 = vmatprep.mubr.bf16.mxu1 %v1681_v61 }
  0x9b   : > { %1072 = vmatmul.mubr.bf16.gmra.mrb[4].mxu1 %v1683_v62 }
  0xad   : > { %v342_v8 = vpop.permute.xlu0 %341 }
  0xae   : > { %v352_v19 = vpop.permute.xlu1 %351 }
  0xb1   : > { %v347_v10 = vpop.permute.xlu0 %346 }
  0xb2   : > { %v357_v34 = vpop.permute.xlu1 %356 }
 0x140   : > { %v1169_v63 = vpop.f32.mrb[0].mxu0 }
 0x141   : > { %v1171_v0 = vpop.f32.mrb[1].mxu0 }
 0x142   : > { %v1173_v2 = vpop.f32.mrb[2].mxu0 }
 0x143   : > { %v1175_v3 = vpop.f32.mrb[3].mxu0 }
 0x148   : > { %v1179_v4 = vpop.f32.mrb[4].mxu0 }
 0x149   : > { %v1181_v5 = vpop.f32.mrb[5].mxu0 }
 0x14a   : > { %v1183_v6 = vpop.f32.mrb[6].mxu0 }
 0x14b   : > { %v1185_v7 = vpop.f32.mrb[7].mxu0 }
 0x166   : > { %v1063_v9 = vpop.f32.mrb[0].mxu1 }
 0x167   : > { %v1442_v11 = vadd.f32 %v1063_v9, %v342_v8  ;;  %v1065_v12 = vpop.f32.mrb[1].mxu1 }
 0x168   : > { %v1444_v13 = vadd.f32 %v1065_v12, %v342_v8  ;;  %v1067_v14 = vpop.f32.mrb[2].mxu1 }
 0x169   : > { %v1443_v15 = vadd.f32 %v1442_v11, %v1169_v63  ;;  %v1446_v16 = vadd.f32 %v1067_v14, %v347_v10  ;;  %v1069_v17 = vpop.f32.mrb[3].mxu1 }
 0x16a   : > { %v1445_v18 = vadd.f32 %v1444_v13, %v1171_v0  ;;  %v1448_v20 = vadd.f32 %v1069_v17, %v347_v10 }
 0x16b   : > { %vm1188_vm1 = vcmp.gt.f32.partialorder %v1443_v15, 0.0  ;;  %v1196_v21 = vmul.f32 0.2, %v1443_v15  ;;  %v1447_v22 = vadd.f32 %v1446_v16, %v1173_v2 }
 0x16c   : > { %vm1189_vm2 = vcmp.gt.f32.partialorder %v1445_v18, 0.0  ;;  %v1197_v23 = vmul.f32 0.2, %v1445_v18  ;;  %v1449_v24 = vadd.f32 %v1448_v20, %v1175_v3 }
 0x16d   : > { %v1204_v25 = vsel %vm1188_vm1, %v1443_v15, %v1196_v21  ;;  %vm1190_vm3 = vcmp.gt.f32.partialorder %v1447_v22, 0.0  ;;  %v1198_v26 = vmul.f32 0.2, %v1447_v22 }
 0x16e   : > { %1212 = vst [vmem:[%s1927_s9] sm:$0xff] %v1204_v25  ;;  %v1205_v27 = vsel %vm1189_vm2, %v1445_v18, %v1197_v23  ;;  %vm1191_vm4 = vcmp.gt.f32.partialorder %v1449_v24, 0.0  ;;  %v1199_v28 = vmul.f32 0.2, %v1449_v24  ;;  %v1073_v29 = vpop.f32.mrb[4].mxu1 }
 0x16f   : > { %1213 = vst [vmem:[%s1927_s9 + $0x8] sm:$0xff] %v1205_v27  ;;  %v1206_v30 = vsel %vm1190_vm3, %v1447_v22, %v1198_v26  ;;  %v1450_v31 = vadd.f32 %v1073_v29, %v352_v19  ;;  %v1075_v32 = vpop.f32.mrb[5].mxu1 }
 0x170   : > { %1214 = vst [vmem:[%s1927_s9 + $0x10] sm:$0xff] %v1206_v30  ;;  %v1207_v33 = vsel %vm1191_vm4, %v1449_v24, %v1199_v28  ;;  %v1452_v35 = vadd.f32 %v1075_v32, %v352_v19  ;;  %v1077_v36 = vpop.f32.mrb[6].mxu1 }
 0x171   : > { %1215 = vst [vmem:[%s1927_s9 + $0x18] sm:$0xff] %v1207_v33  ;;  %v1451_v37 = vadd.f32 %v1450_v31, %v1179_v4  ;;  %v1454_v38 = vadd.f32 %v1077_v36, %v357_v34  ;;  %v1079_v39 = vpop.f32.mrb[7].mxu1 }
 0x172   : > { %v1453_v40 = vadd.f32 %v1452_v35, %v1181_v5  ;;  %v1456_v41 = vadd.f32 %v1079_v39, %v357_v34 }
 0x173   : > { %vm1192_vm5 = vcmp.gt.f32.partialorder %v1451_v37, 0.0  ;;  %v1200_v42 = vmul.f32 0.2, %v1451_v37  ;;  %v1455_v43 = vadd.f32 %v1454_v38, %v1183_v6 }
 0x174   : > { %vm1193_vm6 = vcmp.gt.f32.partialorder %v1453_v40, 0.0  ;;  %v1201_v44 = vmul.f32 0.2, %v1453_v40  ;;  %v1457_v45 = vadd.f32 %v1456_v41, %v1185_v7 }
 0x175   : > { %v1208_v46 = vsel %vm1192_vm5, %v1451_v37, %v1200_v42  ;;  %vm1194_vm7 = vcmp.gt.f32.partialorder %v1455_v43, 0.0  ;;  %v1202_v47 = vmul.f32 0.2, %v1455_v43 }
 0x176   : > { %1216 = vst [vmem:[%s1927_s9 + $0x20] sm:$0xff] %v1208_v46  ;;  %v1209_v48 = vsel %vm1193_vm6, %v1453_v40, %v1201_v44  ;;  %vm1195_vm8 = vcmp.gt.f32.partialorder %v1457_v45, 0.0  ;;  %v1203_v49 = vmul.f32 0.2, %v1457_v45 }
 0x177   : > { %1217 = vst [vmem:[%s1927_s9 + $0x28] sm:$0xff] %v1209_v48  ;;  %v1210_v50 = vsel %vm1194_vm7, %v1455_v43, %v1202_v47 }
 0x178   : > { %1218 = vst [vmem:[%s1927_s9 + $0x30] sm:$0xff] %v1210_v50  ;;  %v1211_v51 = vsel %vm1195_vm8, %v1457_v45, %v1203_v49 }
 0x179   : > { %1219 = vst [vmem:[%s1927_s9 + $0x38] sm:$0xff] %v1211_v51 }
 0x17a PF: > { %s13_s14 = sadd.s32 1, %s1706_s14   ;;  %s1950_s12 = smov %s1702_s13 }
 0x17b   : > { %p10_p5 = scmp.ge.s32.totalorder %s13_s14, 4   ;;  %s1951_s13 = smov %s1953_s15 }
 0x17d   :  { %12 = sbr.rel (!%p10_p5) target bundleno = 2 (0x2), region = 62 }

</bundles_post_ra>
